<compile_context>
chip_gen: v5e
topology: v5e:2x2
jax: 0.10.0
libtpu: 0.0.40
codegen_flags: <defaults>
</compile_context>

<pallas_src>
import jax
import jax.numpy as jnp
from jax.experimental import pallas as pl
from jax.experimental.pallas import tpu as pltpu

_LANE = 128
# Below this, pallas_call launch / DMA-setup cost dominates and the fused XLA
# clip is strictly faster.
_SMALL_BYTES = 1 << 20  # 1 MiB


def _relu6_kernel(x_ref, o_ref):
    # ReLU6: min(max(x, 0), 6) — 2 VPU ops, fully hidden under the HBM DMA.
    o_ref[...] = jnp.clip(x_ref[...], 0, 6)


def _round_up(v: int, m: int) -> int:
    return ((v + m - 1) // m) * m


def _chip_params():
    """Returns (cores sharing the 'parallel' grid, target bytes per block buffer)."""
    kind = ""
    try:
        kind = (getattr(jax.devices()[0], "device_kind", "") or "").lower()
    except Exception:
        pass
    multi_core = ("v7" in kind) or ("v4" in kind)  # 2 TensorCores share the grid
    num_cores = 2 if multi_core else 1
    # v7x: 8 MiB blocks (2 arrays x 2 pipeline bufs = 32 MiB) still fit its
    # 64 MiB physical VMEM and halve the ~0.35 us/step overhead vs 4 MiB blocks.
    # v5e/v6e: 4 MiB blocks already sit at ~86% of the HBM roofline.
    target_block_bytes = (8 << 20) if "v7" in kind else (4 << 20)
    return num_cores, target_block_bytes


def relu6_pallas(x: jax.Array) -> jax.Array:
    """ReLU6 applied elementwise; accepts any shape (e.g. NCHW)."""
    orig_shape = x.shape
    dtype = x.dtype
    n = x.size
    itemsize = jnp.dtype(dtype).itemsize

    # Fast path: tiny tensors (launch cost dominates) and ragged tails
    # (pad + slice would triple HBM traffic) go straight to fused XLA clip.
    if n == 0 or n * itemsize <= _SMALL_BYTES or n % _LANE != 0:
        return jnp.clip(x, 0, 6)

    rows = n // _LANE
    x2d = x.reshape(rows, _LANE)  # zero-copy lane-dense view

    # Sublane packing: 8 rows/vreg for 32-bit, 16 for bf16/fp16, 32 for int8/fp8.
    packing = 8 * max(1, 4 // itemsize)
    bytes_per_row = _LANE * itemsize
    num_cores, target_block_bytes = _chip_params()
    target_rows = max(packing,
                      (target_block_bytes // bytes_per_row) // packing * packing)

    num_blocks = pl.cdiv(rows, target_rows)
    if num_cores > 1:
        # Make the block count a multiple of the TensorCore count so the
        # "parallel" grid axis splits evenly across cores (v7x / megacore).
        num_blocks = _round_up(num_blocks, num_cores)
    if num_blocks <= 1:
        block_rows = rows  # single full-extent block (always layout-legal)
    else:
        block_rows = min(_round_up(pl.cdiv(rows, num_blocks), packing), rows)
    grid = (pl.cdiv(rows, block_rows),)

    # VMEM limit from the actual footprint: (in + out) x double buffering,
    # plus headroom for compiler-internal scratch.
    block_bytes = block_rows * bytes_per_row
    vmem_limit = min(4 * block_bytes + (4 << 20), 64 << 20)

    # NOTE: input_output_aliases={0: 0} would halve peak HBM footprint, but only
    # pays off when callers donate x; left off to avoid forced copies in eager use.
    out2d = pl.pallas_call(
        _relu6_kernel,
        out_shape=jax.ShapeDtypeStruct((rows, _LANE), dtype),
        grid_spec=pltpu.PrefetchScalarGridSpec(
            num_scalar_prefetch=0,
            grid=grid,
            in_specs=[pl.BlockSpec((block_rows, _LANE), lambda i: (i, 0))],
            out_specs=pl.BlockSpec((block_rows, _LANE), lambda i: (i, 0)),
        ),
        compiler_params=pltpu.CompilerParams(
            dimension_semantics=("parallel",),
            vmem_limit_bytes=vmem_limit,
        ),
    )(x2d)

    return out2d.reshape(orig_shape)


if __name__ == "__main__":
    key = jax.random.PRNGKey(0)
    k1, k2, k3, k4 = jax.random.split(key, 4)

    # Spec-sized NCHW input (2, 4, 16, 16): tiny -> fused XLA clip fast path.
    x_small = jax.random.normal(k1, (2, 4, 16, 16), dtype=jnp.float32) * 5.0
    out_small = jax.block_until_ready(relu6_pallas(x_small))
    assert out_small.shape == x_small.shape and out_small.dtype == x_small.dtype
    assert jnp.allclose(out_small, jnp.clip(x_small, 0.0, 6.0)), "mismatch (small f32)"

    # Larger NCHW input (2 MiB f32): exercises the Pallas streaming path.
    x_big = jax.random.normal(k2, (8, 16, 64, 64), dtype=jnp.float32) * 5.0
    out_big = jax.block_until_ready(relu6_pallas(x_big))
    assert out_big.shape == x_big.shape and out_big.dtype == x_big.dtype
    assert jnp.allclose(out_big, jnp.clip(x_big, 0.0, 6.0)), "mismatch (large f32)"

    # bf16 (2 MiB): exercises dtype-aware sublane packing in the Pallas path.
    x_bf = (jax.random.normal(k3, (8, 32, 64, 64)) * 5.0).astype(jnp.bfloat16)
    out_bf = jax.block_until_ready(relu6_pallas(x_bf))
    assert out_bf.dtype == jnp.bfloat16
    assert jnp.allclose(out_bf.astype(jnp.float32),
                        jnp.clip(x_bf.astype(jnp.float32), 0.0, 6.0)), "mismatch (bf16)"

    # Ragged shape: handled by the fused-clip fallback (no pad/slice passes).
    x_rag = jax.random.normal(k4, (3, 5, 7), dtype=jnp.float32) * 5.0
    out_rag = jax.block_until_ready(relu6_pallas(x_rag))
    assert jnp.allclose(out_rag, jnp.clip(x_rag, 0.0, 6.0)), "mismatch (ragged)"

    print("KERNEL_OK")
</pallas_src>

<mosaic_0001>
module attributes {stable_mosaic.version = 11 : i64} {
  func.func @_relu6_kernel(%arg0: i32, %arg1: memref<4096x128xf32, #tpu.memory_space<vmem>>, %arg2: memref<4096x128xf32, #tpu.memory_space<vmem>>) attributes {dimension_semantics = [#tpu.dimension_semantics<parallel>], iteration_bounds = array<i64: 1>, scalar_prefetch = 0 : i64, scratch_operands = 0 : i64, tpu.core_type = #tpu.core_type<tc>, window_params = [{transform_indices = @transform_0, window_bounds = array<i64: 4096, 128>}, {transform_indices = @transform_1, window_bounds = array<i64: 4096, 128>}]} {
    %c0 = arith.constant 0 : index
    %c0_0 = arith.constant 0 : index
    %0 = vector.load %arg1[%c0, %c0_0] : memref<4096x128xf32, #tpu.memory_space<vmem>>, vector<4096x128xf32>
    %c0_i32 = arith.constant 0 : i32
    %c6_i32 = arith.constant 6 : i32
    %1 = arith.sitofp %c0_i32 : i32 to f32
    %2 = vector.broadcast %1 : f32 to vector<4096x128xf32>
    %3 = arith.maximumf %2, %0 : vector<4096x128xf32>
    %4 = arith.sitofp %c6_i32 : i32 to f32
    %5 = vector.broadcast %4 : f32 to vector<4096x128xf32>
    %6 = arith.minimumf %5, %3 : vector<4096x128xf32>
    %c0_1 = arith.constant 0 : index
    %c0_2 = arith.constant 0 : index
    %7 = vector.load %arg2[%c0_1, %c0_2] : memref<4096x128xf32, #tpu.memory_space<vmem>>, vector<4096x128xf32>
    tpu.vector_store %arg2[%c0_1, %c0_2], %6 {strides = array<i32>} : memref<4096x128xf32, #tpu.memory_space<vmem>>, vector<4096x128xf32>,
    return
  }
  func.func @transform_0(%arg0: i32) -> (i32, i32) {
    %c0_i32 = arith.constant 0 : i32
    %c0_i32_0 = arith.constant 0 : i32
    return %arg0, %c0_i32 : i32, i32
  }
  func.func @transform_1(%arg0: i32) -> (i32, i32) {
    %c0_i32 = arith.constant 0 : i32
    %c0_i32_0 = arith.constant 0 : i32
    return %arg0, %c0_i32 : i32, i32
  }
}

</mosaic_0001>

<bundles_post_ra>
// kernel: tpu_custom_call.1
= control target key start
LH: loop header
LB: loop body
LE: loop exit
PB: predicated region body
PF: predicated region fallthrough
CT: control target
= control target key end

     0   :  { %6 = vsyncpa [#allocation3], 0  ;;  %s2174_s0 = inlined_call_operand.hbm [shape: f32[4096,128], index: 0, kind: input, shape index: {}]   ;;  %s2175_s1 = inlined_call_operand.hbm [shape: f32[4096,128], index: 1, kind: output, shape index: {}]  }
   0x1   :  { %7 = vsyncpa [#allocation4], 0  ;;  %s12_s8 = sshll.u32 %s2174_s0, 4  ;;  %s2148_s9 = smov [#allocation2]   ;;  %s13_s8 = int_to_ptr.hbm [resolvable:$true] %s12_s8 }
   0x2   :  { %s14_s10 = sshll.u32 %s2148_s9, 4  ;;  %s2149_s11 = smov 128   ;;  %s15_s10 = int_to_ptr.vmem [resolvable:$true] %s14_s10 }
   0x3   :  { %s2150_s12 = smov 8  }
   0x4   :  { %20 = dma.hbm_to_vmem [thread:$0]  %s13_s8, 65536, %s15_s10, [#allocation3], %s2149_s11, %s2149_s11, %s2150_s12  }
   0x5   :  { %2144 = dma.done.wait [#allocation3], 65536  }
   0x6   :  { %2145 = vsyncadd [#allocation3], 4294901760  ;;  %v25_v0 = vld [vmem:[#allocation2] sm:$0xff]  ;;  %v26_v1 = vld [vmem:[#allocation2 + $0x8] sm:$0xff]  ;;  %s2151_s0 = smov [#allocation5]   ;;  %s2079_s16 = sshll.u32 %s2175_s1, 4  ;;  %s2080_s16 = int_to_ptr.hbm [resolvable:$true] %s2079_s16 }
   0x7   :  { %v27_v2 = vld [vmem:[#allocation2 + $0x10] sm:$0xff]  ;;  %v537_v3 = vmax.f32 %v25_v0, 0.0  ;;  %v538_v4 = vmax.f32 %v26_v1, 0.0  ;;  %v28_v6 = vld [vmem:[#allocation2 + $0x18] sm:$0xff]  ;;  %v29_v7 = vld [vmem:[#allocation2 + $0x20] sm:$0xff]  ;;  %s2077_s13 = sshll.u32 %s2151_s0, 4  ;;  %s2078_s13 = int_to_ptr.vmem [resolvable:$true] %s2077_s13 }
   0x8   :  { %v539_v5 = vmax.f32 %v27_v2, 0.0  ;;  %v30_v8 = vld [vmem:[#allocation2 + $0x28] sm:$0xff]  ;;  %v540_v9 = vmax.f32 %v28_v6, 0.0  ;;  %v541_v10 = vmax.f32 %v29_v7, 0.0  ;;  %v31_v12 = vld [vmem:[#allocation2 + $0x30] sm:$0xff]  ;;  %v32_v13 = vld [vmem:[#allocation2 + $0x38] sm:$0xff] }
   0x9   :  { %v542_v11 = vmax.f32 %v30_v8, 0.0  ;;  %v33_v14 = vld [vmem:[#allocation2 + $0x40] sm:$0xff]  ;;  %v1049_v15 = vmin.f32 %v537_v3, 6.0  ;;  %v1050_v16 = vmin.f32 %v538_v4, 6.0  ;;  %v543_v18 = vmax.f32 %v31_v12, 0.0  ;;  %v34_v19 = vld [vmem:[#allocation2 + $0x48] sm:$0xff] }
   0xa   :  { %v1051_v17 = vmin.f32 %v539_v5, 6.0  ;;  %v1052_v20 = vmin.f32 %v540_v9, 6.0  ;;  %v544_v21 = vmax.f32 %v32_v13, 0.0  ;;  %v35_v22 = vld [vmem:[#allocation2 + $0x50] sm:$0xff]  ;;  %v1053_v23 = vmin.f32 %v541_v10, 6.0  ;;  %v36_v25 = vld [vmem:[#allocation2 + $0x58] sm:$0xff] }
   0xb   :  { %1561 = vst [vmem:[#allocation5] sm:$0xff] %v1049_v15  ;;  %v545_v24 = vmax.f32 %v33_v14, 0.0  ;;  %v1054_v26 = vmin.f32 %v542_v11, 6.0  ;;  %v546_v27 = vmax.f32 %v34_v19, 0.0  ;;  %v37_v28 = vld [vmem:[#allocation2 + $0x60] sm:$0xff]  ;;  %v1055_v29 = vmin.f32 %v543_v18, 6.0 }
   0xc   :  { %1562 = vst [vmem:[#allocation5 + $0x8] sm:$0xff] %v1050_v16  ;;  %v547_v30 = vmax.f32 %v35_v22, 0.0  ;;  %v38_v31 = vld [vmem:[#allocation2 + $0x68] sm:$0xff]  ;;  %v1056_v32 = vmin.f32 %v544_v21, 6.0  ;;  %v548_v33 = vmax.f32 %v36_v25, 0.0  ;;  %v39_v34 = vld [vmem:[#allocation2 + $0x70] sm:$0xff] }
   0xd   :  { %1563 = vst [vmem:[#allocation5 + $0x10] sm:$0xff] %v1051_v17  ;;  %v1057_v35 = vmin.f32 %v545_v24, 6.0  ;;  %v549_v36 = vmax.f32 %v37_v28, 0.0  ;;  %v40_v37 = vld [vmem:[#allocation2 + $0x78] sm:$0xff]  ;;  %v1058_v38 = vmin.f32 %v546_v27, 6.0  ;;  %v550_v39 = vmax.f32 %v38_v31, 0.0 }
   0xe   :  { %1564 = vst [vmem:[#allocation5 + $0x18] sm:$0xff] %v1052_v20  ;;  %v41_v40 = vld [vmem:[#allocation2 + $0x80] sm:$0xff]  ;;  %v1059_v41 = vmin.f32 %v547_v30, 6.0  ;;  %v551_v42 = vmax.f32 %v39_v34, 0.0  ;;  %v42_v43 = vld [vmem:[#allocation2 + $0x88] sm:$0xff]  ;;  %v1060_v44 = vmin.f32 %v548_v33, 6.0 }
   0xf   :  { %1565 = vst [vmem:[#allocation5 + $0x20] sm:$0xff] %v1053_v23  ;;  %v552_v45 = vmax.f32 %v40_v37, 0.0  ;;  %v43_v46 = vld [vmem:[#allocation2 + $0x90] sm:$0xff]  ;;  %v1061_v47 = vmin.f32 %v549_v36, 6.0  ;;  %v553_v48 = vmax.f32 %v41_v40, 0.0  ;;  %v44_v49 = vld [vmem:[#allocation2 + $0x98] sm:$0xff] }
  0x10   :  { %1566 = vst [vmem:[#allocation5 + $0x28] sm:$0xff] %v1054_v26  ;;  %v1062_v50 = vmin.f32 %v550_v39, 6.0  ;;  %v554_v51 = vmax.f32 %v42_v43, 0.0  ;;  %v45_v52 = vld [vmem:[#allocation2 + $0xa0] sm:$0xff]  ;;  %v1063_v53 = vmin.f32 %v551_v42, 6.0  ;;  %v555_v54 = vmax.f32 %v43_v46, 0.0 }
  0x11   :  { %1567 = vst [vmem:[#allocation5 + $0x30] sm:$0xff] %v1055_v29  ;;  %v46_v55 = vld [vmem:[#allocation2 + $0xa8] sm:$0xff]  ;;  %v1064_v56 = vmin.f32 %v552_v45, 6.0  ;;  %v556_v57 = vmax.f32 %v44_v49, 0.0  ;;  %v47_v58 = vld [vmem:[#allocation2 + $0xb0] sm:$0xff]  ;;  %v1065_v59 = vmin.f32 %v553_v48, 6.0 }
  0x12   :  { %1568 = vst [vmem:[#allocation5 + $0x38] sm:$0xff] %v1056_v32  ;;  %v557_v60 = vmax.f32 %v45_v52, 0.0  ;;  %v48_v61 = vld [vmem:[#allocation2 + $0xb8] sm:$0xff]  ;;  %v1066_v62 = vmin.f32 %v554_v51, 6.0  ;;  %v558_v63 = vmax.f32 %v46_v55, 0.0  ;;  %v49_v0 = vld [vmem:[#allocation2 + $0xc0] sm:$0xff] }
  0x13   :  { %1569 = vst [vmem:[#allocation5 + $0x40] sm:$0xff] %v1057_v35  ;;  %v1067_v1 = vmin.f32 %v555_v54, 6.0  ;;  %v559_v2 = vmax.f32 %v47_v58, 0.0  ;;  %v50_v3 = vld [vmem:[#allocation2 + $0xc8] sm:$0xff]  ;;  %v1068_v4 = vmin.f32 %v556_v57, 6.0  ;;  %v560_v5 = vmax.f32 %v48_v61, 0.0 }
  0x14   :  { %1570 = vst [vmem:[#allocation5 + $0x48] sm:$0xff] %v1058_v38  ;;  %v51_v6 = vld [vmem:[#allocation2 + $0xd0] sm:$0xff]  ;;  %v1069_v7 = vmin.f32 %v557_v60, 6.0  ;;  %v561_v8 = vmax.f32 %v49_v0, 0.0  ;;  %v52_v9 = vld [vmem:[#allocation2 + $0xd8] sm:$0xff]  ;;  %v1070_v10 = vmin.f32 %v558_v63, 6.0 }
  0x15   :  { %1571 = vst [vmem:[#allocation5 + $0x50] sm:$0xff] %v1059_v41  ;;  %v562_v11 = vmax.f32 %v50_v3, 0.0  ;;  %v53_v12 = vld [vmem:[#allocation2 + $0xe0] sm:$0xff]  ;;  %v1071_v13 = vmin.f32 %v559_v2, 6.0  ;;  %v563_v14 = vmax.f32 %v51_v6, 0.0  ;;  %v54_v15 = vld [vmem:[#allocation2 + $0xe8] sm:$0xff] }
  0x16   :  { %1572 = vst [vmem:[#allocation5 + $0x58] sm:$0xff] %v1060_v44  ;;  %v1072_v16 = vmin.f32 %v560_v5, 6.0  ;;  %v564_v17 = vmax.f32 %v52_v9, 0.0  ;;  %v55_v18 = vld [vmem:[#allocation2 + $0xf0] sm:$0xff]  ;;  %v1073_v19 = vmin.f32 %v561_v8, 6.0  ;;  %v565_v20 = vmax.f32 %v53_v12, 0.0 }
  0x17   :  { %1573 = vst [vmem:[#allocation5 + $0x60] sm:$0xff] %v1061_v47  ;;  %v56_v21 = vld [vmem:[#allocation2 + $0xf8] sm:$0xff]  ;;  %v1074_v22 = vmin.f32 %v562_v11, 6.0  ;;  %v566_v23 = vmax.f32 %v54_v15, 0.0  ;;  %v57_v24 = vld [vmem:[#allocation2 + $0x100] sm:$0xff]  ;;  %v1075_v25 = vmin.f32 %v563_v14, 6.0 }
  0x18   :  { %1574 = vst [vmem:[#allocation5 + $0x68] sm:$0xff] %v1062_v50  ;;  %v567_v26 = vmax.f32 %v55_v18, 0.0  ;;  %v58_v27 = vld [vmem:[#allocation2 + $0x108] sm:$0xff]  ;;  %v1076_v28 = vmin.f32 %v564_v17, 6.0  ;;  %v568_v29 = vmax.f32 %v56_v21, 0.0  ;;  %v59_v30 = vld [vmem:[#allocation2 + $0x110] sm:$0xff] }
  0x19   :  { %1575 = vst [vmem:[#allocation5 + $0x70] sm:$0xff] %v1063_v53  ;;  %v1077_v31 = vmin.f32 %v565_v20, 6.0  ;;  %v569_v32 = vmax.f32 %v57_v24, 0.0  ;;  %v60_v33 = vld [vmem:[#allocation2 + $0x118] sm:$0xff]  ;;  %v1078_v34 = vmin.f32 %v566_v23, 6.0  ;;  %v570_v35 = vmax.f32 %v58_v27, 0.0 }
  0x1a   :  { %1576 = vst [vmem:[#allocation5 + $0x78] sm:$0xff] %v1064_v56  ;;  %v61_v36 = vld [vmem:[#allocation2 + $0x120] sm:$0xff]  ;;  %v1079_v37 = vmin.f32 %v567_v26, 6.0  ;;  %v571_v38 = vmax.f32 %v59_v30, 0.0  ;;  %v62_v39 = vld [vmem:[#allocation2 + $0x128] sm:$0xff]  ;;  %v1080_v40 = vmin.f32 %v568_v29, 6.0 }
  0x1b   :  { %1577 = vst [vmem:[#allocation5 + $0x80] sm:$0xff] %v1065_v59  ;;  %v572_v41 = vmax.f32 %v60_v33, 0.0  ;;  %v63_v42 = vld [vmem:[#allocation2 + $0x130] sm:$0xff]  ;;  %v1081_v43 = vmin.f32 %v569_v32, 6.0  ;;  %v573_v44 = vmax.f32 %v61_v36, 0.0  ;;  %v64_v45 = vld [vmem:[#allocation2 + $0x138] sm:$0xff] }
  0x1c   :  { %1578 = vst [vmem:[#allocation5 + $0x88] sm:$0xff] %v1066_v62  ;;  %v1082_v46 = vmin.f32 %v570_v35, 6.0  ;;  %v574_v47 = vmax.f32 %v62_v39, 0.0  ;;  %v65_v48 = vld [vmem:[#allocation2 + $0x140] sm:$0xff]  ;;  %v1083_v49 = vmin.f32 %v571_v38, 6.0  ;;  %v575_v50 = vmax.f32 %v63_v42, 0.0 }
  0x1d   :  { %1579 = vst [vmem:[#allocation5 + $0x90] sm:$0xff] %v1067_v1  ;;  %v66_v51 = vld [vmem:[#allocation2 + $0x148] sm:$0xff]  ;;  %v1084_v52 = vmin.f32 %v572_v41, 6.0  ;;  %v576_v53 = vmax.f32 %v64_v45, 0.0  ;;  %v67_v54 = vld [vmem:[#allocation2 + $0x150] sm:$0xff]  ;;  %v1085_v55 = vmin.f32 %v573_v44, 6.0 }
  0x1e   :  { %1580 = vst [vmem:[#allocation5 + $0x98] sm:$0xff] %v1068_v4  ;;  %v577_v56 = vmax.f32 %v65_v48, 0.0  ;;  %v68_v57 = vld [vmem:[#allocation2 + $0x158] sm:$0xff]  ;;  %v1086_v58 = vmin.f32 %v574_v47, 6.0  ;;  %v578_v59 = vmax.f32 %v66_v51, 0.0  ;;  %v69_v60 = vld [vmem:[#allocation2 + $0x160] sm:$0xff] }
  0x1f   :  { %1581 = vst [vmem:[#allocation5 + $0xa0] sm:$0xff] %v1069_v7  ;;  %v1087_v61 = vmin.f32 %v575_v50, 6.0  ;;  %v579_v62 = vmax.f32 %v67_v54, 0.0  ;;  %v70_v63 = vld [vmem:[#allocation2 + $0x168] sm:$0xff]  ;;  %v1088_v0 = vmin.f32 %v576_v53, 6.0  ;;  %v580_v1 = vmax.f32 %v68_v57, 0.0 }
  0x20   :  { %1582 = vst [vmem:[#allocation5 + $0xa8] sm:$0xff] %v1070_v10  ;;  %v71_v2 = vld [vmem:[#allocation2 + $0x170] sm:$0xff]  ;;  %v1089_v3 = vmin.f32 %v577_v56, 6.0  ;;  %v581_v4 = vmax.f32 %v69_v60, 0.0  ;;  %v72_v5 = vld [vmem:[#allocation2 + $0x178] sm:$0xff]  ;;  %v1090_v6 = vmin.f32 %v578_v59, 6.0 }
  0x21   :  { %1583 = vst [vmem:[#allocation5 + $0xb0] sm:$0xff] %v1071_v13  ;;  %v582_v7 = vmax.f32 %v70_v63, 0.0  ;;  %v73_v8 = vld [vmem:[#allocation2 + $0x180] sm:$0xff]  ;;  %v1091_v9 = vmin.f32 %v579_v62, 6.0  ;;  %v583_v10 = vmax.f32 %v71_v2, 0.0  ;;  %v74_v11 = vld [vmem:[#allocation2 + $0x188] sm:$0xff] }
  0x22   :  { %1584 = vst [vmem:[#allocation5 + $0xb8] sm:$0xff] %v1072_v16  ;;  %v1092_v12 = vmin.f32 %v580_v1, 6.0  ;;  %v584_v13 = vmax.f32 %v72_v5, 0.0  ;;  %v75_v14 = vld [vmem:[#allocation2 + $0x190] sm:$0xff]  ;;  %v1093_v15 = vmin.f32 %v581_v4, 6.0  ;;  %v585_v16 = vmax.f32 %v73_v8, 0.0 }
  0x23   :  { %1585 = vst [vmem:[#allocation5 + $0xc0] sm:$0xff] %v1073_v19  ;;  %v76_v17 = vld [vmem:[#allocation2 + $0x198] sm:$0xff]  ;;  %v1094_v18 = vmin.f32 %v582_v7, 6.0  ;;  %v586_v19 = vmax.f32 %v74_v11, 0.0  ;;  %v77_v20 = vld [vmem:[#allocation2 + $0x1a0] sm:$0xff]  ;;  %v1095_v21 = vmin.f32 %v583_v10, 6.0 }
  0x24   :  { %1586 = vst [vmem:[#allocation5 + $0xc8] sm:$0xff] %v1074_v22  ;;  %v587_v22 = vmax.f32 %v75_v14, 0.0  ;;  %v78_v23 = vld [vmem:[#allocation2 + $0x1a8] sm:$0xff]  ;;  %v1096_v24 = vmin.f32 %v584_v13, 6.0  ;;  %v79_v26 = vld [vmem:[#allocation2 + $0x1b0] sm:$0xff]  ;;  %v1097_v27 = vmin.f32 %v585_v16, 6.0 }
  0x25   :  { %1587 = vst [vmem:[#allocation5 + $0xd0] sm:$0xff] %v1075_v25  ;;  %v588_v25 = vmax.f32 %v76_v17, 0.0  ;;  %v80_v29 = vld [vmem:[#allocation2 + $0x1b8] sm:$0xff]  ;;  %v1098_v30 = vmin.f32 %v586_v19, 6.0  ;;  %v81_v32 = vld [vmem:[#allocation2 + $0x1c0] sm:$0xff]  ;;  %v82_v35 = vld [vmem:[#allocation2 + $0x1c8] sm:$0xff] }
  0x26   :  { %1588 = vst [vmem:[#allocation5 + $0xd8] sm:$0xff] %v1076_v28  ;;  %v589_v28 = vmax.f32 %v77_v20, 0.0  ;;  %v1099_v33 = vmin.f32 %v587_v22, 6.0  ;;  %v83_v38 = vld [vmem:[#allocation2 + $0x1d0] sm:$0xff]  ;;  %v84_v41 = vld [vmem:[#allocation2 + $0x1d8] sm:$0xff]  ;;  %v85_v44 = vld [vmem:[#allocation2 + $0x1e0] sm:$0xff] }
  0x27   :  { %1589 = vst [vmem:[#allocation5 + $0xe0] sm:$0xff] %v1077_v31  ;;  %v590_v31 = vmax.f32 %v78_v23, 0.0  ;;  %v1100_v36 = vmin.f32 %v588_v25, 6.0  ;;  %v86_v47 = vld [vmem:[#allocation2 + $0x1e8] sm:$0xff]  ;;  %v87_v50 = vld [vmem:[#allocation2 + $0x1f0] sm:$0xff]  ;;  %v88_v53 = vld [vmem:[#allocation2 + $0x1f8] sm:$0xff] }
  0x28   :  { %1590 = vst [vmem:[#allocation5 + $0xe8] sm:$0xff] %v1078_v34  ;;  %v591_v34 = vmax.f32 %v79_v26, 0.0  ;;  %v1101_v39 = vmin.f32 %v589_v28, 6.0  ;;  %v89_v56 = vld [vmem:[#allocation2 + $0x200] sm:$0xff]  ;;  %v90_v59 = vld [vmem:[#allocation2 + $0x208] sm:$0xff]  ;;  %v91_v62 = vld [vmem:[#allocation2 + $0x210] sm:$0xff] }
  0x29   :  { %1591 = vst [vmem:[#allocation5 + $0xf0] sm:$0xff] %v1079_v37  ;;  %v592_v37 = vmax.f32 %v80_v29, 0.0  ;;  %v1102_v42 = vmin.f32 %v590_v31, 6.0  ;;  %v92_v1 = vld [vmem:[#allocation2 + $0x218] sm:$0xff]  ;;  %v93_v4 = vld [vmem:[#allocation2 + $0x220] sm:$0xff]  ;;  %v94_v7 = vld [vmem:[#allocation2 + $0x228] sm:$0xff] }
  0x2a   :  { %1592 = vst [vmem:[#allocation5 + $0xf8] sm:$0xff] %v1080_v40  ;;  %v593_v40 = vmax.f32 %v81_v32, 0.0  ;;  %v1103_v45 = vmin.f32 %v591_v34, 6.0  ;;  %v95_v10 = vld [vmem:[#allocation2 + $0x230] sm:$0xff]  ;;  %v96_v13 = vld [vmem:[#allocation2 + $0x238] sm:$0xff]  ;;  %v97_v16 = vld [vmem:[#allocation2 + $0x240] sm:$0xff] }
  0x2b   :  { %1593 = vst [vmem:[#allocation5 + $0x100] sm:$0xff] %v1081_v43  ;;  %v594_v43 = vmax.f32 %v82_v35, 0.0  ;;  %v1104_v48 = vmin.f32 %v592_v37, 6.0  ;;  %v98_v19 = vld [vmem:[#allocation2 + $0x248] sm:$0xff]  ;;  %v99_v22 = vld [vmem:[#allocation2 + $0x250] sm:$0xff]  ;;  %v100_v25 = vld [vmem:[#allocation2 + $0x258] sm:$0xff] }
  0x2c   :  { %1594 = vst [vmem:[#allocation5 + $0x108] sm:$0xff] %v1082_v46  ;;  %v595_v46 = vmax.f32 %v83_v38, 0.0  ;;  %v1105_v51 = vmin.f32 %v593_v40, 6.0  ;;  %v101_v28 = vld [vmem:[#allocation2 + $0x260] sm:$0xff]  ;;  %v102_v31 = vld [vmem:[#allocation2 + $0x268] sm:$0xff]  ;;  %v103_v34 = vld [vmem:[#allocation2 + $0x270] sm:$0xff] }
  0x2d   :  { %1595 = vst [vmem:[#allocation5 + $0x110] sm:$0xff] %v1083_v49  ;;  %v596_v49 = vmax.f32 %v84_v41, 0.0  ;;  %v1106_v54 = vmin.f32 %v594_v43, 6.0  ;;  %v104_v37 = vld [vmem:[#allocation2 + $0x278] sm:$0xff]  ;;  %v105_v40 = vld [vmem:[#allocation2 + $0x280] sm:$0xff]  ;;  %v106_v43 = vld [vmem:[#allocation2 + $0x288] sm:$0xff] }
  0x2e   :  { %1596 = vst [vmem:[#allocation5 + $0x118] sm:$0xff] %v1084_v52  ;;  %v597_v52 = vmax.f32 %v85_v44, 0.0  ;;  %v1107_v57 = vmin.f32 %v595_v46, 6.0  ;;  %v107_v46 = vld [vmem:[#allocation2 + $0x290] sm:$0xff] }
  0x2f   :  { %1597 = vst [vmem:[#allocation5 + $0x120] sm:$0xff] %v1085_v55  ;;  %v598_v55 = vmax.f32 %v86_v47, 0.0  ;;  %v1108_v60 = vmin.f32 %v596_v49, 6.0  ;;  %v108_v49 = vld [vmem:[#allocation2 + $0x298] sm:$0xff] }
  0x30   :  { %1598 = vst [vmem:[#allocation5 + $0x128] sm:$0xff] %v1086_v58  ;;  %v599_v58 = vmax.f32 %v87_v50, 0.0  ;;  %v1109_v63 = vmin.f32 %v597_v52, 6.0  ;;  %v109_v52 = vld [vmem:[#allocation2 + $0x2a0] sm:$0xff] }
  0x31   :  { %1599 = vst [vmem:[#allocation5 + $0x130] sm:$0xff] %v1087_v61  ;;  %v600_v61 = vmax.f32 %v88_v53, 0.0  ;;  %v1110_v2 = vmin.f32 %v598_v55, 6.0  ;;  %v110_v55 = vld [vmem:[#allocation2 + $0x2a8] sm:$0xff] }
  0x32   :  { %1600 = vst [vmem:[#allocation5 + $0x138] sm:$0xff] %v1088_v0  ;;  %v601_v0 = vmax.f32 %v89_v56, 0.0  ;;  %v1111_v5 = vmin.f32 %v599_v58, 6.0  ;;  %v111_v58 = vld [vmem:[#allocation2 + $0x2b0] sm:$0xff] }
  0x33   :  { %1601 = vst [vmem:[#allocation5 + $0x140] sm:$0xff] %v1089_v3  ;;  %v602_v3 = vmax.f32 %v90_v59, 0.0  ;;  %v1112_v8 = vmin.f32 %v600_v61, 6.0  ;;  %v112_v61 = vld [vmem:[#allocation2 + $0x2b8] sm:$0xff] }
  0x34   :  { %1602 = vst [vmem:[#allocation5 + $0x148] sm:$0xff] %v1090_v6  ;;  %v603_v6 = vmax.f32 %v91_v62, 0.0  ;;  %v1113_v11 = vmin.f32 %v601_v0, 6.0  ;;  %v113_v0 = vld [vmem:[#allocation2 + $0x2c0] sm:$0xff] }
  0x35   :  { %1603 = vst [vmem:[#allocation5 + $0x150] sm:$0xff] %v1091_v9  ;;  %v604_v9 = vmax.f32 %v92_v1, 0.0  ;;  %v1114_v14 = vmin.f32 %v602_v3, 6.0  ;;  %v114_v3 = vld [vmem:[#allocation2 + $0x2c8] sm:$0xff] }
  0x36   :  { %1604 = vst [vmem:[#allocation5 + $0x158] sm:$0xff] %v1092_v12  ;;  %v605_v12 = vmax.f32 %v93_v4, 0.0  ;;  %v1115_v17 = vmin.f32 %v603_v6, 6.0  ;;  %v115_v6 = vld [vmem:[#allocation2 + $0x2d0] sm:$0xff] }
  0x37   :  { %1605 = vst [vmem:[#allocation5 + $0x160] sm:$0xff] %v1093_v15  ;;  %v606_v15 = vmax.f32 %v94_v7, 0.0  ;;  %v1116_v20 = vmin.f32 %v604_v9, 6.0  ;;  %v116_v9 = vld [vmem:[#allocation2 + $0x2d8] sm:$0xff] }
  0x38   :  { %1606 = vst [vmem:[#allocation5 + $0x168] sm:$0xff] %v1094_v18  ;;  %v607_v18 = vmax.f32 %v95_v10, 0.0  ;;  %v1117_v23 = vmin.f32 %v605_v12, 6.0  ;;  %v117_v12 = vld [vmem:[#allocation2 + $0x2e0] sm:$0xff] }
  0x39   :  { %1607 = vst [vmem:[#allocation5 + $0x170] sm:$0xff] %v1095_v21  ;;  %v608_v21 = vmax.f32 %v96_v13, 0.0  ;;  %v1118_v26 = vmin.f32 %v606_v15, 6.0  ;;  %v118_v15 = vld [vmem:[#allocation2 + $0x2e8] sm:$0xff] }
  0x3a   :  { %1608 = vst [vmem:[#allocation5 + $0x178] sm:$0xff] %v1096_v24  ;;  %v609_v24 = vmax.f32 %v97_v16, 0.0  ;;  %v1119_v29 = vmin.f32 %v607_v18, 6.0  ;;  %v119_v18 = vld [vmem:[#allocation2 + $0x2f0] sm:$0xff] }
  0x3b   :  { %1609 = vst [vmem:[#allocation5 + $0x180] sm:$0xff] %v1097_v27  ;;  %v610_v27 = vmax.f32 %v98_v19, 0.0  ;;  %v1120_v32 = vmin.f32 %v608_v21, 6.0  ;;  %v120_v21 = vld [vmem:[#allocation2 + $0x2f8] sm:$0xff] }
  0x3c   :  { %1610 = vst [vmem:[#allocation5 + $0x188] sm:$0xff] %v1098_v30  ;;  %v611_v30 = vmax.f32 %v99_v22, 0.0  ;;  %v1121_v35 = vmin.f32 %v609_v24, 6.0  ;;  %v121_v24 = vld [vmem:[#allocation2 + $0x300] sm:$0xff] }
  0x3d   :  { %1611 = vst [vmem:[#allocation5 + $0x190] sm:$0xff] %v1099_v33  ;;  %v612_v33 = vmax.f32 %v100_v25, 0.0  ;;  %v1122_v38 = vmin.f32 %v610_v27, 6.0  ;;  %v122_v27 = vld [vmem:[#allocation2 + $0x308] sm:$0xff] }
  0x3e   :  { %1612 = vst [vmem:[#allocation5 + $0x198] sm:$0xff] %v1100_v36  ;;  %v613_v36 = vmax.f32 %v101_v28, 0.0  ;;  %v1123_v41 = vmin.f32 %v611_v30, 6.0  ;;  %v123_v30 = vld [vmem:[#allocation2 + $0x310] sm:$0xff] }
  0x3f   :  { %1613 = vst [vmem:[#allocation5 + $0x1a0] sm:$0xff] %v1101_v39  ;;  %v614_v39 = vmax.f32 %v102_v31, 0.0  ;;  %v1124_v44 = vmin.f32 %v612_v33, 6.0  ;;  %v124_v33 = vld [vmem:[#allocation2 + $0x318] sm:$0xff] }
  0x40   :  { %1614 = vst [vmem:[#allocation5 + $0x1a8] sm:$0xff] %v1102_v42  ;;  %v615_v42 = vmax.f32 %v103_v34, 0.0  ;;  %v1125_v47 = vmin.f32 %v613_v36, 6.0  ;;  %v125_v36 = vld [vmem:[#allocation2 + $0x320] sm:$0xff] }
  0x41   :  { %1615 = vst [vmem:[#allocation5 + $0x1b0] sm:$0xff] %v1103_v45  ;;  %v616_v45 = vmax.f32 %v104_v37, 0.0  ;;  %v1126_v50 = vmin.f32 %v614_v39, 6.0  ;;  %v126_v39 = vld [vmem:[#allocation2 + $0x328] sm:$0xff] }
  0x42   :  { %1616 = vst [vmem:[#allocation5 + $0x1b8] sm:$0xff] %v1104_v48  ;;  %v617_v48 = vmax.f32 %v105_v40, 0.0  ;;  %v1127_v53 = vmin.f32 %v615_v42, 6.0  ;;  %v127_v42 = vld [vmem:[#allocation2 + $0x330] sm:$0xff] }
  0x43   :  { %1617 = vst [vmem:[#allocation5 + $0x1c0] sm:$0xff] %v1105_v51  ;;  %v618_v51 = vmax.f32 %v106_v43, 0.0  ;;  %v1128_v56 = vmin.f32 %v616_v45, 6.0  ;;  %v128_v45 = vld [vmem:[#allocation2 + $0x338] sm:$0xff] }
  0x44   :  { %1618 = vst [vmem:[#allocation5 + $0x1c8] sm:$0xff] %v1106_v54  ;;  %v619_v54 = vmax.f32 %v107_v46, 0.0  ;;  %v1129_v59 = vmin.f32 %v617_v48, 6.0  ;;  %v129_v48 = vld [vmem:[#allocation2 + $0x340] sm:$0xff] }
  0x45   :  { %1619 = vst [vmem:[#allocation5 + $0x1d0] sm:$0xff] %v1107_v57  ;;  %v620_v57 = vmax.f32 %v108_v49, 0.0  ;;  %v1130_v62 = vmin.f32 %v618_v51, 6.0  ;;  %v130_v51 = vld [vmem:[#allocation2 + $0x348] sm:$0xff] }
  0x46   :  { %1620 = vst [vmem:[#allocation5 + $0x1d8] sm:$0xff] %v1108_v60  ;;  %v621_v60 = vmax.f32 %v109_v52, 0.0  ;;  %v1131_v1 = vmin.f32 %v619_v54, 6.0  ;;  %v131_v54 = vld [vmem:[#allocation2 + $0x350] sm:$0xff] }
  0x47   :  { %1621 = vst [vmem:[#allocation5 + $0x1e0] sm:$0xff] %v1109_v63  ;;  %v622_v63 = vmax.f32 %v110_v55, 0.0  ;;  %v1132_v4 = vmin.f32 %v620_v57, 6.0  ;;  %v132_v57 = vld [vmem:[#allocation2 + $0x358] sm:$0xff] }
  0x48   :  { %1622 = vst [vmem:[#allocation5 + $0x1e8] sm:$0xff] %v1110_v2  ;;  %v623_v2 = vmax.f32 %v111_v58, 0.0  ;;  %v1133_v7 = vmin.f32 %v621_v60, 6.0  ;;  %v133_v60 = vld [vmem:[#allocation2 + $0x360] sm:$0xff] }
  0x49   :  { %1623 = vst [vmem:[#allocation5 + $0x1f0] sm:$0xff] %v1111_v5  ;;  %v624_v5 = vmax.f32 %v112_v61, 0.0  ;;  %v1134_v10 = vmin.f32 %v622_v63, 6.0  ;;  %v134_v63 = vld [vmem:[#allocation2 + $0x368] sm:$0xff] }
  0x4a   :  { %1624 = vst [vmem:[#allocation5 + $0x1f8] sm:$0xff] %v1112_v8  ;;  %v625_v8 = vmax.f32 %v113_v0, 0.0  ;;  %v1135_v13 = vmin.f32 %v623_v2, 6.0  ;;  %v135_v2 = vld [vmem:[#allocation2 + $0x370] sm:$0xff] }
  0x4b   :  { %1625 = vst [vmem:[#allocation5 + $0x200] sm:$0xff] %v1113_v11  ;;  %v626_v11 = vmax.f32 %v114_v3, 0.0  ;;  %v1136_v16 = vmin.f32 %v624_v5, 6.0  ;;  %v136_v5 = vld [vmem:[#allocation2 + $0x378] sm:$0xff] }
  0x4c   :  { %1626 = vst [vmem:[#allocation5 + $0x208] sm:$0xff] %v1114_v14  ;;  %v627_v14 = vmax.f32 %v115_v6, 0.0  ;;  %v1137_v19 = vmin.f32 %v625_v8, 6.0  ;;  %v137_v8 = vld [vmem:[#allocation2 + $0x380] sm:$0xff] }
  0x4d   :  { %1627 = vst [vmem:[#allocation5 + $0x210] sm:$0xff] %v1115_v17  ;;  %v628_v17 = vmax.f32 %v116_v9, 0.0  ;;  %v1138_v22 = vmin.f32 %v626_v11, 6.0  ;;  %v138_v11 = vld [vmem:[#allocation2 + $0x388] sm:$0xff] }
  0x4e   :  { %1628 = vst [vmem:[#allocation5 + $0x218] sm:$0xff] %v1116_v20  ;;  %v629_v20 = vmax.f32 %v117_v12, 0.0  ;;  %v1139_v25 = vmin.f32 %v627_v14, 6.0  ;;  %v139_v14 = vld [vmem:[#allocation2 + $0x390] sm:$0xff] }
  0x4f   :  { %1629 = vst [vmem:[#allocation5 + $0x220] sm:$0xff] %v1117_v23  ;;  %v630_v23 = vmax.f32 %v118_v15, 0.0  ;;  %v1140_v28 = vmin.f32 %v628_v17, 6.0  ;;  %v140_v17 = vld [vmem:[#allocation2 + $0x398] sm:$0xff] }
  0x50   :  { %1630 = vst [vmem:[#allocation5 + $0x228] sm:$0xff] %v1118_v26  ;;  %v631_v26 = vmax.f32 %v119_v18, 0.0  ;;  %v1141_v31 = vmin.f32 %v629_v20, 6.0  ;;  %v141_v20 = vld [vmem:[#allocation2 + $0x3a0] sm:$0xff] }
  0x51   :  { %1631 = vst [vmem:[#allocation5 + $0x230] sm:$0xff] %v1119_v29  ;;  %v632_v29 = vmax.f32 %v120_v21, 0.0  ;;  %v1142_v34 = vmin.f32 %v630_v23, 6.0  ;;  %v142_v23 = vld [vmem:[#allocation2 + $0x3a8] sm:$0xff] }
  0x52   :  { %1632 = vst [vmem:[#allocation5 + $0x238] sm:$0xff] %v1120_v32  ;;  %v633_v32 = vmax.f32 %v121_v24, 0.0  ;;  %v1143_v37 = vmin.f32 %v631_v26, 6.0  ;;  %v143_v26 = vld [vmem:[#allocation2 + $0x3b0] sm:$0xff] }
  0x53   :  { %1633 = vst [vmem:[#allocation5 + $0x240] sm:$0xff] %v1121_v35  ;;  %v634_v35 = vmax.f32 %v122_v27, 0.0  ;;  %v1144_v40 = vmin.f32 %v632_v29, 6.0  ;;  %v144_v29 = vld [vmem:[#allocation2 + $0x3b8] sm:$0xff] }
  0x54   :  { %1634 = vst [vmem:[#allocation5 + $0x248] sm:$0xff] %v1122_v38  ;;  %v635_v38 = vmax.f32 %v123_v30, 0.0  ;;  %v1145_v43 = vmin.f32 %v633_v32, 6.0  ;;  %v145_v32 = vld [vmem:[#allocation2 + $0x3c0] sm:$0xff] }
  0x55   :  { %1635 = vst [vmem:[#allocation5 + $0x250] sm:$0xff] %v1123_v41  ;;  %v636_v41 = vmax.f32 %v124_v33, 0.0  ;;  %v1146_v46 = vmin.f32 %v634_v35, 6.0  ;;  %v146_v35 = vld [vmem:[#allocation2 + $0x3c8] sm:$0xff] }
  0x56   :  { %1636 = vst [vmem:[#allocation5 + $0x258] sm:$0xff] %v1124_v44  ;;  %v637_v44 = vmax.f32 %v125_v36, 0.0  ;;  %v1147_v49 = vmin.f32 %v635_v38, 6.0  ;;  %v147_v38 = vld [vmem:[#allocation2 + $0x3d0] sm:$0xff] }
  0x57   :  { %1637 = vst [vmem:[#allocation5 + $0x260] sm:$0xff] %v1125_v47  ;;  %v638_v47 = vmax.f32 %v126_v39, 0.0  ;;  %v1148_v52 = vmin.f32 %v636_v41, 6.0  ;;  %v148_v41 = vld [vmem:[#allocation2 + $0x3d8] sm:$0xff] }
  0x58   :  { %1638 = vst [vmem:[#allocation5 + $0x268] sm:$0xff] %v1126_v50  ;;  %v639_v50 = vmax.f32 %v127_v42, 0.0  ;;  %v1149_v55 = vmin.f32 %v637_v44, 6.0  ;;  %v149_v44 = vld [vmem:[#allocation2 + $0x3e0] sm:$0xff] }
  0x59   :  { %1639 = vst [vmem:[#allocation5 + $0x270] sm:$0xff] %v1127_v53  ;;  %v640_v53 = vmax.f32 %v128_v45, 0.0  ;;  %v1150_v58 = vmin.f32 %v638_v47, 6.0  ;;  %v150_v47 = vld [vmem:[#allocation2 + $0x3e8] sm:$0xff] }
  0x5a   :  { %1640 = vst [vmem:[#allocation5 + $0x278] sm:$0xff] %v1128_v56  ;;  %v641_v56 = vmax.f32 %v129_v48, 0.0  ;;  %v1151_v61 = vmin.f32 %v639_v50, 6.0  ;;  %v151_v50 = vld [vmem:[#allocation2 + $0x3f0] sm:$0xff] }
  0x5b   :  { %1641 = vst [vmem:[#allocation5 + $0x280] sm:$0xff] %v1129_v59  ;;  %v642_v59 = vmax.f32 %v130_v51, 0.0  ;;  %v1152_v0 = vmin.f32 %v640_v53, 6.0  ;;  %v152_v53 = vld [vmem:[#allocation2 + $0x3f8] sm:$0xff] }
  0x5c   :  { %1642 = vst [vmem:[#allocation5 + $0x288] sm:$0xff] %v1130_v62  ;;  %v643_v62 = vmax.f32 %v131_v54, 0.0  ;;  %v1153_v3 = vmin.f32 %v641_v56, 6.0  ;;  %v153_v56 = vld [vmem:[#allocation2 + $0x400] sm:$0xff] }
  0x5d   :  { %1643 = vst [vmem:[#allocation5 + $0x290] sm:$0xff] %v1131_v1  ;;  %v644_v1 = vmax.f32 %v132_v57, 0.0  ;;  %v1154_v6 = vmin.f32 %v642_v59, 6.0  ;;  %v154_v59 = vld [vmem:[#allocation2 + $0x408] sm:$0xff] }
  0x5e   :  { %1644 = vst [vmem:[#allocation5 + $0x298] sm:$0xff] %v1132_v4  ;;  %v645_v4 = vmax.f32 %v133_v60, 0.0  ;;  %v1155_v9 = vmin.f32 %v643_v62, 6.0  ;;  %v155_v62 = vld [vmem:[#allocation2 + $0x410] sm:$0xff] }
  0x5f   :  { %1645 = vst [vmem:[#allocation5 + $0x2a0] sm:$0xff] %v1133_v7  ;;  %v646_v7 = vmax.f32 %v134_v63, 0.0  ;;  %v1156_v12 = vmin.f32 %v644_v1, 6.0  ;;  %v156_v1 = vld [vmem:[#allocation2 + $0x418] sm:$0xff] }
  0x60   :  { %1646 = vst [vmem:[#allocation5 + $0x2a8] sm:$0xff] %v1134_v10  ;;  %v647_v10 = vmax.f32 %v135_v2, 0.0  ;;  %v1157_v15 = vmin.f32 %v645_v4, 6.0  ;;  %v157_v4 = vld [vmem:[#allocation2 + $0x420] sm:$0xff] }
  0x61   :  { %1647 = vst [vmem:[#allocation5 + $0x2b0] sm:$0xff] %v1135_v13  ;;  %v648_v13 = vmax.f32 %v136_v5, 0.0  ;;  %v1158_v18 = vmin.f32 %v646_v7, 6.0  ;;  %v158_v7 = vld [vmem:[#allocation2 + $0x428] sm:$0xff] }
  0x62   :  { %1648 = vst [vmem:[#allocation5 + $0x2b8] sm:$0xff] %v1136_v16  ;;  %v649_v16 = vmax.f32 %v137_v8, 0.0  ;;  %v1159_v21 = vmin.f32 %v647_v10, 6.0  ;;  %v159_v10 = vld [vmem:[#allocation2 + $0x430] sm:$0xff] }
  0x63   :  { %1649 = vst [vmem:[#allocation5 + $0x2c0] sm:$0xff] %v1137_v19  ;;  %v650_v19 = vmax.f32 %v138_v11, 0.0  ;;  %v1160_v24 = vmin.f32 %v648_v13, 6.0  ;;  %v160_v13 = vld [vmem:[#allocation2 + $0x438] sm:$0xff] }
  0x64   :  { %1650 = vst [vmem:[#allocation5 + $0x2c8] sm:$0xff] %v1138_v22  ;;  %v651_v22 = vmax.f32 %v139_v14, 0.0  ;;  %v1161_v27 = vmin.f32 %v649_v16, 6.0  ;;  %v161_v16 = vld [vmem:[#allocation2 + $0x440] sm:$0xff] }
  0x65   :  { %1651 = vst [vmem:[#allocation5 + $0x2d0] sm:$0xff] %v1139_v25  ;;  %v652_v25 = vmax.f32 %v140_v17, 0.0  ;;  %v1162_v30 = vmin.f32 %v650_v19, 6.0  ;;  %v162_v19 = vld [vmem:[#allocation2 + $0x448] sm:$0xff] }
  0x66   :  { %1652 = vst [vmem:[#allocation5 + $0x2d8] sm:$0xff] %v1140_v28  ;;  %v653_v28 = vmax.f32 %v141_v20, 0.0  ;;  %v1163_v33 = vmin.f32 %v651_v22, 6.0  ;;  %v163_v22 = vld [vmem:[#allocation2 + $0x450] sm:$0xff] }
  0x67   :  { %1653 = vst [vmem:[#allocation5 + $0x2e0] sm:$0xff] %v1141_v31  ;;  %v654_v31 = vmax.f32 %v142_v23, 0.0  ;;  %v1164_v36 = vmin.f32 %v652_v25, 6.0  ;;  %v164_v25 = vld [vmem:[#allocation2 + $0x458] sm:$0xff] }
  0x68   :  { %1654 = vst [vmem:[#allocation5 + $0x2e8] sm:$0xff] %v1142_v34  ;;  %v655_v34 = vmax.f32 %v143_v26, 0.0  ;;  %v1165_v39 = vmin.f32 %v653_v28, 6.0  ;;  %v165_v28 = vld [vmem:[#allocation2 + $0x460] sm:$0xff] }
  0x69   :  { %1655 = vst [vmem:[#allocation5 + $0x2f0] sm:$0xff] %v1143_v37  ;;  %v656_v37 = vmax.f32 %v144_v29, 0.0  ;;  %v1166_v42 = vmin.f32 %v654_v31, 6.0  ;;  %v166_v31 = vld [vmem:[#allocation2 + $0x468] sm:$0xff] }
  0x6a   :  { %1656 = vst [vmem:[#allocation5 + $0x2f8] sm:$0xff] %v1144_v40  ;;  %v657_v40 = vmax.f32 %v145_v32, 0.0  ;;  %v1167_v45 = vmin.f32 %v655_v34, 6.0  ;;  %v167_v34 = vld [vmem:[#allocation2 + $0x470] sm:$0xff] }
  0x6b   :  { %1657 = vst [vmem:[#allocation5 + $0x300] sm:$0xff] %v1145_v43  ;;  %v658_v43 = vmax.f32 %v146_v35, 0.0  ;;  %v1168_v48 = vmin.f32 %v656_v37, 6.0  ;;  %v168_v37 = vld [vmem:[#allocation2 + $0x478] sm:$0xff] }
  0x6c   :  { %1658 = vst [vmem:[#allocation5 + $0x308] sm:$0xff] %v1146_v46  ;;  %v659_v46 = vmax.f32 %v147_v38, 0.0  ;;  %v1169_v51 = vmin.f32 %v657_v40, 6.0  ;;  %v169_v40 = vld [vmem:[#allocation2 + $0x480] sm:$0xff] }
  0x6d   :  { %1659 = vst [vmem:[#allocation5 + $0x310] sm:$0xff] %v1147_v49  ;;  %v660_v49 = vmax.f32 %v148_v41, 0.0  ;;  %v1170_v54 = vmin.f32 %v658_v43, 6.0  ;;  %v170_v43 = vld [vmem:[#allocation2 + $0x488] sm:$0xff] }
  0x6e   :  { %1660 = vst [vmem:[#allocation5 + $0x318] sm:$0xff] %v1148_v52  ;;  %v661_v52 = vmax.f32 %v149_v44, 0.0  ;;  %v1171_v57 = vmin.f32 %v659_v46, 6.0  ;;  %v171_v46 = vld [vmem:[#allocation2 + $0x490] sm:$0xff] }
  0x6f   :  { %1661 = vst [vmem:[#allocation5 + $0x320] sm:$0xff] %v1149_v55  ;;  %v662_v55 = vmax.f32 %v150_v47, 0.0  ;;  %v1172_v60 = vmin.f32 %v660_v49, 6.0  ;;  %v172_v49 = vld [vmem:[#allocation2 + $0x498] sm:$0xff] }
  0x70   :  { %1662 = vst [vmem:[#allocation5 + $0x328] sm:$0xff] %v1150_v58  ;;  %v663_v58 = vmax.f32 %v151_v50, 0.0  ;;  %v1173_v63 = vmin.f32 %v661_v52, 6.0  ;;  %v173_v52 = vld [vmem:[#allocation2 + $0x4a0] sm:$0xff] }
  0x71   :  { %1663 = vst [vmem:[#allocation5 + $0x330] sm:$0xff] %v1151_v61  ;;  %v664_v61 = vmax.f32 %v152_v53, 0.0  ;;  %v1174_v2 = vmin.f32 %v662_v55, 6.0  ;;  %v174_v55 = vld [vmem:[#allocation2 + $0x4a8] sm:$0xff] }
  0x72   :  { %1664 = vst [vmem:[#allocation5 + $0x338] sm:$0xff] %v1152_v0  ;;  %v665_v0 = vmax.f32 %v153_v56, 0.0  ;;  %v1175_v5 = vmin.f32 %v663_v58, 6.0  ;;  %v175_v58 = vld [vmem:[#allocation2 + $0x4b0] sm:$0xff] }
  0x73   :  { %1665 = vst [vmem:[#allocation5 + $0x340] sm:$0xff] %v1153_v3  ;;  %v666_v3 = vmax.f32 %v154_v59, 0.0  ;;  %v1176_v8 = vmin.f32 %v664_v61, 6.0  ;;  %v176_v61 = vld [vmem:[#allocation2 + $0x4b8] sm:$0xff] }
  0x74   :  { %1666 = vst [vmem:[#allocation5 + $0x348] sm:$0xff] %v1154_v6  ;;  %v667_v6 = vmax.f32 %v155_v62, 0.0  ;;  %v1177_v11 = vmin.f32 %v665_v0, 6.0  ;;  %v177_v0 = vld [vmem:[#allocation2 + $0x4c0] sm:$0xff] }
  0x75   :  { %1667 = vst [vmem:[#allocation5 + $0x350] sm:$0xff] %v1155_v9  ;;  %v668_v9 = vmax.f32 %v156_v1, 0.0  ;;  %v1178_v14 = vmin.f32 %v666_v3, 6.0  ;;  %v178_v3 = vld [vmem:[#allocation2 + $0x4c8] sm:$0xff] }
  0x76   :  { %1668 = vst [vmem:[#allocation5 + $0x358] sm:$0xff] %v1156_v12  ;;  %v669_v12 = vmax.f32 %v157_v4, 0.0  ;;  %v1179_v17 = vmin.f32 %v667_v6, 6.0  ;;  %v179_v6 = vld [vmem:[#allocation2 + $0x4d0] sm:$0xff] }
  0x77   :  { %1669 = vst [vmem:[#allocation5 + $0x360] sm:$0xff] %v1157_v15  ;;  %v670_v15 = vmax.f32 %v158_v7, 0.0  ;;  %v1180_v20 = vmin.f32 %v668_v9, 6.0  ;;  %v180_v9 = vld [vmem:[#allocation2 + $0x4d8] sm:$0xff] }
  0x78   :  { %1670 = vst [vmem:[#allocation5 + $0x368] sm:$0xff] %v1158_v18  ;;  %v671_v18 = vmax.f32 %v159_v10, 0.0  ;;  %v1181_v23 = vmin.f32 %v669_v12, 6.0  ;;  %v181_v12 = vld [vmem:[#allocation2 + $0x4e0] sm:$0xff] }
  0x79   :  { %1671 = vst [vmem:[#allocation5 + $0x370] sm:$0xff] %v1159_v21  ;;  %v672_v21 = vmax.f32 %v160_v13, 0.0  ;;  %v1182_v26 = vmin.f32 %v670_v15, 6.0  ;;  %v182_v15 = vld [vmem:[#allocation2 + $0x4e8] sm:$0xff] }
  0x7a   :  { %1672 = vst [vmem:[#allocation5 + $0x378] sm:$0xff] %v1160_v24  ;;  %v673_v24 = vmax.f32 %v161_v16, 0.0  ;;  %v1183_v29 = vmin.f32 %v671_v18, 6.0  ;;  %v183_v18 = vld [vmem:[#allocation2 + $0x4f0] sm:$0xff] }
  0x7b   :  { %1673 = vst [vmem:[#allocation5 + $0x380] sm:$0xff] %v1161_v27  ;;  %v674_v27 = vmax.f32 %v162_v19, 0.0  ;;  %v1184_v32 = vmin.f32 %v672_v21, 6.0  ;;  %v184_v21 = vld [vmem:[#allocation2 + $0x4f8] sm:$0xff] }
  0x7c   :  { %1674 = vst [vmem:[#allocation5 + $0x388] sm:$0xff] %v1162_v30  ;;  %v675_v30 = vmax.f32 %v163_v22, 0.0  ;;  %v1185_v35 = vmin.f32 %v673_v24, 6.0  ;;  %v185_v24 = vld [vmem:[#allocation2 + $0x500] sm:$0xff] }
  0x7d   :  { %1675 = vst [vmem:[#allocation5 + $0x390] sm:$0xff] %v1163_v33  ;;  %v676_v33 = vmax.f32 %v164_v25, 0.0  ;;  %v1186_v38 = vmin.f32 %v674_v27, 6.0  ;;  %v186_v27 = vld [vmem:[#allocation2 + $0x508] sm:$0xff] }
  0x7e   :  { %1676 = vst [vmem:[#allocation5 + $0x398] sm:$0xff] %v1164_v36  ;;  %v677_v36 = vmax.f32 %v165_v28, 0.0  ;;  %v1187_v41 = vmin.f32 %v675_v30, 6.0  ;;  %v187_v30 = vld [vmem:[#allocation2 + $0x510] sm:$0xff] }
  0x7f   :  { %1677 = vst [vmem:[#allocation5 + $0x3a0] sm:$0xff] %v1165_v39  ;;  %v678_v39 = vmax.f32 %v166_v31, 0.0  ;;  %v1188_v44 = vmin.f32 %v676_v33, 6.0  ;;  %v188_v33 = vld [vmem:[#allocation2 + $0x518] sm:$0xff] }
  0x80   :  { %1678 = vst [vmem:[#allocation5 + $0x3a8] sm:$0xff] %v1166_v42  ;;  %v679_v42 = vmax.f32 %v167_v34, 0.0  ;;  %v1189_v47 = vmin.f32 %v677_v36, 6.0  ;;  %v189_v36 = vld [vmem:[#allocation2 + $0x520] sm:$0xff] }
  0x81   :  { %1679 = vst [vmem:[#allocation5 + $0x3b0] sm:$0xff] %v1167_v45  ;;  %v680_v45 = vmax.f32 %v168_v37, 0.0  ;;  %v1190_v50 = vmin.f32 %v678_v39, 6.0  ;;  %v190_v39 = vld [vmem:[#allocation2 + $0x528] sm:$0xff] }
  0x82   :  { %1680 = vst [vmem:[#allocation5 + $0x3b8] sm:$0xff] %v1168_v48  ;;  %v681_v48 = vmax.f32 %v169_v40, 0.0  ;;  %v1191_v53 = vmin.f32 %v679_v42, 6.0  ;;  %v191_v42 = vld [vmem:[#allocation2 + $0x530] sm:$0xff] }
  0x83   :  { %1681 = vst [vmem:[#allocation5 + $0x3c0] sm:$0xff] %v1169_v51  ;;  %v682_v51 = vmax.f32 %v170_v43, 0.0  ;;  %v1192_v56 = vmin.f32 %v680_v45, 6.0  ;;  %v192_v45 = vld [vmem:[#allocation2 + $0x538] sm:$0xff] }
  0x84   :  { %1682 = vst [vmem:[#allocation5 + $0x3c8] sm:$0xff] %v1170_v54  ;;  %v683_v54 = vmax.f32 %v171_v46, 0.0  ;;  %v1193_v59 = vmin.f32 %v681_v48, 6.0  ;;  %v193_v48 = vld [vmem:[#allocation2 + $0x540] sm:$0xff] }
  0x85   :  { %1683 = vst [vmem:[#allocation5 + $0x3d0] sm:$0xff] %v1171_v57  ;;  %v684_v57 = vmax.f32 %v172_v49, 0.0  ;;  %v1194_v62 = vmin.f32 %v682_v51, 6.0  ;;  %v194_v51 = vld [vmem:[#allocation2 + $0x548] sm:$0xff] }
  0x86   :  { %1684 = vst [vmem:[#allocation5 + $0x3d8] sm:$0xff] %v1172_v60  ;;  %v685_v60 = vmax.f32 %v173_v52, 0.0  ;;  %v1195_v1 = vmin.f32 %v683_v54, 6.0  ;;  %v195_v54 = vld [vmem:[#allocation2 + $0x550] sm:$0xff] }
  0x87   :  { %1685 = vst [vmem:[#allocation5 + $0x3e0] sm:$0xff] %v1173_v63  ;;  %v686_v63 = vmax.f32 %v174_v55, 0.0  ;;  %v1196_v4 = vmin.f32 %v684_v57, 6.0  ;;  %v196_v57 = vld [vmem:[#allocation2 + $0x558] sm:$0xff] }
  0x88   :  { %1686 = vst [vmem:[#allocation5 + $0x3e8] sm:$0xff] %v1174_v2  ;;  %v687_v2 = vmax.f32 %v175_v58, 0.0  ;;  %v1197_v7 = vmin.f32 %v685_v60, 6.0  ;;  %v197_v60 = vld [vmem:[#allocation2 + $0x560] sm:$0xff] }
  0x89   :  { %1687 = vst [vmem:[#allocation5 + $0x3f0] sm:$0xff] %v1175_v5  ;;  %v688_v5 = vmax.f32 %v176_v61, 0.0  ;;  %v1198_v10 = vmin.f32 %v686_v63, 6.0  ;;  %v198_v63 = vld [vmem:[#allocation2 + $0x568] sm:$0xff] }
  0x8a   :  { %1688 = vst [vmem:[#allocation5 + $0x3f8] sm:$0xff] %v1176_v8  ;;  %v689_v8 = vmax.f32 %v177_v0, 0.0  ;;  %v1199_v13 = vmin.f32 %v687_v2, 6.0  ;;  %v199_v2 = vld [vmem:[#allocation2 + $0x570] sm:$0xff] }
  0x8b   :  { %1689 = vst [vmem:[#allocation5 + $0x400] sm:$0xff] %v1177_v11  ;;  %v690_v11 = vmax.f32 %v178_v3, 0.0  ;;  %v1200_v16 = vmin.f32 %v688_v5, 6.0  ;;  %v200_v5 = vld [vmem:[#allocation2 + $0x578] sm:$0xff] }
  0x8c   :  { %1690 = vst [vmem:[#allocation5 + $0x408] sm:$0xff] %v1178_v14  ;;  %v691_v14 = vmax.f32 %v179_v6, 0.0  ;;  %v1201_v19 = vmin.f32 %v689_v8, 6.0  ;;  %v201_v8 = vld [vmem:[#allocation2 + $0x580] sm:$0xff] }
  0x8d   :  { %1691 = vst [vmem:[#allocation5 + $0x410] sm:$0xff] %v1179_v17  ;;  %v692_v17 = vmax.f32 %v180_v9, 0.0  ;;  %v1202_v22 = vmin.f32 %v690_v11, 6.0  ;;  %v202_v11 = vld [vmem:[#allocation2 + $0x588] sm:$0xff] }
  0x8e   :  { %1692 = vst [vmem:[#allocation5 + $0x418] sm:$0xff] %v1180_v20  ;;  %v693_v20 = vmax.f32 %v181_v12, 0.0  ;;  %v1203_v25 = vmin.f32 %v691_v14, 6.0  ;;  %v203_v14 = vld [vmem:[#allocation2 + $0x590] sm:$0xff] }
  0x8f   :  { %1693 = vst [vmem:[#allocation5 + $0x420] sm:$0xff] %v1181_v23  ;;  %v694_v23 = vmax.f32 %v182_v15, 0.0  ;;  %v1204_v28 = vmin.f32 %v692_v17, 6.0  ;;  %v204_v17 = vld [vmem:[#allocation2 + $0x598] sm:$0xff] }
  0x90   :  { %1694 = vst [vmem:[#allocation5 + $0x428] sm:$0xff] %v1182_v26  ;;  %v695_v26 = vmax.f32 %v183_v18, 0.0  ;;  %v1205_v31 = vmin.f32 %v693_v20, 6.0  ;;  %v205_v20 = vld [vmem:[#allocation2 + $0x5a0] sm:$0xff] }
  0x91   :  { %1695 = vst [vmem:[#allocation5 + $0x430] sm:$0xff] %v1183_v29  ;;  %v696_v29 = vmax.f32 %v184_v21, 0.0  ;;  %v1206_v34 = vmin.f32 %v694_v23, 6.0  ;;  %v206_v23 = vld [vmem:[#allocation2 + $0x5a8] sm:$0xff] }
  0x92   :  { %1696 = vst [vmem:[#allocation5 + $0x438] sm:$0xff] %v1184_v32  ;;  %v697_v32 = vmax.f32 %v185_v24, 0.0  ;;  %v1207_v37 = vmin.f32 %v695_v26, 6.0  ;;  %v207_v26 = vld [vmem:[#allocation2 + $0x5b0] sm:$0xff] }
  0x93   :  { %1697 = vst [vmem:[#allocation5 + $0x440] sm:$0xff] %v1185_v35  ;;  %v698_v35 = vmax.f32 %v186_v27, 0.0  ;;  %v1208_v40 = vmin.f32 %v696_v29, 6.0  ;;  %v208_v29 = vld [vmem:[#allocation2 + $0x5b8] sm:$0xff] }
  0x94   :  { %1698 = vst [vmem:[#allocation5 + $0x448] sm:$0xff] %v1186_v38  ;;  %v699_v38 = vmax.f32 %v187_v30, 0.0  ;;  %v1209_v43 = vmin.f32 %v697_v32, 6.0  ;;  %v209_v32 = vld [vmem:[#allocation2 + $0x5c0] sm:$0xff] }
  0x95   :  { %1699 = vst [vmem:[#allocation5 + $0x450] sm:$0xff] %v1187_v41  ;;  %v700_v41 = vmax.f32 %v188_v33, 0.0  ;;  %v1210_v46 = vmin.f32 %v698_v35, 6.0  ;;  %v210_v35 = vld [vmem:[#allocation2 + $0x5c8] sm:$0xff] }
  0x96   :  { %1700 = vst [vmem:[#allocation5 + $0x458] sm:$0xff] %v1188_v44  ;;  %v701_v44 = vmax.f32 %v189_v36, 0.0  ;;  %v1211_v49 = vmin.f32 %v699_v38, 6.0  ;;  %v211_v38 = vld [vmem:[#allocation2 + $0x5d0] sm:$0xff] }
  0x97   :  { %1701 = vst [vmem:[#allocation5 + $0x460] sm:$0xff] %v1189_v47  ;;  %v702_v47 = vmax.f32 %v190_v39, 0.0  ;;  %v1212_v52 = vmin.f32 %v700_v41, 6.0  ;;  %v212_v41 = vld [vmem:[#allocation2 + $0x5d8] sm:$0xff] }
  0x98   :  { %1702 = vst [vmem:[#allocation5 + $0x468] sm:$0xff] %v1190_v50  ;;  %v703_v50 = vmax.f32 %v191_v42, 0.0  ;;  %v1213_v55 = vmin.f32 %v701_v44, 6.0  ;;  %v213_v44 = vld [vmem:[#allocation2 + $0x5e0] sm:$0xff] }
  0x99   :  { %1703 = vst [vmem:[#allocation5 + $0x470] sm:$0xff] %v1191_v53  ;;  %v704_v53 = vmax.f32 %v192_v45, 0.0  ;;  %v1214_v58 = vmin.f32 %v702_v47, 6.0  ;;  %v214_v47 = vld [vmem:[#allocation2 + $0x5e8] sm:$0xff] }
  0x9a   :  { %1704 = vst [vmem:[#allocation5 + $0x478] sm:$0xff] %v1192_v56  ;;  %v705_v56 = vmax.f32 %v193_v48, 0.0  ;;  %v1215_v61 = vmin.f32 %v703_v50, 6.0  ;;  %v215_v50 = vld [vmem:[#allocation2 + $0x5f0] sm:$0xff] }
  0x9b   :  { %1705 = vst [vmem:[#allocation5 + $0x480] sm:$0xff] %v1193_v59  ;;  %v706_v59 = vmax.f32 %v194_v51, 0.0  ;;  %v1216_v0 = vmin.f32 %v704_v53, 6.0  ;;  %v216_v53 = vld [vmem:[#allocation2 + $0x5f8] sm:$0xff] }
  0x9c   :  { %1706 = vst [vmem:[#allocation5 + $0x488] sm:$0xff] %v1194_v62  ;;  %v707_v62 = vmax.f32 %v195_v54, 0.0  ;;  %v1217_v3 = vmin.f32 %v705_v56, 6.0  ;;  %v217_v56 = vld [vmem:[#allocation2 + $0x600] sm:$0xff] }
  0x9d   :  { %1707 = vst [vmem:[#allocation5 + $0x490] sm:$0xff] %v1195_v1  ;;  %v708_v1 = vmax.f32 %v196_v57, 0.0  ;;  %v1218_v6 = vmin.f32 %v706_v59, 6.0  ;;  %v218_v59 = vld [vmem:[#allocation2 + $0x608] sm:$0xff] }
  0x9e   :  { %1708 = vst [vmem:[#allocation5 + $0x498] sm:$0xff] %v1196_v4  ;;  %v709_v4 = vmax.f32 %v197_v60, 0.0  ;;  %v1219_v9 = vmin.f32 %v707_v62, 6.0  ;;  %v219_v62 = vld [vmem:[#allocation2 + $0x610] sm:$0xff] }
  0x9f   :  { %1709 = vst [vmem:[#allocation5 + $0x4a0] sm:$0xff] %v1197_v7  ;;  %v710_v7 = vmax.f32 %v198_v63, 0.0  ;;  %v1220_v12 = vmin.f32 %v708_v1, 6.0  ;;  %v220_v1 = vld [vmem:[#allocation2 + $0x618] sm:$0xff] }
  0xa0   :  { %1710 = vst [vmem:[#allocation5 + $0x4a8] sm:$0xff] %v1198_v10  ;;  %v711_v10 = vmax.f32 %v199_v2, 0.0  ;;  %v1221_v15 = vmin.f32 %v709_v4, 6.0  ;;  %v221_v4 = vld [vmem:[#allocation2 + $0x620] sm:$0xff] }
  0xa1   :  { %1711 = vst [vmem:[#allocation5 + $0x4b0] sm:$0xff] %v1199_v13  ;;  %v712_v13 = vmax.f32 %v200_v5, 0.0  ;;  %v1222_v18 = vmin.f32 %v710_v7, 6.0  ;;  %v222_v7 = vld [vmem:[#allocation2 + $0x628] sm:$0xff] }
  0xa2   :  { %1712 = vst [vmem:[#allocation5 + $0x4b8] sm:$0xff] %v1200_v16  ;;  %v713_v16 = vmax.f32 %v201_v8, 0.0  ;;  %v1223_v21 = vmin.f32 %v711_v10, 6.0  ;;  %v223_v10 = vld [vmem:[#allocation2 + $0x630] sm:$0xff] }
  0xa3   :  { %1713 = vst [vmem:[#allocation5 + $0x4c0] sm:$0xff] %v1201_v19  ;;  %v714_v19 = vmax.f32 %v202_v11, 0.0  ;;  %v1224_v24 = vmin.f32 %v712_v13, 6.0  ;;  %v224_v13 = vld [vmem:[#allocation2 + $0x638] sm:$0xff] }
  0xa4   :  { %1714 = vst [vmem:[#allocation5 + $0x4c8] sm:$0xff] %v1202_v22  ;;  %v715_v22 = vmax.f32 %v203_v14, 0.0  ;;  %v1225_v27 = vmin.f32 %v713_v16, 6.0  ;;  %v225_v16 = vld [vmem:[#allocation2 + $0x640] sm:$0xff] }
  0xa5   :  { %1715 = vst [vmem:[#allocation5 + $0x4d0] sm:$0xff] %v1203_v25  ;;  %v716_v25 = vmax.f32 %v204_v17, 0.0  ;;  %v1226_v30 = vmin.f32 %v714_v19, 6.0  ;;  %v226_v19 = vld [vmem:[#allocation2 + $0x648] sm:$0xff] }
  0xa6   :  { %1716 = vst [vmem:[#allocation5 + $0x4d8] sm:$0xff] %v1204_v28  ;;  %v717_v28 = vmax.f32 %v205_v20, 0.0  ;;  %v1227_v33 = vmin.f32 %v715_v22, 6.0  ;;  %v227_v22 = vld [vmem:[#allocation2 + $0x650] sm:$0xff] }
  0xa7   :  { %1717 = vst [vmem:[#allocation5 + $0x4e0] sm:$0xff] %v1205_v31  ;;  %v718_v31 = vmax.f32 %v206_v23, 0.0  ;;  %v1228_v36 = vmin.f32 %v716_v25, 6.0  ;;  %v228_v25 = vld [vmem:[#allocation2 + $0x658] sm:$0xff] }
  0xa8   :  { %1718 = vst [vmem:[#allocation5 + $0x4e8] sm:$0xff] %v1206_v34  ;;  %v719_v34 = vmax.f32 %v207_v26, 0.0  ;;  %v1229_v39 = vmin.f32 %v717_v28, 6.0  ;;  %v229_v28 = vld [vmem:[#allocation2 + $0x660] sm:$0xff] }
  0xa9   :  { %1719 = vst [vmem:[#allocation5 + $0x4f0] sm:$0xff] %v1207_v37  ;;  %v720_v37 = vmax.f32 %v208_v29, 0.0  ;;  %v1230_v42 = vmin.f32 %v718_v31, 6.0  ;;  %v230_v31 = vld [vmem:[#allocation2 + $0x668] sm:$0xff] }
  0xaa   :  { %1720 = vst [vmem:[#allocation5 + $0x4f8] sm:$0xff] %v1208_v40  ;;  %v721_v40 = vmax.f32 %v209_v32, 0.0  ;;  %v1231_v45 = vmin.f32 %v719_v34, 6.0  ;;  %v231_v34 = vld [vmem:[#allocation2 + $0x670] sm:$0xff] }
  0xab   :  { %1721 = vst [vmem:[#allocation5 + $0x500] sm:$0xff] %v1209_v43  ;;  %v722_v43 = vmax.f32 %v210_v35, 0.0  ;;  %v1232_v48 = vmin.f32 %v720_v37, 6.0  ;;  %v232_v37 = vld [vmem:[#allocation2 + $0x678] sm:$0xff] }
  0xac   :  { %1722 = vst [vmem:[#allocation5 + $0x508] sm:$0xff] %v1210_v46  ;;  %v723_v46 = vmax.f32 %v211_v38, 0.0  ;;  %v1233_v51 = vmin.f32 %v721_v40, 6.0  ;;  %v233_v40 = vld [vmem:[#allocation2 + $0x680] sm:$0xff] }
  0xad   :  { %1723 = vst [vmem:[#allocation5 + $0x510] sm:$0xff] %v1211_v49  ;;  %v724_v49 = vmax.f32 %v212_v41, 0.0  ;;  %v1234_v54 = vmin.f32 %v722_v43, 6.0  ;;  %v234_v43 = vld [vmem:[#allocation2 + $0x688] sm:$0xff] }
  0xae   :  { %1724 = vst [vmem:[#allocation5 + $0x518] sm:$0xff] %v1212_v52  ;;  %v725_v52 = vmax.f32 %v213_v44, 0.0  ;;  %v1235_v57 = vmin.f32 %v723_v46, 6.0  ;;  %v235_v46 = vld [vmem:[#allocation2 + $0x690] sm:$0xff] }
  0xaf   :  { %1725 = vst [vmem:[#allocation5 + $0x520] sm:$0xff] %v1213_v55  ;;  %v726_v55 = vmax.f32 %v214_v47, 0.0  ;;  %v1236_v60 = vmin.f32 %v724_v49, 6.0  ;;  %v236_v49 = vld [vmem:[#allocation2 + $0x698] sm:$0xff] }
  0xb0   :  { %1726 = vst [vmem:[#allocation5 + $0x528] sm:$0xff] %v1214_v58  ;;  %v727_v58 = vmax.f32 %v215_v50, 0.0  ;;  %v1237_v63 = vmin.f32 %v725_v52, 6.0  ;;  %v237_v52 = vld [vmem:[#allocation2 + $0x6a0] sm:$0xff] }
  0xb1   :  { %1727 = vst [vmem:[#allocation5 + $0x530] sm:$0xff] %v1215_v61  ;;  %v728_v61 = vmax.f32 %v216_v53, 0.0  ;;  %v1238_v2 = vmin.f32 %v726_v55, 6.0  ;;  %v238_v55 = vld [vmem:[#allocation2 + $0x6a8] sm:$0xff] }
  0xb2   :  { %1728 = vst [vmem:[#allocation5 + $0x538] sm:$0xff] %v1216_v0  ;;  %v729_v0 = vmax.f32 %v217_v56, 0.0  ;;  %v1239_v5 = vmin.f32 %v727_v58, 6.0  ;;  %v239_v58 = vld [vmem:[#allocation2 + $0x6b0] sm:$0xff] }
  0xb3   :  { %1729 = vst [vmem:[#allocation5 + $0x540] sm:$0xff] %v1217_v3  ;;  %v730_v3 = vmax.f32 %v218_v59, 0.0  ;;  %v1240_v8 = vmin.f32 %v728_v61, 6.0  ;;  %v240_v61 = vld [vmem:[#allocation2 + $0x6b8] sm:$0xff] }
  0xb4   :  { %1730 = vst [vmem:[#allocation5 + $0x548] sm:$0xff] %v1218_v6  ;;  %v731_v6 = vmax.f32 %v219_v62, 0.0  ;;  %v1241_v11 = vmin.f32 %v729_v0, 6.0  ;;  %v241_v0 = vld [vmem:[#allocation2 + $0x6c0] sm:$0xff] }
  0xb5   :  { %1731 = vst [vmem:[#allocation5 + $0x550] sm:$0xff] %v1219_v9  ;;  %v732_v9 = vmax.f32 %v220_v1, 0.0  ;;  %v1242_v14 = vmin.f32 %v730_v3, 6.0  ;;  %v242_v3 = vld [vmem:[#allocation2 + $0x6c8] sm:$0xff] }
  0xb6   :  { %1732 = vst [vmem:[#allocation5 + $0x558] sm:$0xff] %v1220_v12  ;;  %v733_v12 = vmax.f32 %v221_v4, 0.0  ;;  %v1243_v17 = vmin.f32 %v731_v6, 6.0  ;;  %v243_v6 = vld [vmem:[#allocation2 + $0x6d0] sm:$0xff] }
  0xb7   :  { %1733 = vst [vmem:[#allocation5 + $0x560] sm:$0xff] %v1221_v15  ;;  %v734_v15 = vmax.f32 %v222_v7, 0.0  ;;  %v1244_v20 = vmin.f32 %v732_v9, 6.0  ;;  %v244_v9 = vld [vmem:[#allocation2 + $0x6d8] sm:$0xff] }
  0xb8   :  { %1734 = vst [vmem:[#allocation5 + $0x568] sm:$0xff] %v1222_v18  ;;  %v735_v18 = vmax.f32 %v223_v10, 0.0  ;;  %v1245_v23 = vmin.f32 %v733_v12, 6.0  ;;  %v245_v12 = vld [vmem:[#allocation2 + $0x6e0] sm:$0xff] }
  0xb9   :  { %1735 = vst [vmem:[#allocation5 + $0x570] sm:$0xff] %v1223_v21  ;;  %v736_v21 = vmax.f32 %v224_v13, 0.0  ;;  %v1246_v26 = vmin.f32 %v734_v15, 6.0  ;;  %v246_v15 = vld [vmem:[#allocation2 + $0x6e8] sm:$0xff] }
  0xba   :  { %1736 = vst [vmem:[#allocation5 + $0x578] sm:$0xff] %v1224_v24  ;;  %v737_v24 = vmax.f32 %v225_v16, 0.0  ;;  %v1247_v29 = vmin.f32 %v735_v18, 6.0  ;;  %v247_v18 = vld [vmem:[#allocation2 + $0x6f0] sm:$0xff] }
  0xbb   :  { %1737 = vst [vmem:[#allocation5 + $0x580] sm:$0xff] %v1225_v27  ;;  %v738_v27 = vmax.f32 %v226_v19, 0.0  ;;  %v1248_v32 = vmin.f32 %v736_v21, 6.0  ;;  %v248_v21 = vld [vmem:[#allocation2 + $0x6f8] sm:$0xff] }
  0xbc   :  { %1738 = vst [vmem:[#allocation5 + $0x588] sm:$0xff] %v1226_v30  ;;  %v739_v30 = vmax.f32 %v227_v22, 0.0  ;;  %v1249_v35 = vmin.f32 %v737_v24, 6.0  ;;  %v249_v24 = vld [vmem:[#allocation2 + $0x700] sm:$0xff] }
  0xbd   :  { %1739 = vst [vmem:[#allocation5 + $0x590] sm:$0xff] %v1227_v33  ;;  %v740_v33 = vmax.f32 %v228_v25, 0.0  ;;  %v1250_v38 = vmin.f32 %v738_v27, 6.0  ;;  %v250_v27 = vld [vmem:[#allocation2 + $0x708] sm:$0xff] }
  0xbe   :  { %1740 = vst [vmem:[#allocation5 + $0x598] sm:$0xff] %v1228_v36  ;;  %v741_v36 = vmax.f32 %v229_v28, 0.0  ;;  %v1251_v41 = vmin.f32 %v739_v30, 6.0  ;;  %v251_v30 = vld [vmem:[#allocation2 + $0x710] sm:$0xff] }
  0xbf   :  { %1741 = vst [vmem:[#allocation5 + $0x5a0] sm:$0xff] %v1229_v39  ;;  %v742_v39 = vmax.f32 %v230_v31, 0.0  ;;  %v1252_v44 = vmin.f32 %v740_v33, 6.0  ;;  %v252_v33 = vld [vmem:[#allocation2 + $0x718] sm:$0xff] }
  0xc0   :  { %1742 = vst [vmem:[#allocation5 + $0x5a8] sm:$0xff] %v1230_v42  ;;  %v743_v42 = vmax.f32 %v231_v34, 0.0  ;;  %v1253_v47 = vmin.f32 %v741_v36, 6.0  ;;  %v253_v36 = vld [vmem:[#allocation2 + $0x720] sm:$0xff] }
  0xc1   :  { %1743 = vst [vmem:[#allocation5 + $0x5b0] sm:$0xff] %v1231_v45  ;;  %v744_v45 = vmax.f32 %v232_v37, 0.0  ;;  %v1254_v50 = vmin.f32 %v742_v39, 6.0  ;;  %v254_v39 = vld [vmem:[#allocation2 + $0x728] sm:$0xff] }
  0xc2   :  { %1744 = vst [vmem:[#allocation5 + $0x5b8] sm:$0xff] %v1232_v48  ;;  %v745_v48 = vmax.f32 %v233_v40, 0.0  ;;  %v1255_v53 = vmin.f32 %v743_v42, 6.0  ;;  %v255_v42 = vld [vmem:[#allocation2 + $0x730] sm:$0xff] }
  0xc3   :  { %1745 = vst [vmem:[#allocation5 + $0x5c0] sm:$0xff] %v1233_v51  ;;  %v746_v51 = vmax.f32 %v234_v43, 0.0  ;;  %v1256_v56 = vmin.f32 %v744_v45, 6.0  ;;  %v256_v45 = vld [vmem:[#allocation2 + $0x738] sm:$0xff] }
  0xc4   :  { %1746 = vst [vmem:[#allocation5 + $0x5c8] sm:$0xff] %v1234_v54  ;;  %v747_v54 = vmax.f32 %v235_v46, 0.0  ;;  %v1257_v59 = vmin.f32 %v745_v48, 6.0  ;;  %v257_v48 = vld [vmem:[#allocation2 + $0x740] sm:$0xff] }
  0xc5   :  { %1747 = vst [vmem:[#allocation5 + $0x5d0] sm:$0xff] %v1235_v57  ;;  %v748_v57 = vmax.f32 %v236_v49, 0.0  ;;  %v1258_v62 = vmin.f32 %v746_v51, 6.0  ;;  %v258_v51 = vld [vmem:[#allocation2 + $0x748] sm:$0xff] }
  0xc6   :  { %1748 = vst [vmem:[#allocation5 + $0x5d8] sm:$0xff] %v1236_v60  ;;  %v749_v60 = vmax.f32 %v237_v52, 0.0  ;;  %v1259_v1 = vmin.f32 %v747_v54, 6.0  ;;  %v259_v54 = vld [vmem:[#allocation2 + $0x750] sm:$0xff] }
  0xc7   :  { %1749 = vst [vmem:[#allocation5 + $0x5e0] sm:$0xff] %v1237_v63  ;;  %v750_v63 = vmax.f32 %v238_v55, 0.0  ;;  %v1260_v4 = vmin.f32 %v748_v57, 6.0  ;;  %v260_v57 = vld [vmem:[#allocation2 + $0x758] sm:$0xff] }
  0xc8   :  { %1750 = vst [vmem:[#allocation5 + $0x5e8] sm:$0xff] %v1238_v2  ;;  %v751_v2 = vmax.f32 %v239_v58, 0.0  ;;  %v1261_v7 = vmin.f32 %v749_v60, 6.0  ;;  %v261_v60 = vld [vmem:[#allocation2 + $0x760] sm:$0xff] }
  0xc9   :  { %1751 = vst [vmem:[#allocation5 + $0x5f0] sm:$0xff] %v1239_v5  ;;  %v752_v5 = vmax.f32 %v240_v61, 0.0  ;;  %v1262_v10 = vmin.f32 %v750_v63, 6.0  ;;  %v262_v63 = vld [vmem:[#allocation2 + $0x768] sm:$0xff] }
  0xca   :  { %1752 = vst [vmem:[#allocation5 + $0x5f8] sm:$0xff] %v1240_v8  ;;  %v753_v8 = vmax.f32 %v241_v0, 0.0  ;;  %v1263_v13 = vmin.f32 %v751_v2, 6.0  ;;  %v263_v2 = vld [vmem:[#allocation2 + $0x770] sm:$0xff] }
  0xcb   :  { %1753 = vst [vmem:[#allocation5 + $0x600] sm:$0xff] %v1241_v11  ;;  %v754_v11 = vmax.f32 %v242_v3, 0.0  ;;  %v1264_v16 = vmin.f32 %v752_v5, 6.0  ;;  %v264_v5 = vld [vmem:[#allocation2 + $0x778] sm:$0xff] }
  0xcc   :  { %1754 = vst [vmem:[#allocation5 + $0x608] sm:$0xff] %v1242_v14  ;;  %v755_v14 = vmax.f32 %v243_v6, 0.0  ;;  %v1265_v19 = vmin.f32 %v753_v8, 6.0  ;;  %v265_v8 = vld [vmem:[#allocation2 + $0x780] sm:$0xff] }
  0xcd   :  { %1755 = vst [vmem:[#allocation5 + $0x610] sm:$0xff] %v1243_v17  ;;  %v756_v17 = vmax.f32 %v244_v9, 0.0  ;;  %v1266_v22 = vmin.f32 %v754_v11, 6.0  ;;  %v266_v11 = vld [vmem:[#allocation2 + $0x788] sm:$0xff] }
  0xce   :  { %1756 = vst [vmem:[#allocation5 + $0x618] sm:$0xff] %v1244_v20  ;;  %v757_v20 = vmax.f32 %v245_v12, 0.0  ;;  %v1267_v25 = vmin.f32 %v755_v14, 6.0  ;;  %v267_v14 = vld [vmem:[#allocation2 + $0x790] sm:$0xff] }
  0xcf   :  { %1757 = vst [vmem:[#allocation5 + $0x620] sm:$0xff] %v1245_v23  ;;  %v758_v23 = vmax.f32 %v246_v15, 0.0  ;;  %v1268_v28 = vmin.f32 %v756_v17, 6.0  ;;  %v268_v17 = vld [vmem:[#allocation2 + $0x798] sm:$0xff] }
  0xd0   :  { %1758 = vst [vmem:[#allocation5 + $0x628] sm:$0xff] %v1246_v26  ;;  %v759_v26 = vmax.f32 %v247_v18, 0.0  ;;  %v1269_v31 = vmin.f32 %v757_v20, 6.0  ;;  %v269_v20 = vld [vmem:[#allocation2 + $0x7a0] sm:$0xff] }
  0xd1   :  { %1759 = vst [vmem:[#allocation5 + $0x630] sm:$0xff] %v1247_v29  ;;  %v760_v29 = vmax.f32 %v248_v21, 0.0  ;;  %v1270_v34 = vmin.f32 %v758_v23, 6.0  ;;  %v270_v23 = vld [vmem:[#allocation2 + $0x7a8] sm:$0xff] }
  0xd2   :  { %1760 = vst [vmem:[#allocation5 + $0x638] sm:$0xff] %v1248_v32  ;;  %v761_v32 = vmax.f32 %v249_v24, 0.0  ;;  %v1271_v37 = vmin.f32 %v759_v26, 6.0  ;;  %v271_v26 = vld [vmem:[#allocation2 + $0x7b0] sm:$0xff] }
  0xd3   :  { %1761 = vst [vmem:[#allocation5 + $0x640] sm:$0xff] %v1249_v35  ;;  %v762_v35 = vmax.f32 %v250_v27, 0.0  ;;  %v1272_v40 = vmin.f32 %v760_v29, 6.0  ;;  %v272_v29 = vld [vmem:[#allocation2 + $0x7b8] sm:$0xff] }
  0xd4   :  { %1762 = vst [vmem:[#allocation5 + $0x648] sm:$0xff] %v1250_v38  ;;  %v763_v38 = vmax.f32 %v251_v30, 0.0  ;;  %v1273_v43 = vmin.f32 %v761_v32, 6.0  ;;  %v273_v32 = vld [vmem:[#allocation2 + $0x7c0] sm:$0xff] }
  0xd5   :  { %1763 = vst [vmem:[#allocation5 + $0x650] sm:$0xff] %v1251_v41  ;;  %v764_v41 = vmax.f32 %v252_v33, 0.0  ;;  %v1274_v46 = vmin.f32 %v762_v35, 6.0  ;;  %v274_v35 = vld [vmem:[#allocation2 + $0x7c8] sm:$0xff] }
  0xd6   :  { %1764 = vst [vmem:[#allocation5 + $0x658] sm:$0xff] %v1252_v44  ;;  %v765_v44 = vmax.f32 %v253_v36, 0.0  ;;  %v1275_v49 = vmin.f32 %v763_v38, 6.0  ;;  %v275_v38 = vld [vmem:[#allocation2 + $0x7d0] sm:$0xff] }
  0xd7   :  { %1765 = vst [vmem:[#allocation5 + $0x660] sm:$0xff] %v1253_v47  ;;  %v766_v47 = vmax.f32 %v254_v39, 0.0  ;;  %v1276_v52 = vmin.f32 %v764_v41, 6.0  ;;  %v276_v41 = vld [vmem:[#allocation2 + $0x7d8] sm:$0xff] }
  0xd8   :  { %1766 = vst [vmem:[#allocation5 + $0x668] sm:$0xff] %v1254_v50  ;;  %v767_v50 = vmax.f32 %v255_v42, 0.0  ;;  %v1277_v55 = vmin.f32 %v765_v44, 6.0  ;;  %v277_v44 = vld [vmem:[#allocation2 + $0x7e0] sm:$0xff] }
  0xd9   :  { %1767 = vst [vmem:[#allocation5 + $0x670] sm:$0xff] %v1255_v53  ;;  %v768_v53 = vmax.f32 %v256_v45, 0.0  ;;  %v1278_v58 = vmin.f32 %v766_v47, 6.0  ;;  %v278_v47 = vld [vmem:[#allocation2 + $0x7e8] sm:$0xff] }
  0xda   :  { %1768 = vst [vmem:[#allocation5 + $0x678] sm:$0xff] %v1256_v56  ;;  %v769_v56 = vmax.f32 %v257_v48, 0.0  ;;  %v1279_v61 = vmin.f32 %v767_v50, 6.0  ;;  %v279_v50 = vld [vmem:[#allocation2 + $0x7f0] sm:$0xff] }
  0xdb   :  { %1769 = vst [vmem:[#allocation5 + $0x680] sm:$0xff] %v1257_v59  ;;  %v770_v59 = vmax.f32 %v258_v51, 0.0  ;;  %v1280_v0 = vmin.f32 %v768_v53, 6.0  ;;  %v280_v53 = vld [vmem:[#allocation2 + $0x7f8] sm:$0xff] }
  0xdc   :  { %1770 = vst [vmem:[#allocation5 + $0x688] sm:$0xff] %v1258_v62  ;;  %v771_v62 = vmax.f32 %v259_v54, 0.0  ;;  %v1281_v3 = vmin.f32 %v769_v56, 6.0  ;;  %v281_v56 = vld [vmem:[#allocation2 + $0x800] sm:$0xff] }
  0xdd   :  { %1771 = vst [vmem:[#allocation5 + $0x690] sm:$0xff] %v1259_v1  ;;  %v772_v1 = vmax.f32 %v260_v57, 0.0  ;;  %v1282_v6 = vmin.f32 %v770_v59, 6.0  ;;  %v282_v59 = vld [vmem:[#allocation2 + $0x808] sm:$0xff] }
  0xde   :  { %1772 = vst [vmem:[#allocation5 + $0x698] sm:$0xff] %v1260_v4  ;;  %v773_v4 = vmax.f32 %v261_v60, 0.0  ;;  %v1283_v9 = vmin.f32 %v771_v62, 6.0  ;;  %v283_v62 = vld [vmem:[#allocation2 + $0x810] sm:$0xff] }
  0xdf   :  { %1773 = vst [vmem:[#allocation5 + $0x6a0] sm:$0xff] %v1261_v7  ;;  %v774_v7 = vmax.f32 %v262_v63, 0.0  ;;  %v1284_v12 = vmin.f32 %v772_v1, 6.0  ;;  %v284_v1 = vld [vmem:[#allocation2 + $0x818] sm:$0xff] }
  0xe0   :  { %1774 = vst [vmem:[#allocation5 + $0x6a8] sm:$0xff] %v1262_v10  ;;  %v775_v10 = vmax.f32 %v263_v2, 0.0  ;;  %v1285_v15 = vmin.f32 %v773_v4, 6.0  ;;  %v285_v4 = vld [vmem:[#allocation2 + $0x820] sm:$0xff] }
  0xe1   :  { %1775 = vst [vmem:[#allocation5 + $0x6b0] sm:$0xff] %v1263_v13  ;;  %v776_v13 = vmax.f32 %v264_v5, 0.0  ;;  %v1286_v18 = vmin.f32 %v774_v7, 6.0  ;;  %v286_v7 = vld [vmem:[#allocation2 + $0x828] sm:$0xff] }
  0xe2   :  { %1776 = vst [vmem:[#allocation5 + $0x6b8] sm:$0xff] %v1264_v16  ;;  %v777_v16 = vmax.f32 %v265_v8, 0.0  ;;  %v1287_v21 = vmin.f32 %v775_v10, 6.0  ;;  %v287_v10 = vld [vmem:[#allocation2 + $0x830] sm:$0xff] }
  0xe3   :  { %1777 = vst [vmem:[#allocation5 + $0x6c0] sm:$0xff] %v1265_v19  ;;  %v778_v19 = vmax.f32 %v266_v11, 0.0  ;;  %v1288_v24 = vmin.f32 %v776_v13, 6.0  ;;  %v288_v13 = vld [vmem:[#allocation2 + $0x838] sm:$0xff] }
  0xe4   :  { %1778 = vst [vmem:[#allocation5 + $0x6c8] sm:$0xff] %v1266_v22  ;;  %v779_v22 = vmax.f32 %v267_v14, 0.0  ;;  %v1289_v27 = vmin.f32 %v777_v16, 6.0  ;;  %v289_v16 = vld [vmem:[#allocation2 + $0x840] sm:$0xff] }
  0xe5   :  { %1779 = vst [vmem:[#allocation5 + $0x6d0] sm:$0xff] %v1267_v25  ;;  %v780_v25 = vmax.f32 %v268_v17, 0.0  ;;  %v1290_v30 = vmin.f32 %v778_v19, 6.0  ;;  %v290_v19 = vld [vmem:[#allocation2 + $0x848] sm:$0xff] }
  0xe6   :  { %1780 = vst [vmem:[#allocation5 + $0x6d8] sm:$0xff] %v1268_v28  ;;  %v781_v28 = vmax.f32 %v269_v20, 0.0  ;;  %v1291_v33 = vmin.f32 %v779_v22, 6.0  ;;  %v291_v22 = vld [vmem:[#allocation2 + $0x850] sm:$0xff] }
  0xe7   :  { %1781 = vst [vmem:[#allocation5 + $0x6e0] sm:$0xff] %v1269_v31  ;;  %v782_v31 = vmax.f32 %v270_v23, 0.0  ;;  %v1292_v36 = vmin.f32 %v780_v25, 6.0  ;;  %v292_v25 = vld [vmem:[#allocation2 + $0x858] sm:$0xff] }
  0xe8   :  { %1782 = vst [vmem:[#allocation5 + $0x6e8] sm:$0xff] %v1270_v34  ;;  %v783_v34 = vmax.f32 %v271_v26, 0.0  ;;  %v1293_v39 = vmin.f32 %v781_v28, 6.0  ;;  %v293_v28 = vld [vmem:[#allocation2 + $0x860] sm:$0xff] }
  0xe9   :  { %1783 = vst [vmem:[#allocation5 + $0x6f0] sm:$0xff] %v1271_v37  ;;  %v784_v37 = vmax.f32 %v272_v29, 0.0  ;;  %v1294_v42 = vmin.f32 %v782_v31, 6.0  ;;  %v294_v31 = vld [vmem:[#allocation2 + $0x868] sm:$0xff] }
  0xea   :  { %1784 = vst [vmem:[#allocation5 + $0x6f8] sm:$0xff] %v1272_v40  ;;  %v785_v40 = vmax.f32 %v273_v32, 0.0  ;;  %v1295_v45 = vmin.f32 %v783_v34, 6.0  ;;  %v295_v34 = vld [vmem:[#allocation2 + $0x870] sm:$0xff] }
  0xeb   :  { %1785 = vst [vmem:[#allocation5 + $0x700] sm:$0xff] %v1273_v43  ;;  %v786_v43 = vmax.f32 %v274_v35, 0.0  ;;  %v1296_v48 = vmin.f32 %v784_v37, 6.0  ;;  %v296_v37 = vld [vmem:[#allocation2 + $0x878] sm:$0xff] }
  0xec   :  { %1786 = vst [vmem:[#allocation5 + $0x708] sm:$0xff] %v1274_v46  ;;  %v787_v46 = vmax.f32 %v275_v38, 0.0  ;;  %v1297_v51 = vmin.f32 %v785_v40, 6.0  ;;  %v297_v40 = vld [vmem:[#allocation2 + $0x880] sm:$0xff] }
  0xed   :  { %1787 = vst [vmem:[#allocation5 + $0x710] sm:$0xff] %v1275_v49  ;;  %v788_v49 = vmax.f32 %v276_v41, 0.0  ;;  %v1298_v54 = vmin.f32 %v786_v43, 6.0  ;;  %v298_v43 = vld [vmem:[#allocation2 + $0x888] sm:$0xff] }
  0xee   :  { %1788 = vst [vmem:[#allocation5 + $0x718] sm:$0xff] %v1276_v52  ;;  %v789_v52 = vmax.f32 %v277_v44, 0.0  ;;  %v1299_v57 = vmin.f32 %v787_v46, 6.0  ;;  %v299_v46 = vld [vmem:[#allocation2 + $0x890] sm:$0xff] }
  0xef   :  { %1789 = vst [vmem:[#allocation5 + $0x720] sm:$0xff] %v1277_v55  ;;  %v790_v55 = vmax.f32 %v278_v47, 0.0  ;;  %v1300_v60 = vmin.f32 %v788_v49, 6.0  ;;  %v300_v49 = vld [vmem:[#allocation2 + $0x898] sm:$0xff] }
  0xf0   :  { %1790 = vst [vmem:[#allocation5 + $0x728] sm:$0xff] %v1278_v58  ;;  %v791_v58 = vmax.f32 %v279_v50, 0.0  ;;  %v1301_v63 = vmin.f32 %v789_v52, 6.0  ;;  %v301_v52 = vld [vmem:[#allocation2 + $0x8a0] sm:$0xff] }
  0xf1   :  { %1791 = vst [vmem:[#allocation5 + $0x730] sm:$0xff] %v1279_v61  ;;  %v792_v61 = vmax.f32 %v280_v53, 0.0  ;;  %v1302_v2 = vmin.f32 %v790_v55, 6.0  ;;  %v302_v55 = vld [vmem:[#allocation2 + $0x8a8] sm:$0xff] }
  0xf2   :  { %1792 = vst [vmem:[#allocation5 + $0x738] sm:$0xff] %v1280_v0  ;;  %v793_v0 = vmax.f32 %v281_v56, 0.0  ;;  %v1303_v5 = vmin.f32 %v791_v58, 6.0  ;;  %v303_v58 = vld [vmem:[#allocation2 + $0x8b0] sm:$0xff] }
  0xf3   :  { %1793 = vst [vmem:[#allocation5 + $0x740] sm:$0xff] %v1281_v3  ;;  %v794_v3 = vmax.f32 %v282_v59, 0.0  ;;  %v1304_v8 = vmin.f32 %v792_v61, 6.0  ;;  %v304_v61 = vld [vmem:[#allocation2 + $0x8b8] sm:$0xff] }
  0xf4   :  { %1794 = vst [vmem:[#allocation5 + $0x748] sm:$0xff] %v1282_v6  ;;  %v795_v6 = vmax.f32 %v283_v62, 0.0  ;;  %v1305_v11 = vmin.f32 %v793_v0, 6.0  ;;  %v305_v0 = vld [vmem:[#allocation2 + $0x8c0] sm:$0xff] }
  0xf5   :  { %1795 = vst [vmem:[#allocation5 + $0x750] sm:$0xff] %v1283_v9  ;;  %v796_v9 = vmax.f32 %v284_v1, 0.0  ;;  %v1306_v14 = vmin.f32 %v794_v3, 6.0  ;;  %v306_v3 = vld [vmem:[#allocation2 + $0x8c8] sm:$0xff] }
  0xf6   :  { %1796 = vst [vmem:[#allocation5 + $0x758] sm:$0xff] %v1284_v12  ;;  %v797_v12 = vmax.f32 %v285_v4, 0.0  ;;  %v1307_v17 = vmin.f32 %v795_v6, 6.0  ;;  %v307_v6 = vld [vmem:[#allocation2 + $0x8d0] sm:$0xff] }
  0xf7   :  { %1797 = vst [vmem:[#allocation5 + $0x760] sm:$0xff] %v1285_v15  ;;  %v798_v15 = vmax.f32 %v286_v7, 0.0  ;;  %v1308_v20 = vmin.f32 %v796_v9, 6.0  ;;  %v308_v9 = vld [vmem:[#allocation2 + $0x8d8] sm:$0xff] }
  0xf8   :  { %1798 = vst [vmem:[#allocation5 + $0x768] sm:$0xff] %v1286_v18  ;;  %v799_v18 = vmax.f32 %v287_v10, 0.0  ;;  %v1309_v23 = vmin.f32 %v797_v12, 6.0  ;;  %v309_v12 = vld [vmem:[#allocation2 + $0x8e0] sm:$0xff] }
  0xf9   :  { %1799 = vst [vmem:[#allocation5 + $0x770] sm:$0xff] %v1287_v21  ;;  %v800_v21 = vmax.f32 %v288_v13, 0.0  ;;  %v1310_v26 = vmin.f32 %v798_v15, 6.0  ;;  %v310_v15 = vld [vmem:[#allocation2 + $0x8e8] sm:$0xff] }
  0xfa   :  { %1800 = vst [vmem:[#allocation5 + $0x778] sm:$0xff] %v1288_v24  ;;  %v801_v24 = vmax.f32 %v289_v16, 0.0  ;;  %v1311_v29 = vmin.f32 %v799_v18, 6.0  ;;  %v311_v18 = vld [vmem:[#allocation2 + $0x8f0] sm:$0xff] }
  0xfb   :  { %1801 = vst [vmem:[#allocation5 + $0x780] sm:$0xff] %v1289_v27  ;;  %v802_v27 = vmax.f32 %v290_v19, 0.0  ;;  %v1312_v32 = vmin.f32 %v800_v21, 6.0  ;;  %v312_v21 = vld [vmem:[#allocation2 + $0x8f8] sm:$0xff] }
  0xfc   :  { %1802 = vst [vmem:[#allocation5 + $0x788] sm:$0xff] %v1290_v30  ;;  %v803_v30 = vmax.f32 %v291_v22, 0.0  ;;  %v1313_v35 = vmin.f32 %v801_v24, 6.0  ;;  %v313_v24 = vld [vmem:[#allocation2 + $0x900] sm:$0xff] }
  0xfd   :  { %1803 = vst [vmem:[#allocation5 + $0x790] sm:$0xff] %v1291_v33  ;;  %v804_v33 = vmax.f32 %v292_v25, 0.0  ;;  %v1314_v38 = vmin.f32 %v802_v27, 6.0  ;;  %v314_v27 = vld [vmem:[#allocation2 + $0x908] sm:$0xff] }
  0xfe   :  { %1804 = vst [vmem:[#allocation5 + $0x798] sm:$0xff] %v1292_v36  ;;  %v805_v36 = vmax.f32 %v293_v28, 0.0  ;;  %v1315_v41 = vmin.f32 %v803_v30, 6.0  ;;  %v315_v30 = vld [vmem:[#allocation2 + $0x910] sm:$0xff] }
  0xff   :  { %1805 = vst [vmem:[#allocation5 + $0x7a0] sm:$0xff] %v1293_v39  ;;  %v806_v39 = vmax.f32 %v294_v31, 0.0  ;;  %v1316_v44 = vmin.f32 %v804_v33, 6.0  ;;  %v316_v33 = vld [vmem:[#allocation2 + $0x918] sm:$0xff] }
 0x100   :  { %1806 = vst [vmem:[#allocation5 + $0x7a8] sm:$0xff] %v1294_v42  ;;  %v807_v42 = vmax.f32 %v295_v34, 0.0  ;;  %v1317_v47 = vmin.f32 %v805_v36, 6.0  ;;  %v317_v36 = vld [vmem:[#allocation2 + $0x920] sm:$0xff] }
 0x101   :  { %1807 = vst [vmem:[#allocation5 + $0x7b0] sm:$0xff] %v1295_v45  ;;  %v808_v45 = vmax.f32 %v296_v37, 0.0  ;;  %v1318_v50 = vmin.f32 %v806_v39, 6.0  ;;  %v318_v39 = vld [vmem:[#allocation2 + $0x928] sm:$0xff] }
 0x102   :  { %1808 = vst [vmem:[#allocation5 + $0x7b8] sm:$0xff] %v1296_v48  ;;  %v809_v48 = vmax.f32 %v297_v40, 0.0  ;;  %v1319_v53 = vmin.f32 %v807_v42, 6.0  ;;  %v319_v42 = vld [vmem:[#allocation2 + $0x930] sm:$0xff] }
 0x103   :  { %1809 = vst [vmem:[#allocation5 + $0x7c0] sm:$0xff] %v1297_v51  ;;  %v810_v51 = vmax.f32 %v298_v43, 0.0  ;;  %v1320_v56 = vmin.f32 %v808_v45, 6.0  ;;  %v320_v45 = vld [vmem:[#allocation2 + $0x938] sm:$0xff] }
 0x104   :  { %1810 = vst [vmem:[#allocation5 + $0x7c8] sm:$0xff] %v1298_v54  ;;  %v811_v54 = vmax.f32 %v299_v46, 0.0  ;;  %v1321_v59 = vmin.f32 %v809_v48, 6.0  ;;  %v321_v48 = vld [vmem:[#allocation2 + $0x940] sm:$0xff] }
 0x105   :  { %1811 = vst [vmem:[#allocation5 + $0x7d0] sm:$0xff] %v1299_v57  ;;  %v812_v57 = vmax.f32 %v300_v49, 0.0  ;;  %v1322_v62 = vmin.f32 %v810_v51, 6.0  ;;  %v322_v51 = vld [vmem:[#allocation2 + $0x948] sm:$0xff] }
 0x106   :  { %1812 = vst [vmem:[#allocation5 + $0x7d8] sm:$0xff] %v1300_v60  ;;  %v813_v60 = vmax.f32 %v301_v52, 0.0  ;;  %v1323_v1 = vmin.f32 %v811_v54, 6.0  ;;  %v323_v54 = vld [vmem:[#allocation2 + $0x950] sm:$0xff] }
 0x107   :  { %1813 = vst [vmem:[#allocation5 + $0x7e0] sm:$0xff] %v1301_v63  ;;  %v814_v63 = vmax.f32 %v302_v55, 0.0  ;;  %v1324_v4 = vmin.f32 %v812_v57, 6.0  ;;  %v324_v57 = vld [vmem:[#allocation2 + $0x958] sm:$0xff] }
 0x108   :  { %1814 = vst [vmem:[#allocation5 + $0x7e8] sm:$0xff] %v1302_v2  ;;  %v815_v2 = vmax.f32 %v303_v58, 0.0  ;;  %v1325_v7 = vmin.f32 %v813_v60, 6.0  ;;  %v325_v60 = vld [vmem:[#allocation2 + $0x960] sm:$0xff] }
 0x109   :  { %1815 = vst [vmem:[#allocation5 + $0x7f0] sm:$0xff] %v1303_v5  ;;  %v816_v5 = vmax.f32 %v304_v61, 0.0  ;;  %v1326_v10 = vmin.f32 %v814_v63, 6.0  ;;  %v326_v63 = vld [vmem:[#allocation2 + $0x968] sm:$0xff] }
 0x10a   :  { %1816 = vst [vmem:[#allocation5 + $0x7f8] sm:$0xff] %v1304_v8  ;;  %v817_v8 = vmax.f32 %v305_v0, 0.0  ;;  %v1327_v13 = vmin.f32 %v815_v2, 6.0  ;;  %v327_v2 = vld [vmem:[#allocation2 + $0x970] sm:$0xff] }
 0x10b   :  { %1817 = vst [vmem:[#allocation5 + $0x800] sm:$0xff] %v1305_v11  ;;  %v818_v11 = vmax.f32 %v306_v3, 0.0  ;;  %v1328_v16 = vmin.f32 %v816_v5, 6.0  ;;  %v328_v5 = vld [vmem:[#allocation2 + $0x978] sm:$0xff] }
 0x10c   :  { %1818 = vst [vmem:[#allocation5 + $0x808] sm:$0xff] %v1306_v14  ;;  %v819_v14 = vmax.f32 %v307_v6, 0.0  ;;  %v1329_v19 = vmin.f32 %v817_v8, 6.0  ;;  %v329_v8 = vld [vmem:[#allocation2 + $0x980] sm:$0xff] }
 0x10d   :  { %1819 = vst [vmem:[#allocation5 + $0x810] sm:$0xff] %v1307_v17  ;;  %v820_v17 = vmax.f32 %v308_v9, 0.0  ;;  %v1330_v22 = vmin.f32 %v818_v11, 6.0  ;;  %v330_v11 = vld [vmem:[#allocation2 + $0x988] sm:$0xff] }
 0x10e   :  { %1820 = vst [vmem:[#allocation5 + $0x818] sm:$0xff] %v1308_v20  ;;  %v821_v20 = vmax.f32 %v309_v12, 0.0  ;;  %v1331_v25 = vmin.f32 %v819_v14, 6.0  ;;  %v331_v14 = vld [vmem:[#allocation2 + $0x990] sm:$0xff] }
 0x10f   :  { %1821 = vst [vmem:[#allocation5 + $0x820] sm:$0xff] %v1309_v23  ;;  %v822_v23 = vmax.f32 %v310_v15, 0.0  ;;  %v1332_v28 = vmin.f32 %v820_v17, 6.0  ;;  %v332_v17 = vld [vmem:[#allocation2 + $0x998] sm:$0xff] }
 0x110   :  { %1822 = vst [vmem:[#allocation5 + $0x828] sm:$0xff] %v1310_v26  ;;  %v823_v26 = vmax.f32 %v311_v18, 0.0  ;;  %v1333_v31 = vmin.f32 %v821_v20, 6.0  ;;  %v333_v20 = vld [vmem:[#allocation2 + $0x9a0] sm:$0xff] }
 0x111   :  { %1823 = vst [vmem:[#allocation5 + $0x830] sm:$0xff] %v1311_v29  ;;  %v824_v29 = vmax.f32 %v312_v21, 0.0  ;;  %v1334_v34 = vmin.f32 %v822_v23, 6.0  ;;  %v334_v23 = vld [vmem:[#allocation2 + $0x9a8] sm:$0xff] }
 0x112   :  { %1824 = vst [vmem:[#allocation5 + $0x838] sm:$0xff] %v1312_v32  ;;  %v825_v32 = vmax.f32 %v313_v24, 0.0  ;;  %v1335_v37 = vmin.f32 %v823_v26, 6.0  ;;  %v335_v26 = vld [vmem:[#allocation2 + $0x9b0] sm:$0xff] }
 0x113   :  { %1825 = vst [vmem:[#allocation5 + $0x840] sm:$0xff] %v1313_v35  ;;  %v826_v35 = vmax.f32 %v314_v27, 0.0  ;;  %v1336_v40 = vmin.f32 %v824_v29, 6.0  ;;  %v336_v29 = vld [vmem:[#allocation2 + $0x9b8] sm:$0xff] }
 0x114   :  { %1826 = vst [vmem:[#allocation5 + $0x848] sm:$0xff] %v1314_v38  ;;  %v827_v38 = vmax.f32 %v315_v30, 0.0  ;;  %v1337_v43 = vmin.f32 %v825_v32, 6.0  ;;  %v337_v32 = vld [vmem:[#allocation2 + $0x9c0] sm:$0xff] }
 0x115   :  { %1827 = vst [vmem:[#allocation5 + $0x850] sm:$0xff] %v1315_v41  ;;  %v828_v41 = vmax.f32 %v316_v33, 0.0  ;;  %v1338_v46 = vmin.f32 %v826_v35, 6.0  ;;  %v338_v35 = vld [vmem:[#allocation2 + $0x9c8] sm:$0xff] }
 0x116   :  { %1828 = vst [vmem:[#allocation5 + $0x858] sm:$0xff] %v1316_v44  ;;  %v829_v44 = vmax.f32 %v317_v36, 0.0  ;;  %v1339_v49 = vmin.f32 %v827_v38, 6.0  ;;  %v339_v38 = vld [vmem:[#allocation2 + $0x9d0] sm:$0xff] }
 0x117   :  { %1829 = vst [vmem:[#allocation5 + $0x860] sm:$0xff] %v1317_v47  ;;  %v830_v47 = vmax.f32 %v318_v39, 0.0  ;;  %v1340_v52 = vmin.f32 %v828_v41, 6.0  ;;  %v340_v41 = vld [vmem:[#allocation2 + $0x9d8] sm:$0xff] }
 0x118   :  { %1830 = vst [vmem:[#allocation5 + $0x868] sm:$0xff] %v1318_v50  ;;  %v831_v50 = vmax.f32 %v319_v42, 0.0  ;;  %v1341_v55 = vmin.f32 %v829_v44, 6.0  ;;  %v341_v44 = vld [vmem:[#allocation2 + $0x9e0] sm:$0xff] }
 0x119   :  { %1831 = vst [vmem:[#allocation5 + $0x870] sm:$0xff] %v1319_v53  ;;  %v832_v53 = vmax.f32 %v320_v45, 0.0  ;;  %v1342_v58 = vmin.f32 %v830_v47, 6.0  ;;  %v342_v47 = vld [vmem:[#allocation2 + $0x9e8] sm:$0xff] }
 0x11a   :  { %1832 = vst [vmem:[#allocation5 + $0x878] sm:$0xff] %v1320_v56  ;;  %v833_v56 = vmax.f32 %v321_v48, 0.0  ;;  %v1343_v61 = vmin.f32 %v831_v50, 6.0  ;;  %v343_v50 = vld [vmem:[#allocation2 + $0x9f0] sm:$0xff] }
 0x11b   :  { %1833 = vst [vmem:[#allocation5 + $0x880] sm:$0xff] %v1321_v59  ;;  %v834_v59 = vmax.f32 %v322_v51, 0.0  ;;  %v1344_v0 = vmin.f32 %v832_v53, 6.0  ;;  %v344_v53 = vld [vmem:[#allocation2 + $0x9f8] sm:$0xff] }
 0x11c   :  { %1834 = vst [vmem:[#allocation5 + $0x888] sm:$0xff] %v1322_v62  ;;  %v835_v62 = vmax.f32 %v323_v54, 0.0  ;;  %v1345_v3 = vmin.f32 %v833_v56, 6.0  ;;  %v345_v56 = vld [vmem:[#allocation2 + $0xa00] sm:$0xff] }
 0x11d   :  { %1835 = vst [vmem:[#allocation5 + $0x890] sm:$0xff] %v1323_v1  ;;  %v836_v1 = vmax.f32 %v324_v57, 0.0  ;;  %v1346_v6 = vmin.f32 %v834_v59, 6.0  ;;  %v346_v59 = vld [vmem:[#allocation2 + $0xa08] sm:$0xff] }
 0x11e   :  { %1836 = vst [vmem:[#allocation5 + $0x898] sm:$0xff] %v1324_v4  ;;  %v837_v4 = vmax.f32 %v325_v60, 0.0  ;;  %v1347_v9 = vmin.f32 %v835_v62, 6.0  ;;  %v347_v62 = vld [vmem:[#allocation2 + $0xa10] sm:$0xff] }
 0x11f   :  { %1837 = vst [vmem:[#allocation5 + $0x8a0] sm:$0xff] %v1325_v7  ;;  %v838_v7 = vmax.f32 %v326_v63, 0.0  ;;  %v1348_v12 = vmin.f32 %v836_v1, 6.0  ;;  %v348_v1 = vld [vmem:[#allocation2 + $0xa18] sm:$0xff] }
 0x120   :  { %1838 = vst [vmem:[#allocation5 + $0x8a8] sm:$0xff] %v1326_v10  ;;  %v839_v10 = vmax.f32 %v327_v2, 0.0  ;;  %v1349_v15 = vmin.f32 %v837_v4, 6.0  ;;  %v349_v4 = vld [vmem:[#allocation2 + $0xa20] sm:$0xff] }
 0x121   :  { %1839 = vst [vmem:[#allocation5 + $0x8b0] sm:$0xff] %v1327_v13  ;;  %v840_v13 = vmax.f32 %v328_v5, 0.0  ;;  %v1350_v18 = vmin.f32 %v838_v7, 6.0  ;;  %v350_v7 = vld [vmem:[#allocation2 + $0xa28] sm:$0xff] }
 0x122   :  { %1840 = vst [vmem:[#allocation5 + $0x8b8] sm:$0xff] %v1328_v16  ;;  %v841_v16 = vmax.f32 %v329_v8, 0.0  ;;  %v1351_v21 = vmin.f32 %v839_v10, 6.0  ;;  %v351_v10 = vld [vmem:[#allocation2 + $0xa30] sm:$0xff] }
 0x123   :  { %1841 = vst [vmem:[#allocation5 + $0x8c0] sm:$0xff] %v1329_v19  ;;  %v842_v19 = vmax.f32 %v330_v11, 0.0  ;;  %v1352_v24 = vmin.f32 %v840_v13, 6.0  ;;  %v352_v13 = vld [vmem:[#allocation2 + $0xa38] sm:$0xff] }
 0x124   :  { %1842 = vst [vmem:[#allocation5 + $0x8c8] sm:$0xff] %v1330_v22  ;;  %v843_v22 = vmax.f32 %v331_v14, 0.0  ;;  %v1353_v27 = vmin.f32 %v841_v16, 6.0  ;;  %v353_v16 = vld [vmem:[#allocation2 + $0xa40] sm:$0xff] }
 0x125   :  { %1843 = vst [vmem:[#allocation5 + $0x8d0] sm:$0xff] %v1331_v25  ;;  %v844_v25 = vmax.f32 %v332_v17, 0.0  ;;  %v1354_v30 = vmin.f32 %v842_v19, 6.0  ;;  %v354_v19 = vld [vmem:[#allocation2 + $0xa48] sm:$0xff] }
 0x126   :  { %1844 = vst [vmem:[#allocation5 + $0x8d8] sm:$0xff] %v1332_v28  ;;  %v845_v28 = vmax.f32 %v333_v20, 0.0  ;;  %v1355_v33 = vmin.f32 %v843_v22, 6.0  ;;  %v355_v22 = vld [vmem:[#allocation2 + $0xa50] sm:$0xff] }
 0x127   :  { %1845 = vst [vmem:[#allocation5 + $0x8e0] sm:$0xff] %v1333_v31  ;;  %v846_v31 = vmax.f32 %v334_v23, 0.0  ;;  %v1356_v36 = vmin.f32 %v844_v25, 6.0  ;;  %v356_v25 = vld [vmem:[#allocation2 + $0xa58] sm:$0xff] }
 0x128   :  { %1846 = vst [vmem:[#allocation5 + $0x8e8] sm:$0xff] %v1334_v34  ;;  %v847_v34 = vmax.f32 %v335_v26, 0.0  ;;  %v1357_v39 = vmin.f32 %v845_v28, 6.0  ;;  %v357_v28 = vld [vmem:[#allocation2 + $0xa60] sm:$0xff] }
 0x129   :  { %1847 = vst [vmem:[#allocation5 + $0x8f0] sm:$0xff] %v1335_v37  ;;  %v848_v37 = vmax.f32 %v336_v29, 0.0  ;;  %v1358_v42 = vmin.f32 %v846_v31, 6.0  ;;  %v358_v31 = vld [vmem:[#allocation2 + $0xa68] sm:$0xff] }
 0x12a   :  { %1848 = vst [vmem:[#allocation5 + $0x8f8] sm:$0xff] %v1336_v40  ;;  %v849_v40 = vmax.f32 %v337_v32, 0.0  ;;  %v1359_v45 = vmin.f32 %v847_v34, 6.0  ;;  %v359_v34 = vld [vmem:[#allocation2 + $0xa70] sm:$0xff] }
 0x12b   :  { %1849 = vst [vmem:[#allocation5 + $0x900] sm:$0xff] %v1337_v43  ;;  %v850_v43 = vmax.f32 %v338_v35, 0.0  ;;  %v1360_v48 = vmin.f32 %v848_v37, 6.0  ;;  %v360_v37 = vld [vmem:[#allocation2 + $0xa78] sm:$0xff] }
 0x12c   :  { %1850 = vst [vmem:[#allocation5 + $0x908] sm:$0xff] %v1338_v46  ;;  %v851_v46 = vmax.f32 %v339_v38, 0.0  ;;  %v1361_v51 = vmin.f32 %v849_v40, 6.0  ;;  %v361_v40 = vld [vmem:[#allocation2 + $0xa80] sm:$0xff] }
 0x12d   :  { %1851 = vst [vmem:[#allocation5 + $0x910] sm:$0xff] %v1339_v49  ;;  %v852_v49 = vmax.f32 %v340_v41, 0.0  ;;  %v1362_v54 = vmin.f32 %v850_v43, 6.0  ;;  %v362_v43 = vld [vmem:[#allocation2 + $0xa88] sm:$0xff] }
 0x12e   :  { %1852 = vst [vmem:[#allocation5 + $0x918] sm:$0xff] %v1340_v52  ;;  %v853_v52 = vmax.f32 %v341_v44, 0.0  ;;  %v1363_v57 = vmin.f32 %v851_v46, 6.0  ;;  %v363_v46 = vld [vmem:[#allocation2 + $0xa90] sm:$0xff] }
 0x12f   :  { %1853 = vst [vmem:[#allocation5 + $0x920] sm:$0xff] %v1341_v55  ;;  %v854_v55 = vmax.f32 %v342_v47, 0.0  ;;  %v1364_v60 = vmin.f32 %v852_v49, 6.0  ;;  %v364_v49 = vld [vmem:[#allocation2 + $0xa98] sm:$0xff] }
 0x130   :  { %1854 = vst [vmem:[#allocation5 + $0x928] sm:$0xff] %v1342_v58  ;;  %v855_v58 = vmax.f32 %v343_v50, 0.0  ;;  %v1365_v63 = vmin.f32 %v853_v52, 6.0  ;;  %v365_v52 = vld [vmem:[#allocation2 + $0xaa0] sm:$0xff] }
 0x131   :  { %1855 = vst [vmem:[#allocation5 + $0x930] sm:$0xff] %v1343_v61  ;;  %v856_v61 = vmax.f32 %v344_v53, 0.0  ;;  %v1366_v2 = vmin.f32 %v854_v55, 6.0  ;;  %v366_v55 = vld [vmem:[#allocation2 + $0xaa8] sm:$0xff] }
 0x132   :  { %1856 = vst [vmem:[#allocation5 + $0x938] sm:$0xff] %v1344_v0  ;;  %v857_v0 = vmax.f32 %v345_v56, 0.0  ;;  %v1367_v5 = vmin.f32 %v855_v58, 6.0  ;;  %v367_v58 = vld [vmem:[#allocation2 + $0xab0] sm:$0xff] }
 0x133   :  { %1857 = vst [vmem:[#allocation5 + $0x940] sm:$0xff] %v1345_v3  ;;  %v858_v3 = vmax.f32 %v346_v59, 0.0  ;;  %v1368_v8 = vmin.f32 %v856_v61, 6.0  ;;  %v368_v61 = vld [vmem:[#allocation2 + $0xab8] sm:$0xff] }
 0x134   :  { %1858 = vst [vmem:[#allocation5 + $0x948] sm:$0xff] %v1346_v6  ;;  %v859_v6 = vmax.f32 %v347_v62, 0.0  ;;  %v1369_v11 = vmin.f32 %v857_v0, 6.0  ;;  %v369_v0 = vld [vmem:[#allocation2 + $0xac0] sm:$0xff] }
 0x135   :  { %1859 = vst [vmem:[#allocation5 + $0x950] sm:$0xff] %v1347_v9  ;;  %v860_v9 = vmax.f32 %v348_v1, 0.0  ;;  %v1370_v14 = vmin.f32 %v858_v3, 6.0  ;;  %v370_v3 = vld [vmem:[#allocation2 + $0xac8] sm:$0xff] }
 0x136   :  { %1860 = vst [vmem:[#allocation5 + $0x958] sm:$0xff] %v1348_v12  ;;  %v861_v12 = vmax.f32 %v349_v4, 0.0  ;;  %v1371_v17 = vmin.f32 %v859_v6, 6.0  ;;  %v371_v6 = vld [vmem:[#allocation2 + $0xad0] sm:$0xff] }
 0x137   :  { %1861 = vst [vmem:[#allocation5 + $0x960] sm:$0xff] %v1349_v15  ;;  %v862_v15 = vmax.f32 %v350_v7, 0.0  ;;  %v1372_v20 = vmin.f32 %v860_v9, 6.0  ;;  %v372_v9 = vld [vmem:[#allocation2 + $0xad8] sm:$0xff] }
 0x138   :  { %1862 = vst [vmem:[#allocation5 + $0x968] sm:$0xff] %v1350_v18  ;;  %v863_v18 = vmax.f32 %v351_v10, 0.0  ;;  %v1373_v23 = vmin.f32 %v861_v12, 6.0  ;;  %v373_v12 = vld [vmem:[#allocation2 + $0xae0] sm:$0xff] }
 0x139   :  { %1863 = vst [vmem:[#allocation5 + $0x970] sm:$0xff] %v1351_v21  ;;  %v864_v21 = vmax.f32 %v352_v13, 0.0  ;;  %v1374_v26 = vmin.f32 %v862_v15, 6.0  ;;  %v374_v15 = vld [vmem:[#allocation2 + $0xae8] sm:$0xff] }
 0x13a   :  { %1864 = vst [vmem:[#allocation5 + $0x978] sm:$0xff] %v1352_v24  ;;  %v865_v24 = vmax.f32 %v353_v16, 0.0  ;;  %v1375_v29 = vmin.f32 %v863_v18, 6.0  ;;  %v375_v18 = vld [vmem:[#allocation2 + $0xaf0] sm:$0xff] }
 0x13b   :  { %1865 = vst [vmem:[#allocation5 + $0x980] sm:$0xff] %v1353_v27  ;;  %v866_v27 = vmax.f32 %v354_v19, 0.0  ;;  %v1376_v32 = vmin.f32 %v864_v21, 6.0  ;;  %v376_v21 = vld [vmem:[#allocation2 + $0xaf8] sm:$0xff] }
 0x13c   :  { %1866 = vst [vmem:[#allocation5 + $0x988] sm:$0xff] %v1354_v30  ;;  %v867_v30 = vmax.f32 %v355_v22, 0.0  ;;  %v1377_v35 = vmin.f32 %v865_v24, 6.0  ;;  %v377_v24 = vld [vmem:[#allocation2 + $0xb00] sm:$0xff] }
 0x13d   :  { %1867 = vst [vmem:[#allocation5 + $0x990] sm:$0xff] %v1355_v33  ;;  %v868_v33 = vmax.f32 %v356_v25, 0.0  ;;  %v1378_v38 = vmin.f32 %v866_v27, 6.0  ;;  %v378_v27 = vld [vmem:[#allocation2 + $0xb08] sm:$0xff] }
 0x13e   :  { %1868 = vst [vmem:[#allocation5 + $0x998] sm:$0xff] %v1356_v36  ;;  %v869_v36 = vmax.f32 %v357_v28, 0.0  ;;  %v1379_v41 = vmin.f32 %v867_v30, 6.0  ;;  %v379_v30 = vld [vmem:[#allocation2 + $0xb10] sm:$0xff] }
 0x13f   :  { %1869 = vst [vmem:[#allocation5 + $0x9a0] sm:$0xff] %v1357_v39  ;;  %v870_v39 = vmax.f32 %v358_v31, 0.0  ;;  %v1380_v44 = vmin.f32 %v868_v33, 6.0  ;;  %v380_v33 = vld [vmem:[#allocation2 + $0xb18] sm:$0xff] }
 0x140   :  { %1870 = vst [vmem:[#allocation5 + $0x9a8] sm:$0xff] %v1358_v42  ;;  %v871_v42 = vmax.f32 %v359_v34, 0.0  ;;  %v1381_v47 = vmin.f32 %v869_v36, 6.0  ;;  %v381_v36 = vld [vmem:[#allocation2 + $0xb20] sm:$0xff] }
 0x141   :  { %1871 = vst [vmem:[#allocation5 + $0x9b0] sm:$0xff] %v1359_v45  ;;  %v872_v45 = vmax.f32 %v360_v37, 0.0  ;;  %v1382_v50 = vmin.f32 %v870_v39, 6.0  ;;  %v382_v39 = vld [vmem:[#allocation2 + $0xb28] sm:$0xff] }
 0x142   :  { %1872 = vst [vmem:[#allocation5 + $0x9b8] sm:$0xff] %v1360_v48  ;;  %v873_v48 = vmax.f32 %v361_v40, 0.0  ;;  %v1383_v53 = vmin.f32 %v871_v42, 6.0  ;;  %v383_v42 = vld [vmem:[#allocation2 + $0xb30] sm:$0xff] }
 0x143   :  { %1873 = vst [vmem:[#allocation5 + $0x9c0] sm:$0xff] %v1361_v51  ;;  %v874_v51 = vmax.f32 %v362_v43, 0.0  ;;  %v1384_v56 = vmin.f32 %v872_v45, 6.0  ;;  %v384_v45 = vld [vmem:[#allocation2 + $0xb38] sm:$0xff] }
 0x144   :  { %1874 = vst [vmem:[#allocation5 + $0x9c8] sm:$0xff] %v1362_v54  ;;  %v875_v54 = vmax.f32 %v363_v46, 0.0  ;;  %v1385_v59 = vmin.f32 %v873_v48, 6.0  ;;  %v385_v48 = vld [vmem:[#allocation2 + $0xb40] sm:$0xff] }
 0x145   :  { %1875 = vst [vmem:[#allocation5 + $0x9d0] sm:$0xff] %v1363_v57  ;;  %v876_v57 = vmax.f32 %v364_v49, 0.0  ;;  %v1386_v62 = vmin.f32 %v874_v51, 6.0  ;;  %v386_v51 = vld [vmem:[#allocation2 + $0xb48] sm:$0xff] }
 0x146   :  { %1876 = vst [vmem:[#allocation5 + $0x9d8] sm:$0xff] %v1364_v60  ;;  %v877_v60 = vmax.f32 %v365_v52, 0.0  ;;  %v1387_v1 = vmin.f32 %v875_v54, 6.0  ;;  %v387_v54 = vld [vmem:[#allocation2 + $0xb50] sm:$0xff] }
 0x147   :  { %1877 = vst [vmem:[#allocation5 + $0x9e0] sm:$0xff] %v1365_v63  ;;  %v878_v63 = vmax.f32 %v366_v55, 0.0  ;;  %v1388_v4 = vmin.f32 %v876_v57, 6.0  ;;  %v388_v57 = vld [vmem:[#allocation2 + $0xb58] sm:$0xff] }
 0x148   :  { %1878 = vst [vmem:[#allocation5 + $0x9e8] sm:$0xff] %v1366_v2  ;;  %v879_v2 = vmax.f32 %v367_v58, 0.0  ;;  %v1389_v7 = vmin.f32 %v877_v60, 6.0  ;;  %v389_v60 = vld [vmem:[#allocation2 + $0xb60] sm:$0xff] }
 0x149   :  { %1879 = vst [vmem:[#allocation5 + $0x9f0] sm:$0xff] %v1367_v5  ;;  %v880_v5 = vmax.f32 %v368_v61, 0.0  ;;  %v1390_v10 = vmin.f32 %v878_v63, 6.0  ;;  %v390_v63 = vld [vmem:[#allocation2 + $0xb68] sm:$0xff] }
 0x14a   :  { %1880 = vst [vmem:[#allocation5 + $0x9f8] sm:$0xff] %v1368_v8  ;;  %v881_v8 = vmax.f32 %v369_v0, 0.0  ;;  %v1391_v13 = vmin.f32 %v879_v2, 6.0  ;;  %v391_v2 = vld [vmem:[#allocation2 + $0xb70] sm:$0xff] }
 0x14b   :  { %1881 = vst [vmem:[#allocation5 + $0xa00] sm:$0xff] %v1369_v11  ;;  %v882_v11 = vmax.f32 %v370_v3, 0.0  ;;  %v1392_v16 = vmin.f32 %v880_v5, 6.0  ;;  %v392_v5 = vld [vmem:[#allocation2 + $0xb78] sm:$0xff] }
 0x14c   :  { %1882 = vst [vmem:[#allocation5 + $0xa08] sm:$0xff] %v1370_v14  ;;  %v883_v14 = vmax.f32 %v371_v6, 0.0  ;;  %v1393_v19 = vmin.f32 %v881_v8, 6.0  ;;  %v393_v8 = vld [vmem:[#allocation2 + $0xb80] sm:$0xff] }
 0x14d   :  { %1883 = vst [vmem:[#allocation5 + $0xa10] sm:$0xff] %v1371_v17  ;;  %v884_v17 = vmax.f32 %v372_v9, 0.0  ;;  %v1394_v22 = vmin.f32 %v882_v11, 6.0  ;;  %v394_v11 = vld [vmem:[#allocation2 + $0xb88] sm:$0xff] }
 0x14e   :  { %1884 = vst [vmem:[#allocation5 + $0xa18] sm:$0xff] %v1372_v20  ;;  %v885_v20 = vmax.f32 %v373_v12, 0.0  ;;  %v1395_v25 = vmin.f32 %v883_v14, 6.0  ;;  %v395_v14 = vld [vmem:[#allocation2 + $0xb90] sm:$0xff] }
 0x14f   :  { %1885 = vst [vmem:[#allocation5 + $0xa20] sm:$0xff] %v1373_v23  ;;  %v886_v23 = vmax.f32 %v374_v15, 0.0  ;;  %v1396_v28 = vmin.f32 %v884_v17, 6.0  ;;  %v396_v17 = vld [vmem:[#allocation2 + $0xb98] sm:$0xff] }
 0x150   :  { %1886 = vst [vmem:[#allocation5 + $0xa28] sm:$0xff] %v1374_v26  ;;  %v887_v26 = vmax.f32 %v375_v18, 0.0  ;;  %v1397_v31 = vmin.f32 %v885_v20, 6.0  ;;  %v397_v20 = vld [vmem:[#allocation2 + $0xba0] sm:$0xff] }
 0x151   :  { %1887 = vst [vmem:[#allocation5 + $0xa30] sm:$0xff] %v1375_v29  ;;  %v888_v29 = vmax.f32 %v376_v21, 0.0  ;;  %v1398_v34 = vmin.f32 %v886_v23, 6.0  ;;  %v398_v23 = vld [vmem:[#allocation2 + $0xba8] sm:$0xff] }
 0x152   :  { %1888 = vst [vmem:[#allocation5 + $0xa38] sm:$0xff] %v1376_v32  ;;  %v889_v32 = vmax.f32 %v377_v24, 0.0  ;;  %v1399_v37 = vmin.f32 %v887_v26, 6.0  ;;  %v399_v26 = vld [vmem:[#allocation2 + $0xbb0] sm:$0xff] }
 0x153   :  { %1889 = vst [vmem:[#allocation5 + $0xa40] sm:$0xff] %v1377_v35  ;;  %v890_v35 = vmax.f32 %v378_v27, 0.0  ;;  %v1400_v40 = vmin.f32 %v888_v29, 6.0  ;;  %v400_v29 = vld [vmem:[#allocation2 + $0xbb8] sm:$0xff] }
 0x154   :  { %1890 = vst [vmem:[#allocation5 + $0xa48] sm:$0xff] %v1378_v38  ;;  %v891_v38 = vmax.f32 %v379_v30, 0.0  ;;  %v1401_v43 = vmin.f32 %v889_v32, 6.0  ;;  %v401_v32 = vld [vmem:[#allocation2 + $0xbc0] sm:$0xff] }
 0x155   :  { %1891 = vst [vmem:[#allocation5 + $0xa50] sm:$0xff] %v1379_v41  ;;  %v892_v41 = vmax.f32 %v380_v33, 0.0  ;;  %v1402_v46 = vmin.f32 %v890_v35, 6.0  ;;  %v402_v35 = vld [vmem:[#allocation2 + $0xbc8] sm:$0xff] }
 0x156   :  { %1892 = vst [vmem:[#allocation5 + $0xa58] sm:$0xff] %v1380_v44  ;;  %v893_v44 = vmax.f32 %v381_v36, 0.0  ;;  %v1403_v49 = vmin.f32 %v891_v38, 6.0  ;;  %v403_v38 = vld [vmem:[#allocation2 + $0xbd0] sm:$0xff] }
 0x157   :  { %1893 = vst [vmem:[#allocation5 + $0xa60] sm:$0xff] %v1381_v47  ;;  %v894_v47 = vmax.f32 %v382_v39, 0.0  ;;  %v1404_v52 = vmin.f32 %v892_v41, 6.0  ;;  %v404_v41 = vld [vmem:[#allocation2 + $0xbd8] sm:$0xff] }
 0x158   :  { %1894 = vst [vmem:[#allocation5 + $0xa68] sm:$0xff] %v1382_v50  ;;  %v895_v50 = vmax.f32 %v383_v42, 0.0  ;;  %v1405_v55 = vmin.f32 %v893_v44, 6.0  ;;  %v405_v44 = vld [vmem:[#allocation2 + $0xbe0] sm:$0xff] }
 0x159   :  { %1895 = vst [vmem:[#allocation5 + $0xa70] sm:$0xff] %v1383_v53  ;;  %v896_v53 = vmax.f32 %v384_v45, 0.0  ;;  %v1406_v58 = vmin.f32 %v894_v47, 6.0  ;;  %v406_v47 = vld [vmem:[#allocation2 + $0xbe8] sm:$0xff] }
 0x15a   :  { %1896 = vst [vmem:[#allocation5 + $0xa78] sm:$0xff] %v1384_v56  ;;  %v897_v56 = vmax.f32 %v385_v48, 0.0  ;;  %v1407_v61 = vmin.f32 %v895_v50, 6.0  ;;  %v407_v50 = vld [vmem:[#allocation2 + $0xbf0] sm:$0xff] }
 0x15b   :  { %1897 = vst [vmem:[#allocation5 + $0xa80] sm:$0xff] %v1385_v59  ;;  %v898_v59 = vmax.f32 %v386_v51, 0.0  ;;  %v1408_v0 = vmin.f32 %v896_v53, 6.0  ;;  %v408_v53 = vld [vmem:[#allocation2 + $0xbf8] sm:$0xff] }
 0x15c   :  { %1898 = vst [vmem:[#allocation5 + $0xa88] sm:$0xff] %v1386_v62  ;;  %v899_v62 = vmax.f32 %v387_v54, 0.0  ;;  %v1409_v3 = vmin.f32 %v897_v56, 6.0  ;;  %v409_v56 = vld [vmem:[#allocation2 + $0xc00] sm:$0xff] }
 0x15d   :  { %1899 = vst [vmem:[#allocation5 + $0xa90] sm:$0xff] %v1387_v1  ;;  %v900_v1 = vmax.f32 %v388_v57, 0.0  ;;  %v1410_v6 = vmin.f32 %v898_v59, 6.0  ;;  %v410_v59 = vld [vmem:[#allocation2 + $0xc08] sm:$0xff] }
 0x15e   :  { %1900 = vst [vmem:[#allocation5 + $0xa98] sm:$0xff] %v1388_v4  ;;  %v901_v4 = vmax.f32 %v389_v60, 0.0  ;;  %v1411_v9 = vmin.f32 %v899_v62, 6.0  ;;  %v411_v62 = vld [vmem:[#allocation2 + $0xc10] sm:$0xff] }
 0x15f   :  { %1901 = vst [vmem:[#allocation5 + $0xaa0] sm:$0xff] %v1389_v7  ;;  %v902_v7 = vmax.f32 %v390_v63, 0.0  ;;  %v1412_v12 = vmin.f32 %v900_v1, 6.0  ;;  %v412_v1 = vld [vmem:[#allocation2 + $0xc18] sm:$0xff] }
 0x160   :  { %1902 = vst [vmem:[#allocation5 + $0xaa8] sm:$0xff] %v1390_v10  ;;  %v903_v10 = vmax.f32 %v391_v2, 0.0  ;;  %v1413_v15 = vmin.f32 %v901_v4, 6.0  ;;  %v413_v4 = vld [vmem:[#allocation2 + $0xc20] sm:$0xff] }
 0x161   :  { %1903 = vst [vmem:[#allocation5 + $0xab0] sm:$0xff] %v1391_v13  ;;  %v904_v13 = vmax.f32 %v392_v5, 0.0  ;;  %v1414_v18 = vmin.f32 %v902_v7, 6.0  ;;  %v414_v7 = vld [vmem:[#allocation2 + $0xc28] sm:$0xff] }
 0x162   :  { %1904 = vst [vmem:[#allocation5 + $0xab8] sm:$0xff] %v1392_v16  ;;  %v905_v16 = vmax.f32 %v393_v8, 0.0  ;;  %v1415_v21 = vmin.f32 %v903_v10, 6.0  ;;  %v415_v10 = vld [vmem:[#allocation2 + $0xc30] sm:$0xff] }
 0x163   :  { %1905 = vst [vmem:[#allocation5 + $0xac0] sm:$0xff] %v1393_v19  ;;  %v906_v19 = vmax.f32 %v394_v11, 0.0  ;;  %v1416_v24 = vmin.f32 %v904_v13, 6.0  ;;  %v416_v13 = vld [vmem:[#allocation2 + $0xc38] sm:$0xff] }
 0x164   :  { %1906 = vst [vmem:[#allocation5 + $0xac8] sm:$0xff] %v1394_v22  ;;  %v907_v22 = vmax.f32 %v395_v14, 0.0  ;;  %v1417_v27 = vmin.f32 %v905_v16, 6.0  ;;  %v417_v16 = vld [vmem:[#allocation2 + $0xc40] sm:$0xff] }
 0x165   :  { %1907 = vst [vmem:[#allocation5 + $0xad0] sm:$0xff] %v1395_v25  ;;  %v908_v25 = vmax.f32 %v396_v17, 0.0  ;;  %v1418_v30 = vmin.f32 %v906_v19, 6.0  ;;  %v418_v19 = vld [vmem:[#allocation2 + $0xc48] sm:$0xff] }
 0x166   :  { %1908 = vst [vmem:[#allocation5 + $0xad8] sm:$0xff] %v1396_v28  ;;  %v909_v28 = vmax.f32 %v397_v20, 0.0  ;;  %v1419_v33 = vmin.f32 %v907_v22, 6.0  ;;  %v419_v22 = vld [vmem:[#allocation2 + $0xc50] sm:$0xff] }
 0x167   :  { %1909 = vst [vmem:[#allocation5 + $0xae0] sm:$0xff] %v1397_v31  ;;  %v910_v31 = vmax.f32 %v398_v23, 0.0  ;;  %v1420_v36 = vmin.f32 %v908_v25, 6.0  ;;  %v420_v25 = vld [vmem:[#allocation2 + $0xc58] sm:$0xff] }
 0x168   :  { %1910 = vst [vmem:[#allocation5 + $0xae8] sm:$0xff] %v1398_v34  ;;  %v911_v34 = vmax.f32 %v399_v26, 0.0  ;;  %v1421_v39 = vmin.f32 %v909_v28, 6.0  ;;  %v421_v28 = vld [vmem:[#allocation2 + $0xc60] sm:$0xff] }
 0x169   :  { %1911 = vst [vmem:[#allocation5 + $0xaf0] sm:$0xff] %v1399_v37  ;;  %v912_v37 = vmax.f32 %v400_v29, 0.0  ;;  %v1422_v42 = vmin.f32 %v910_v31, 6.0  ;;  %v422_v31 = vld [vmem:[#allocation2 + $0xc68] sm:$0xff] }
 0x16a   :  { %1912 = vst [vmem:[#allocation5 + $0xaf8] sm:$0xff] %v1400_v40  ;;  %v913_v40 = vmax.f32 %v401_v32, 0.0  ;;  %v1423_v45 = vmin.f32 %v911_v34, 6.0  ;;  %v423_v34 = vld [vmem:[#allocation2 + $0xc70] sm:$0xff] }
 0x16b   :  { %1913 = vst [vmem:[#allocation5 + $0xb00] sm:$0xff] %v1401_v43  ;;  %v914_v43 = vmax.f32 %v402_v35, 0.0  ;;  %v1424_v48 = vmin.f32 %v912_v37, 6.0  ;;  %v424_v37 = vld [vmem:[#allocation2 + $0xc78] sm:$0xff] }
 0x16c   :  { %1914 = vst [vmem:[#allocation5 + $0xb08] sm:$0xff] %v1402_v46  ;;  %v915_v46 = vmax.f32 %v403_v38, 0.0  ;;  %v1425_v51 = vmin.f32 %v913_v40, 6.0  ;;  %v425_v40 = vld [vmem:[#allocation2 + $0xc80] sm:$0xff] }
 0x16d   :  { %1915 = vst [vmem:[#allocation5 + $0xb10] sm:$0xff] %v1403_v49  ;;  %v916_v49 = vmax.f32 %v404_v41, 0.0  ;;  %v1426_v54 = vmin.f32 %v914_v43, 6.0  ;;  %v426_v43 = vld [vmem:[#allocation2 + $0xc88] sm:$0xff] }
 0x16e   :  { %1916 = vst [vmem:[#allocation5 + $0xb18] sm:$0xff] %v1404_v52  ;;  %v917_v52 = vmax.f32 %v405_v44, 0.0  ;;  %v1427_v57 = vmin.f32 %v915_v46, 6.0  ;;  %v427_v46 = vld [vmem:[#allocation2 + $0xc90] sm:$0xff] }
 0x16f   :  { %1917 = vst [vmem:[#allocation5 + $0xb20] sm:$0xff] %v1405_v55  ;;  %v918_v55 = vmax.f32 %v406_v47, 0.0  ;;  %v1428_v60 = vmin.f32 %v916_v49, 6.0  ;;  %v428_v49 = vld [vmem:[#allocation2 + $0xc98] sm:$0xff] }
 0x170   :  { %1918 = vst [vmem:[#allocation5 + $0xb28] sm:$0xff] %v1406_v58  ;;  %v919_v58 = vmax.f32 %v407_v50, 0.0  ;;  %v1429_v63 = vmin.f32 %v917_v52, 6.0  ;;  %v429_v52 = vld [vmem:[#allocation2 + $0xca0] sm:$0xff] }
 0x171   :  { %1919 = vst [vmem:[#allocation5 + $0xb30] sm:$0xff] %v1407_v61  ;;  %v920_v61 = vmax.f32 %v408_v53, 0.0  ;;  %v1430_v2 = vmin.f32 %v918_v55, 6.0  ;;  %v430_v55 = vld [vmem:[#allocation2 + $0xca8] sm:$0xff] }
 0x172   :  { %1920 = vst [vmem:[#allocation5 + $0xb38] sm:$0xff] %v1408_v0  ;;  %v921_v0 = vmax.f32 %v409_v56, 0.0  ;;  %v1431_v5 = vmin.f32 %v919_v58, 6.0  ;;  %v431_v58 = vld [vmem:[#allocation2 + $0xcb0] sm:$0xff] }
 0x173   :  { %1921 = vst [vmem:[#allocation5 + $0xb40] sm:$0xff] %v1409_v3  ;;  %v922_v3 = vmax.f32 %v410_v59, 0.0  ;;  %v1432_v8 = vmin.f32 %v920_v61, 6.0  ;;  %v432_v61 = vld [vmem:[#allocation2 + $0xcb8] sm:$0xff] }
 0x174   :  { %1922 = vst [vmem:[#allocation5 + $0xb48] sm:$0xff] %v1410_v6  ;;  %v923_v6 = vmax.f32 %v411_v62, 0.0  ;;  %v1433_v11 = vmin.f32 %v921_v0, 6.0  ;;  %v433_v0 = vld [vmem:[#allocation2 + $0xcc0] sm:$0xff] }
 0x175   :  { %1923 = vst [vmem:[#allocation5 + $0xb50] sm:$0xff] %v1411_v9  ;;  %v924_v9 = vmax.f32 %v412_v1, 0.0  ;;  %v1434_v14 = vmin.f32 %v922_v3, 6.0  ;;  %v434_v3 = vld [vmem:[#allocation2 + $0xcc8] sm:$0xff] }
 0x176   :  { %1924 = vst [vmem:[#allocation5 + $0xb58] sm:$0xff] %v1412_v12  ;;  %v925_v12 = vmax.f32 %v413_v4, 0.0  ;;  %v1435_v17 = vmin.f32 %v923_v6, 6.0  ;;  %v435_v6 = vld [vmem:[#allocation2 + $0xcd0] sm:$0xff] }
 0x177   :  { %1925 = vst [vmem:[#allocation5 + $0xb60] sm:$0xff] %v1413_v15  ;;  %v926_v15 = vmax.f32 %v414_v7, 0.0  ;;  %v1436_v20 = vmin.f32 %v924_v9, 6.0  ;;  %v436_v9 = vld [vmem:[#allocation2 + $0xcd8] sm:$0xff] }
 0x178   :  { %1926 = vst [vmem:[#allocation5 + $0xb68] sm:$0xff] %v1414_v18  ;;  %v927_v18 = vmax.f32 %v415_v10, 0.0  ;;  %v1437_v23 = vmin.f32 %v925_v12, 6.0  ;;  %v437_v12 = vld [vmem:[#allocation2 + $0xce0] sm:$0xff] }
 0x179   :  { %1927 = vst [vmem:[#allocation5 + $0xb70] sm:$0xff] %v1415_v21  ;;  %v928_v21 = vmax.f32 %v416_v13, 0.0  ;;  %v1438_v26 = vmin.f32 %v926_v15, 6.0  ;;  %v438_v15 = vld [vmem:[#allocation2 + $0xce8] sm:$0xff] }
 0x17a   :  { %1928 = vst [vmem:[#allocation5 + $0xb78] sm:$0xff] %v1416_v24  ;;  %v929_v24 = vmax.f32 %v417_v16, 0.0  ;;  %v1439_v29 = vmin.f32 %v927_v18, 6.0  ;;  %v439_v18 = vld [vmem:[#allocation2 + $0xcf0] sm:$0xff] }
 0x17b   :  { %1929 = vst [vmem:[#allocation5 + $0xb80] sm:$0xff] %v1417_v27  ;;  %v930_v27 = vmax.f32 %v418_v19, 0.0  ;;  %v1440_v32 = vmin.f32 %v928_v21, 6.0  ;;  %v440_v21 = vld [vmem:[#allocation2 + $0xcf8] sm:$0xff] }
 0x17c   :  { %1930 = vst [vmem:[#allocation5 + $0xb88] sm:$0xff] %v1418_v30  ;;  %v931_v30 = vmax.f32 %v419_v22, 0.0  ;;  %v1441_v35 = vmin.f32 %v929_v24, 6.0  ;;  %v441_v24 = vld [vmem:[#allocation2 + $0xd00] sm:$0xff] }
 0x17d   :  { %1931 = vst [vmem:[#allocation5 + $0xb90] sm:$0xff] %v1419_v33  ;;  %v932_v33 = vmax.f32 %v420_v25, 0.0  ;;  %v1442_v38 = vmin.f32 %v930_v27, 6.0  ;;  %v442_v27 = vld [vmem:[#allocation2 + $0xd08] sm:$0xff] }
 0x17e   :  { %1932 = vst [vmem:[#allocation5 + $0xb98] sm:$0xff] %v1420_v36  ;;  %v933_v36 = vmax.f32 %v421_v28, 0.0  ;;  %v1443_v41 = vmin.f32 %v931_v30, 6.0  ;;  %v443_v30 = vld [vmem:[#allocation2 + $0xd10] sm:$0xff] }
 0x17f   :  { %1933 = vst [vmem:[#allocation5 + $0xba0] sm:$0xff] %v1421_v39  ;;  %v934_v39 = vmax.f32 %v422_v31, 0.0  ;;  %v1444_v44 = vmin.f32 %v932_v33, 6.0  ;;  %v444_v33 = vld [vmem:[#allocation2 + $0xd18] sm:$0xff] }
 0x180   :  { %1934 = vst [vmem:[#allocation5 + $0xba8] sm:$0xff] %v1422_v42  ;;  %v935_v42 = vmax.f32 %v423_v34, 0.0  ;;  %v1445_v47 = vmin.f32 %v933_v36, 6.0  ;;  %v445_v36 = vld [vmem:[#allocation2 + $0xd20] sm:$0xff] }
 0x181   :  { %1935 = vst [vmem:[#allocation5 + $0xbb0] sm:$0xff] %v1423_v45  ;;  %v936_v45 = vmax.f32 %v424_v37, 0.0  ;;  %v1446_v50 = vmin.f32 %v934_v39, 6.0  ;;  %v446_v39 = vld [vmem:[#allocation2 + $0xd28] sm:$0xff] }
 0x182   :  { %1936 = vst [vmem:[#allocation5 + $0xbb8] sm:$0xff] %v1424_v48  ;;  %v937_v48 = vmax.f32 %v425_v40, 0.0  ;;  %v1447_v53 = vmin.f32 %v935_v42, 6.0  ;;  %v447_v42 = vld [vmem:[#allocation2 + $0xd30] sm:$0xff] }
 0x183   :  { %1937 = vst [vmem:[#allocation5 + $0xbc0] sm:$0xff] %v1425_v51  ;;  %v938_v51 = vmax.f32 %v426_v43, 0.0  ;;  %v1448_v56 = vmin.f32 %v936_v45, 6.0  ;;  %v448_v45 = vld [vmem:[#allocation2 + $0xd38] sm:$0xff] }
 0x184   :  { %1938 = vst [vmem:[#allocation5 + $0xbc8] sm:$0xff] %v1426_v54  ;;  %v939_v54 = vmax.f32 %v427_v46, 0.0  ;;  %v1449_v59 = vmin.f32 %v937_v48, 6.0  ;;  %v449_v48 = vld [vmem:[#allocation2 + $0xd40] sm:$0xff] }
 0x185   :  { %1939 = vst [vmem:[#allocation5 + $0xbd0] sm:$0xff] %v1427_v57  ;;  %v940_v57 = vmax.f32 %v428_v49, 0.0  ;;  %v1450_v62 = vmin.f32 %v938_v51, 6.0  ;;  %v450_v51 = vld [vmem:[#allocation2 + $0xd48] sm:$0xff] }
 0x186   :  { %1940 = vst [vmem:[#allocation5 + $0xbd8] sm:$0xff] %v1428_v60  ;;  %v941_v60 = vmax.f32 %v429_v52, 0.0  ;;  %v1451_v1 = vmin.f32 %v939_v54, 6.0  ;;  %v451_v54 = vld [vmem:[#allocation2 + $0xd50] sm:$0xff] }
 0x187   :  { %1941 = vst [vmem:[#allocation5 + $0xbe0] sm:$0xff] %v1429_v63  ;;  %v942_v63 = vmax.f32 %v430_v55, 0.0  ;;  %v1452_v4 = vmin.f32 %v940_v57, 6.0  ;;  %v452_v57 = vld [vmem:[#allocation2 + $0xd58] sm:$0xff] }
 0x188   :  { %1942 = vst [vmem:[#allocation5 + $0xbe8] sm:$0xff] %v1430_v2  ;;  %v943_v2 = vmax.f32 %v431_v58, 0.0  ;;  %v1453_v7 = vmin.f32 %v941_v60, 6.0  ;;  %v453_v60 = vld [vmem:[#allocation2 + $0xd60] sm:$0xff] }
 0x189   :  { %1943 = vst [vmem:[#allocation5 + $0xbf0] sm:$0xff] %v1431_v5  ;;  %v944_v5 = vmax.f32 %v432_v61, 0.0  ;;  %v1454_v10 = vmin.f32 %v942_v63, 6.0  ;;  %v454_v63 = vld [vmem:[#allocation2 + $0xd68] sm:$0xff] }
 0x18a   :  { %1944 = vst [vmem:[#allocation5 + $0xbf8] sm:$0xff] %v1432_v8  ;;  %v945_v8 = vmax.f32 %v433_v0, 0.0  ;;  %v1455_v13 = vmin.f32 %v943_v2, 6.0  ;;  %v455_v2 = vld [vmem:[#allocation2 + $0xd70] sm:$0xff] }
 0x18b   :  { %1945 = vst [vmem:[#allocation5 + $0xc00] sm:$0xff] %v1433_v11  ;;  %v946_v11 = vmax.f32 %v434_v3, 0.0  ;;  %v1456_v16 = vmin.f32 %v944_v5, 6.0  ;;  %v456_v5 = vld [vmem:[#allocation2 + $0xd78] sm:$0xff] }
 0x18c   :  { %1946 = vst [vmem:[#allocation5 + $0xc08] sm:$0xff] %v1434_v14  ;;  %v947_v14 = vmax.f32 %v435_v6, 0.0  ;;  %v1457_v19 = vmin.f32 %v945_v8, 6.0  ;;  %v457_v8 = vld [vmem:[#allocation2 + $0xd80] sm:$0xff] }
 0x18d   :  { %1947 = vst [vmem:[#allocation5 + $0xc10] sm:$0xff] %v1435_v17  ;;  %v948_v17 = vmax.f32 %v436_v9, 0.0  ;;  %v1458_v22 = vmin.f32 %v946_v11, 6.0  ;;  %v458_v11 = vld [vmem:[#allocation2 + $0xd88] sm:$0xff] }
 0x18e   :  { %1948 = vst [vmem:[#allocation5 + $0xc18] sm:$0xff] %v1436_v20  ;;  %v949_v20 = vmax.f32 %v437_v12, 0.0  ;;  %v1459_v25 = vmin.f32 %v947_v14, 6.0  ;;  %v459_v14 = vld [vmem:[#allocation2 + $0xd90] sm:$0xff] }
 0x18f   :  { %1949 = vst [vmem:[#allocation5 + $0xc20] sm:$0xff] %v1437_v23  ;;  %v950_v23 = vmax.f32 %v438_v15, 0.0  ;;  %v1460_v28 = vmin.f32 %v948_v17, 6.0  ;;  %v460_v17 = vld [vmem:[#allocation2 + $0xd98] sm:$0xff] }
 0x190   :  { %1950 = vst [vmem:[#allocation5 + $0xc28] sm:$0xff] %v1438_v26  ;;  %v951_v26 = vmax.f32 %v439_v18, 0.0  ;;  %v1461_v31 = vmin.f32 %v949_v20, 6.0  ;;  %v461_v20 = vld [vmem:[#allocation2 + $0xda0] sm:$0xff] }
 0x191   :  { %1951 = vst [vmem:[#allocation5 + $0xc30] sm:$0xff] %v1439_v29  ;;  %v952_v29 = vmax.f32 %v440_v21, 0.0  ;;  %v1462_v34 = vmin.f32 %v950_v23, 6.0  ;;  %v462_v23 = vld [vmem:[#allocation2 + $0xda8] sm:$0xff] }
 0x192   :  { %1952 = vst [vmem:[#allocation5 + $0xc38] sm:$0xff] %v1440_v32  ;;  %v953_v32 = vmax.f32 %v441_v24, 0.0  ;;  %v1463_v37 = vmin.f32 %v951_v26, 6.0  ;;  %v463_v26 = vld [vmem:[#allocation2 + $0xdb0] sm:$0xff] }
 0x193   :  { %1953 = vst [vmem:[#allocation5 + $0xc40] sm:$0xff] %v1441_v35  ;;  %v954_v35 = vmax.f32 %v442_v27, 0.0  ;;  %v1464_v40 = vmin.f32 %v952_v29, 6.0  ;;  %v464_v29 = vld [vmem:[#allocation2 + $0xdb8] sm:$0xff] }
 0x194   :  { %1954 = vst [vmem:[#allocation5 + $0xc48] sm:$0xff] %v1442_v38  ;;  %v955_v38 = vmax.f32 %v443_v30, 0.0  ;;  %v1465_v43 = vmin.f32 %v953_v32, 6.0  ;;  %v465_v32 = vld [vmem:[#allocation2 + $0xdc0] sm:$0xff] }
 0x195   :  { %1955 = vst [vmem:[#allocation5 + $0xc50] sm:$0xff] %v1443_v41  ;;  %v956_v41 = vmax.f32 %v444_v33, 0.0  ;;  %v1466_v46 = vmin.f32 %v954_v35, 6.0  ;;  %v466_v35 = vld [vmem:[#allocation2 + $0xdc8] sm:$0xff] }
 0x196   :  { %1956 = vst [vmem:[#allocation5 + $0xc58] sm:$0xff] %v1444_v44  ;;  %v957_v44 = vmax.f32 %v445_v36, 0.0  ;;  %v1467_v49 = vmin.f32 %v955_v38, 6.0  ;;  %v467_v38 = vld [vmem:[#allocation2 + $0xdd0] sm:$0xff] }
 0x197   :  { %1957 = vst [vmem:[#allocation5 + $0xc60] sm:$0xff] %v1445_v47  ;;  %v958_v47 = vmax.f32 %v446_v39, 0.0  ;;  %v1468_v52 = vmin.f32 %v956_v41, 6.0  ;;  %v468_v41 = vld [vmem:[#allocation2 + $0xdd8] sm:$0xff] }
 0x198   :  { %1958 = vst [vmem:[#allocation5 + $0xc68] sm:$0xff] %v1446_v50  ;;  %v959_v50 = vmax.f32 %v447_v42, 0.0  ;;  %v1469_v55 = vmin.f32 %v957_v44, 6.0  ;;  %v469_v44 = vld [vmem:[#allocation2 + $0xde0] sm:$0xff] }
 0x199   :  { %1959 = vst [vmem:[#allocation5 + $0xc70] sm:$0xff] %v1447_v53  ;;  %v960_v53 = vmax.f32 %v448_v45, 0.0  ;;  %v1470_v58 = vmin.f32 %v958_v47, 6.0  ;;  %v470_v47 = vld [vmem:[#allocation2 + $0xde8] sm:$0xff] }
 0x19a   :  { %1960 = vst [vmem:[#allocation5 + $0xc78] sm:$0xff] %v1448_v56  ;;  %v961_v56 = vmax.f32 %v449_v48, 0.0  ;;  %v1471_v61 = vmin.f32 %v959_v50, 6.0  ;;  %v471_v50 = vld [vmem:[#allocation2 + $0xdf0] sm:$0xff] }
 0x19b   :  { %1961 = vst [vmem:[#allocation5 + $0xc80] sm:$0xff] %v1449_v59  ;;  %v962_v59 = vmax.f32 %v450_v51, 0.0  ;;  %v1472_v0 = vmin.f32 %v960_v53, 6.0  ;;  %v472_v53 = vld [vmem:[#allocation2 + $0xdf8] sm:$0xff] }
 0x19c   :  { %1962 = vst [vmem:[#allocation5 + $0xc88] sm:$0xff] %v1450_v62  ;;  %v963_v62 = vmax.f32 %v451_v54, 0.0  ;;  %v1473_v3 = vmin.f32 %v961_v56, 6.0  ;;  %v473_v56 = vld [vmem:[#allocation2 + $0xe00] sm:$0xff] }
 0x19d   :  { %1963 = vst [vmem:[#allocation5 + $0xc90] sm:$0xff] %v1451_v1  ;;  %v964_v1 = vmax.f32 %v452_v57, 0.0  ;;  %v1474_v6 = vmin.f32 %v962_v59, 6.0  ;;  %v474_v59 = vld [vmem:[#allocation2 + $0xe08] sm:$0xff] }
 0x19e   :  { %1964 = vst [vmem:[#allocation5 + $0xc98] sm:$0xff] %v1452_v4  ;;  %v965_v4 = vmax.f32 %v453_v60, 0.0  ;;  %v1475_v9 = vmin.f32 %v963_v62, 6.0  ;;  %v475_v62 = vld [vmem:[#allocation2 + $0xe10] sm:$0xff] }
 0x19f   :  { %1965 = vst [vmem:[#allocation5 + $0xca0] sm:$0xff] %v1453_v7  ;;  %v966_v7 = vmax.f32 %v454_v63, 0.0  ;;  %v1476_v12 = vmin.f32 %v964_v1, 6.0  ;;  %v476_v1 = vld [vmem:[#allocation2 + $0xe18] sm:$0xff] }
 0x1a0   :  { %1966 = vst [vmem:[#allocation5 + $0xca8] sm:$0xff] %v1454_v10  ;;  %v967_v10 = vmax.f32 %v455_v2, 0.0  ;;  %v1477_v15 = vmin.f32 %v965_v4, 6.0  ;;  %v477_v4 = vld [vmem:[#allocation2 + $0xe20] sm:$0xff] }
 0x1a1   :  { %1967 = vst [vmem:[#allocation5 + $0xcb0] sm:$0xff] %v1455_v13  ;;  %v968_v13 = vmax.f32 %v456_v5, 0.0  ;;  %v1478_v18 = vmin.f32 %v966_v7, 6.0  ;;  %v478_v7 = vld [vmem:[#allocation2 + $0xe28] sm:$0xff] }
 0x1a2   :  { %1968 = vst [vmem:[#allocation5 + $0xcb8] sm:$0xff] %v1456_v16  ;;  %v969_v16 = vmax.f32 %v457_v8, 0.0  ;;  %v1479_v21 = vmin.f32 %v967_v10, 6.0  ;;  %v479_v10 = vld [vmem:[#allocation2 + $0xe30] sm:$0xff] }
 0x1a3   :  { %1969 = vst [vmem:[#allocation5 + $0xcc0] sm:$0xff] %v1457_v19  ;;  %v970_v19 = vmax.f32 %v458_v11, 0.0  ;;  %v1480_v24 = vmin.f32 %v968_v13, 6.0  ;;  %v480_v13 = vld [vmem:[#allocation2 + $0xe38] sm:$0xff] }
 0x1a4   :  { %1970 = vst [vmem:[#allocation5 + $0xcc8] sm:$0xff] %v1458_v22  ;;  %v971_v22 = vmax.f32 %v459_v14, 0.0  ;;  %v1481_v27 = vmin.f32 %v969_v16, 6.0  ;;  %v481_v16 = vld [vmem:[#allocation2 + $0xe40] sm:$0xff] }
 0x1a5   :  { %1971 = vst [vmem:[#allocation5 + $0xcd0] sm:$0xff] %v1459_v25  ;;  %v972_v25 = vmax.f32 %v460_v17, 0.0  ;;  %v1482_v30 = vmin.f32 %v970_v19, 6.0  ;;  %v482_v19 = vld [vmem:[#allocation2 + $0xe48] sm:$0xff] }
 0x1a6   :  { %1972 = vst [vmem:[#allocation5 + $0xcd8] sm:$0xff] %v1460_v28  ;;  %v973_v28 = vmax.f32 %v461_v20, 0.0  ;;  %v1483_v33 = vmin.f32 %v971_v22, 6.0  ;;  %v483_v22 = vld [vmem:[#allocation2 + $0xe50] sm:$0xff] }
 0x1a7   :  { %1973 = vst [vmem:[#allocation5 + $0xce0] sm:$0xff] %v1461_v31  ;;  %v974_v31 = vmax.f32 %v462_v23, 0.0  ;;  %v1484_v36 = vmin.f32 %v972_v25, 6.0  ;;  %v484_v25 = vld [vmem:[#allocation2 + $0xe58] sm:$0xff] }
 0x1a8   :  { %1974 = vst [vmem:[#allocation5 + $0xce8] sm:$0xff] %v1462_v34  ;;  %v975_v34 = vmax.f32 %v463_v26, 0.0  ;;  %v1485_v39 = vmin.f32 %v973_v28, 6.0  ;;  %v485_v28 = vld [vmem:[#allocation2 + $0xe60] sm:$0xff] }
 0x1a9   :  { %1975 = vst [vmem:[#allocation5 + $0xcf0] sm:$0xff] %v1463_v37  ;;  %v976_v37 = vmax.f32 %v464_v29, 0.0  ;;  %v1486_v42 = vmin.f32 %v974_v31, 6.0  ;;  %v486_v31 = vld [vmem:[#allocation2 + $0xe68] sm:$0xff] }
 0x1aa   :  { %1976 = vst [vmem:[#allocation5 + $0xcf8] sm:$0xff] %v1464_v40  ;;  %v977_v40 = vmax.f32 %v465_v32, 0.0  ;;  %v1487_v45 = vmin.f32 %v975_v34, 6.0  ;;  %v487_v34 = vld [vmem:[#allocation2 + $0xe70] sm:$0xff] }
 0x1ab   :  { %1977 = vst [vmem:[#allocation5 + $0xd00] sm:$0xff] %v1465_v43  ;;  %v978_v43 = vmax.f32 %v466_v35, 0.0  ;;  %v1488_v48 = vmin.f32 %v976_v37, 6.0  ;;  %v488_v37 = vld [vmem:[#allocation2 + $0xe78] sm:$0xff] }
 0x1ac   :  { %1978 = vst [vmem:[#allocation5 + $0xd08] sm:$0xff] %v1466_v46  ;;  %v979_v46 = vmax.f32 %v467_v38, 0.0  ;;  %v1489_v51 = vmin.f32 %v977_v40, 6.0  ;;  %v489_v40 = vld [vmem:[#allocation2 + $0xe80] sm:$0xff] }
 0x1ad   :  { %1979 = vst [vmem:[#allocation5 + $0xd10] sm:$0xff] %v1467_v49  ;;  %v980_v49 = vmax.f32 %v468_v41, 0.0  ;;  %v1490_v54 = vmin.f32 %v978_v43, 6.0  ;;  %v490_v43 = vld [vmem:[#allocation2 + $0xe88] sm:$0xff] }
 0x1ae   :  { %1980 = vst [vmem:[#allocation5 + $0xd18] sm:$0xff] %v1468_v52  ;;  %v981_v52 = vmax.f32 %v469_v44, 0.0  ;;  %v1491_v57 = vmin.f32 %v979_v46, 6.0  ;;  %v491_v46 = vld [vmem:[#allocation2 + $0xe90] sm:$0xff] }
 0x1af   :  { %1981 = vst [vmem:[#allocation5 + $0xd20] sm:$0xff] %v1469_v55  ;;  %v982_v55 = vmax.f32 %v470_v47, 0.0  ;;  %v1492_v60 = vmin.f32 %v980_v49, 6.0  ;;  %v492_v49 = vld [vmem:[#allocation2 + $0xe98] sm:$0xff] }
 0x1b0   :  { %1982 = vst [vmem:[#allocation5 + $0xd28] sm:$0xff] %v1470_v58  ;;  %v983_v58 = vmax.f32 %v471_v50, 0.0  ;;  %v1493_v63 = vmin.f32 %v981_v52, 6.0  ;;  %v493_v52 = vld [vmem:[#allocation2 + $0xea0] sm:$0xff] }
 0x1b1   :  { %1983 = vst [vmem:[#allocation5 + $0xd30] sm:$0xff] %v1471_v61  ;;  %v984_v61 = vmax.f32 %v472_v53, 0.0  ;;  %v1494_v2 = vmin.f32 %v982_v55, 6.0  ;;  %v494_v55 = vld [vmem:[#allocation2 + $0xea8] sm:$0xff] }
 0x1b2   :  { %1984 = vst [vmem:[#allocation5 + $0xd38] sm:$0xff] %v1472_v0  ;;  %v985_v0 = vmax.f32 %v473_v56, 0.0  ;;  %v1495_v5 = vmin.f32 %v983_v58, 6.0  ;;  %v495_v58 = vld [vmem:[#allocation2 + $0xeb0] sm:$0xff] }
 0x1b3   :  { %1985 = vst [vmem:[#allocation5 + $0xd40] sm:$0xff] %v1473_v3  ;;  %v986_v3 = vmax.f32 %v474_v59, 0.0  ;;  %v1496_v8 = vmin.f32 %v984_v61, 6.0  ;;  %v496_v61 = vld [vmem:[#allocation2 + $0xeb8] sm:$0xff] }
 0x1b4   :  { %1986 = vst [vmem:[#allocation5 + $0xd48] sm:$0xff] %v1474_v6  ;;  %v987_v6 = vmax.f32 %v475_v62, 0.0  ;;  %v1497_v11 = vmin.f32 %v985_v0, 6.0  ;;  %v497_v0 = vld [vmem:[#allocation2 + $0xec0] sm:$0xff] }
 0x1b5   :  { %1987 = vst [vmem:[#allocation5 + $0xd50] sm:$0xff] %v1475_v9  ;;  %v988_v9 = vmax.f32 %v476_v1, 0.0  ;;  %v1498_v14 = vmin.f32 %v986_v3, 6.0  ;;  %v498_v3 = vld [vmem:[#allocation2 + $0xec8] sm:$0xff] }
 0x1b6   :  { %1988 = vst [vmem:[#allocation5 + $0xd58] sm:$0xff] %v1476_v12  ;;  %v989_v12 = vmax.f32 %v477_v4, 0.0  ;;  %v1499_v17 = vmin.f32 %v987_v6, 6.0  ;;  %v499_v6 = vld [vmem:[#allocation2 + $0xed0] sm:$0xff] }
 0x1b7   :  { %1989 = vst [vmem:[#allocation5 + $0xd60] sm:$0xff] %v1477_v15  ;;  %v990_v15 = vmax.f32 %v478_v7, 0.0  ;;  %v1500_v20 = vmin.f32 %v988_v9, 6.0  ;;  %v500_v9 = vld [vmem:[#allocation2 + $0xed8] sm:$0xff] }
 0x1b8   :  { %1990 = vst [vmem:[#allocation5 + $0xd68] sm:$0xff] %v1478_v18  ;;  %v991_v18 = vmax.f32 %v479_v10, 0.0  ;;  %v1501_v23 = vmin.f32 %v989_v12, 6.0  ;;  %v501_v12 = vld [vmem:[#allocation2 + $0xee0] sm:$0xff] }
 0x1b9   :  { %1991 = vst [vmem:[#allocation5 + $0xd70] sm:$0xff] %v1479_v21  ;;  %v992_v21 = vmax.f32 %v480_v13, 0.0  ;;  %v1502_v26 = vmin.f32 %v990_v15, 6.0  ;;  %v502_v15 = vld [vmem:[#allocation2 + $0xee8] sm:$0xff] }
 0x1ba   :  { %1992 = vst [vmem:[#allocation5 + $0xd78] sm:$0xff] %v1480_v24  ;;  %v993_v24 = vmax.f32 %v481_v16, 0.0  ;;  %v1503_v29 = vmin.f32 %v991_v18, 6.0  ;;  %v503_v18 = vld [vmem:[#allocation2 + $0xef0] sm:$0xff] }
 0x1bb   :  { %1993 = vst [vmem:[#allocation5 + $0xd80] sm:$0xff] %v1481_v27  ;;  %v994_v27 = vmax.f32 %v482_v19, 0.0  ;;  %v1504_v32 = vmin.f32 %v992_v21, 6.0  ;;  %v504_v21 = vld [vmem:[#allocation2 + $0xef8] sm:$0xff] }
 0x1bc   :  { %1994 = vst [vmem:[#allocation5 + $0xd88] sm:$0xff] %v1482_v30  ;;  %v995_v30 = vmax.f32 %v483_v22, 0.0  ;;  %v1505_v35 = vmin.f32 %v993_v24, 6.0  ;;  %v505_v24 = vld [vmem:[#allocation2 + $0xf00] sm:$0xff] }
 0x1bd   :  { %1995 = vst [vmem:[#allocation5 + $0xd90] sm:$0xff] %v1483_v33  ;;  %v996_v33 = vmax.f32 %v484_v25, 0.0  ;;  %v1506_v38 = vmin.f32 %v994_v27, 6.0  ;;  %v506_v27 = vld [vmem:[#allocation2 + $0xf08] sm:$0xff] }
 0x1be   :  { %1996 = vst [vmem:[#allocation5 + $0xd98] sm:$0xff] %v1484_v36  ;;  %v997_v36 = vmax.f32 %v485_v28, 0.0  ;;  %v1507_v41 = vmin.f32 %v995_v30, 6.0  ;;  %v507_v30 = vld [vmem:[#allocation2 + $0xf10] sm:$0xff] }
 0x1bf   :  { %1997 = vst [vmem:[#allocation5 + $0xda0] sm:$0xff] %v1485_v39  ;;  %v998_v39 = vmax.f32 %v486_v31, 0.0  ;;  %v1508_v44 = vmin.f32 %v996_v33, 6.0  ;;  %v508_v33 = vld [vmem:[#allocation2 + $0xf18] sm:$0xff] }
 0x1c0   :  { %1998 = vst [vmem:[#allocation5 + $0xda8] sm:$0xff] %v1486_v42  ;;  %v999_v42 = vmax.f32 %v487_v34, 0.0  ;;  %v1509_v47 = vmin.f32 %v997_v36, 6.0  ;;  %v509_v36 = vld [vmem:[#allocation2 + $0xf20] sm:$0xff] }
 0x1c1   :  { %1999 = vst [vmem:[#allocation5 + $0xdb0] sm:$0xff] %v1487_v45  ;;  %v1000_v45 = vmax.f32 %v488_v37, 0.0  ;;  %v1510_v50 = vmin.f32 %v998_v39, 6.0  ;;  %v510_v39 = vld [vmem:[#allocation2 + $0xf28] sm:$0xff] }
 0x1c2   :  { %2000 = vst [vmem:[#allocation5 + $0xdb8] sm:$0xff] %v1488_v48  ;;  %v1001_v48 = vmax.f32 %v489_v40, 0.0  ;;  %v1511_v53 = vmin.f32 %v999_v42, 6.0  ;;  %v511_v42 = vld [vmem:[#allocation2 + $0xf30] sm:$0xff] }
 0x1c3   :  { %2001 = vst [vmem:[#allocation5 + $0xdc0] sm:$0xff] %v1489_v51  ;;  %v1002_v51 = vmax.f32 %v490_v43, 0.0  ;;  %v1512_v56 = vmin.f32 %v1000_v45, 6.0  ;;  %v512_v45 = vld [vmem:[#allocation2 + $0xf38] sm:$0xff] }
 0x1c4   :  { %2002 = vst [vmem:[#allocation5 + $0xdc8] sm:$0xff] %v1490_v54  ;;  %v1003_v54 = vmax.f32 %v491_v46, 0.0  ;;  %v1513_v59 = vmin.f32 %v1001_v48, 6.0  ;;  %v513_v48 = vld [vmem:[#allocation2 + $0xf40] sm:$0xff] }
 0x1c5   :  { %2003 = vst [vmem:[#allocation5 + $0xdd0] sm:$0xff] %v1491_v57  ;;  %v1004_v57 = vmax.f32 %v492_v49, 0.0  ;;  %v1514_v62 = vmin.f32 %v1002_v51, 6.0  ;;  %v514_v51 = vld [vmem:[#allocation2 + $0xf48] sm:$0xff] }
 0x1c6   :  { %2004 = vst [vmem:[#allocation5 + $0xdd8] sm:$0xff] %v1492_v60  ;;  %v1005_v60 = vmax.f32 %v493_v52, 0.0  ;;  %v1515_v1 = vmin.f32 %v1003_v54, 6.0  ;;  %v515_v54 = vld [vmem:[#allocation2 + $0xf50] sm:$0xff] }
 0x1c7   :  { %2005 = vst [vmem:[#allocation5 + $0xde0] sm:$0xff] %v1493_v63  ;;  %v1006_v63 = vmax.f32 %v494_v55, 0.0  ;;  %v1516_v4 = vmin.f32 %v1004_v57, 6.0  ;;  %v516_v57 = vld [vmem:[#allocation2 + $0xf58] sm:$0xff] }
 0x1c8   :  { %2006 = vst [vmem:[#allocation5 + $0xde8] sm:$0xff] %v1494_v2  ;;  %v1007_v2 = vmax.f32 %v495_v58, 0.0  ;;  %v1517_v7 = vmin.f32 %v1005_v60, 6.0  ;;  %v517_v60 = vld [vmem:[#allocation2 + $0xf60] sm:$0xff] }
 0x1c9   :  { %2007 = vst [vmem:[#allocation5 + $0xdf0] sm:$0xff] %v1495_v5  ;;  %v1008_v5 = vmax.f32 %v496_v61, 0.0  ;;  %v1518_v10 = vmin.f32 %v1006_v63, 6.0  ;;  %v518_v63 = vld [vmem:[#allocation2 + $0xf68] sm:$0xff] }
 0x1ca   :  { %2008 = vst [vmem:[#allocation5 + $0xdf8] sm:$0xff] %v1496_v8  ;;  %v1009_v8 = vmax.f32 %v497_v0, 0.0  ;;  %v1519_v13 = vmin.f32 %v1007_v2, 6.0  ;;  %v519_v2 = vld [vmem:[#allocation2 + $0xf70] sm:$0xff] }
 0x1cb   :  { %2009 = vst [vmem:[#allocation5 + $0xe00] sm:$0xff] %v1497_v11  ;;  %v1010_v11 = vmax.f32 %v498_v3, 0.0  ;;  %v1520_v16 = vmin.f32 %v1008_v5, 6.0  ;;  %v520_v5 = vld [vmem:[#allocation2 + $0xf78] sm:$0xff] }
 0x1cc   :  { %2010 = vst [vmem:[#allocation5 + $0xe08] sm:$0xff] %v1498_v14  ;;  %v1011_v14 = vmax.f32 %v499_v6, 0.0  ;;  %v1521_v19 = vmin.f32 %v1009_v8, 6.0  ;;  %v521_v8 = vld [vmem:[#allocation2 + $0xf80] sm:$0xff] }
 0x1cd   :  { %2011 = vst [vmem:[#allocation5 + $0xe10] sm:$0xff] %v1499_v17  ;;  %v1012_v17 = vmax.f32 %v500_v9, 0.0  ;;  %v1522_v22 = vmin.f32 %v1010_v11, 6.0  ;;  %v522_v11 = vld [vmem:[#allocation2 + $0xf88] sm:$0xff] }
 0x1ce   :  { %2012 = vst [vmem:[#allocation5 + $0xe18] sm:$0xff] %v1500_v20  ;;  %v1013_v20 = vmax.f32 %v501_v12, 0.0  ;;  %v1523_v25 = vmin.f32 %v1011_v14, 6.0  ;;  %v523_v14 = vld [vmem:[#allocation2 + $0xf90] sm:$0xff] }
 0x1cf   :  { %2013 = vst [vmem:[#allocation5 + $0xe20] sm:$0xff] %v1501_v23  ;;  %v1014_v23 = vmax.f32 %v502_v15, 0.0  ;;  %v1524_v28 = vmin.f32 %v1012_v17, 6.0  ;;  %v524_v17 = vld [vmem:[#allocation2 + $0xf98] sm:$0xff] }
 0x1d0   :  { %2014 = vst [vmem:[#allocation5 + $0xe28] sm:$0xff] %v1502_v26  ;;  %v1015_v26 = vmax.f32 %v503_v18, 0.0  ;;  %v1525_v31 = vmin.f32 %v1013_v20, 6.0  ;;  %v525_v20 = vld [vmem:[#allocation2 + $0xfa0] sm:$0xff] }
 0x1d1   :  { %2015 = vst [vmem:[#allocation5 + $0xe30] sm:$0xff] %v1503_v29  ;;  %v1016_v29 = vmax.f32 %v504_v21, 0.0  ;;  %v1526_v34 = vmin.f32 %v1014_v23, 6.0  ;;  %v526_v23 = vld [vmem:[#allocation2 + $0xfa8] sm:$0xff] }
 0x1d2   :  { %2016 = vst [vmem:[#allocation5 + $0xe38] sm:$0xff] %v1504_v32  ;;  %v1017_v32 = vmax.f32 %v505_v24, 0.0  ;;  %v1527_v37 = vmin.f32 %v1015_v26, 6.0  ;;  %v527_v26 = vld [vmem:[#allocation2 + $0xfb0] sm:$0xff] }
 0x1d3   :  { %2017 = vst [vmem:[#allocation5 + $0xe40] sm:$0xff] %v1505_v35  ;;  %v1018_v35 = vmax.f32 %v506_v27, 0.0  ;;  %v1528_v40 = vmin.f32 %v1016_v29, 6.0  ;;  %v528_v29 = vld [vmem:[#allocation2 + $0xfb8] sm:$0xff] }
 0x1d4   :  { %2018 = vst [vmem:[#allocation5 + $0xe48] sm:$0xff] %v1506_v38  ;;  %v1019_v38 = vmax.f32 %v507_v30, 0.0  ;;  %v1529_v43 = vmin.f32 %v1017_v32, 6.0  ;;  %v529_v32 = vld [vmem:[#allocation2 + $0xfc0] sm:$0xff] }
 0x1d5   :  { %2019 = vst [vmem:[#allocation5 + $0xe50] sm:$0xff] %v1507_v41  ;;  %v1020_v41 = vmax.f32 %v508_v33, 0.0  ;;  %v1530_v46 = vmin.f32 %v1018_v35, 6.0  ;;  %v530_v35 = vld [vmem:[#allocation2 + $0xfc8] sm:$0xff] }
 0x1d6   :  { %2020 = vst [vmem:[#allocation5 + $0xe58] sm:$0xff] %v1508_v44  ;;  %v1021_v44 = vmax.f32 %v509_v36, 0.0  ;;  %v1531_v49 = vmin.f32 %v1019_v38, 6.0  ;;  %v531_v38 = vld [vmem:[#allocation2 + $0xfd0] sm:$0xff] }
 0x1d7   :  { %2021 = vst [vmem:[#allocation5 + $0xe60] sm:$0xff] %v1509_v47  ;;  %v1022_v47 = vmax.f32 %v510_v39, 0.0  ;;  %v1532_v52 = vmin.f32 %v1020_v41, 6.0  ;;  %v532_v41 = vld [vmem:[#allocation2 + $0xfd8] sm:$0xff] }
 0x1d8   :  { %2022 = vst [vmem:[#allocation5 + $0xe68] sm:$0xff] %v1510_v50  ;;  %v1023_v50 = vmax.f32 %v511_v42, 0.0  ;;  %v1533_v55 = vmin.f32 %v1021_v44, 6.0  ;;  %v533_v44 = vld [vmem:[#allocation2 + $0xfe0] sm:$0xff] }
 0x1d9   :  { %2023 = vst [vmem:[#allocation5 + $0xe70] sm:$0xff] %v1511_v53  ;;  %v1024_v53 = vmax.f32 %v512_v45, 0.0  ;;  %v1534_v58 = vmin.f32 %v1022_v47, 6.0  ;;  %v534_v47 = vld [vmem:[#allocation2 + $0xfe8] sm:$0xff] }
 0x1da   :  { %2024 = vst [vmem:[#allocation5 + $0xe78] sm:$0xff] %v1512_v56  ;;  %v1025_v56 = vmax.f32 %v513_v48, 0.0  ;;  %v1535_v61 = vmin.f32 %v1023_v50, 6.0  ;;  %v535_v50 = vld [vmem:[#allocation2 + $0xff0] sm:$0xff] }
 0x1db   :  { %2025 = vst [vmem:[#allocation5 + $0xe80] sm:$0xff] %v1513_v59  ;;  %v1026_v59 = vmax.f32 %v514_v51, 0.0  ;;  %v1536_v0 = vmin.f32 %v1024_v53, 6.0  ;;  %v536_v53 = vld [vmem:[#allocation2 + $0xff8] sm:$0xff] }
 0x1dc   :  { %2026 = vst [vmem:[#allocation5 + $0xe88] sm:$0xff] %v1514_v62  ;;  %v1027_v62 = vmax.f32 %v515_v54, 0.0  ;;  %v1537_v3 = vmin.f32 %v1025_v56, 6.0 }
 0x1dd   :  { %2027 = vst [vmem:[#allocation5 + $0xe90] sm:$0xff] %v1515_v1  ;;  %v1028_v1 = vmax.f32 %v516_v57, 0.0  ;;  %v1538_v6 = vmin.f32 %v1026_v59, 6.0  ;;  %v1047_v57 = vmax.f32 %v535_v50, 0.0  ;;  %v1048_v59 = vmax.f32 %v536_v53, 0.0 }
 0x1de   :  { %2028 = vst [vmem:[#allocation5 + $0xe98] sm:$0xff] %v1516_v4  ;;  %v1029_v4 = vmax.f32 %v517_v60, 0.0  ;;  %v1539_v9 = vmin.f32 %v1027_v62, 6.0 }
 0x1df   :  { %2029 = vst [vmem:[#allocation5 + $0xea0] sm:$0xff] %v1517_v7  ;;  %v1030_v7 = vmax.f32 %v518_v63, 0.0  ;;  %v1540_v12 = vmin.f32 %v1028_v1, 6.0  ;;  %v1559_v62 = vmin.f32 %v1047_v57, 6.0  ;;  %v1560_v63 = vmin.f32 %v1048_v59, 6.0 }
 0x1e0   :  { %2030 = vst [vmem:[#allocation5 + $0xea8] sm:$0xff] %v1518_v10  ;;  %v1031_v10 = vmax.f32 %v519_v2, 0.0  ;;  %v1541_v15 = vmin.f32 %v1029_v4, 6.0 }
 0x1e1   :  { %2031 = vst [vmem:[#allocation5 + $0xeb0] sm:$0xff] %v1519_v13  ;;  %v1032_v13 = vmax.f32 %v520_v5, 0.0  ;;  %v1542_v18 = vmin.f32 %v1030_v7, 6.0 }
 0x1e2   :  { %2032 = vst [vmem:[#allocation5 + $0xeb8] sm:$0xff] %v1520_v16  ;;  %v1033_v16 = vmax.f32 %v521_v8, 0.0  ;;  %v1543_v21 = vmin.f32 %v1031_v10, 6.0 }
 0x1e3   :  { %2033 = vst [vmem:[#allocation5 + $0xec0] sm:$0xff] %v1521_v19  ;;  %v1034_v19 = vmax.f32 %v522_v11, 0.0  ;;  %v1544_v24 = vmin.f32 %v1032_v13, 6.0 }
 0x1e4   :  { %2034 = vst [vmem:[#allocation5 + $0xec8] sm:$0xff] %v1522_v22  ;;  %v1035_v22 = vmax.f32 %v523_v14, 0.0  ;;  %v1545_v27 = vmin.f32 %v1033_v16, 6.0 }
 0x1e5   :  { %2035 = vst [vmem:[#allocation5 + $0xed0] sm:$0xff] %v1523_v25  ;;  %v1036_v25 = vmax.f32 %v524_v17, 0.0  ;;  %v1546_v30 = vmin.f32 %v1034_v19, 6.0 }
 0x1e6   :  { %2036 = vst [vmem:[#allocation5 + $0xed8] sm:$0xff] %v1524_v28  ;;  %v1037_v28 = vmax.f32 %v525_v20, 0.0  ;;  %v1547_v33 = vmin.f32 %v1035_v22, 6.0 }
 0x1e7   :  { %2037 = vst [vmem:[#allocation5 + $0xee0] sm:$0xff] %v1525_v31  ;;  %v1038_v31 = vmax.f32 %v526_v23, 0.0  ;;  %v1548_v36 = vmin.f32 %v1036_v25, 6.0 }
 0x1e8   :  { %2038 = vst [vmem:[#allocation5 + $0xee8] sm:$0xff] %v1526_v34  ;;  %v1039_v34 = vmax.f32 %v527_v26, 0.0  ;;  %v1549_v39 = vmin.f32 %v1037_v28, 6.0 }
 0x1e9   :  { %2039 = vst [vmem:[#allocation5 + $0xef0] sm:$0xff] %v1527_v37  ;;  %v1040_v37 = vmax.f32 %v528_v29, 0.0  ;;  %v1550_v42 = vmin.f32 %v1038_v31, 6.0 }
 0x1ea   :  { %2040 = vst [vmem:[#allocation5 + $0xef8] sm:$0xff] %v1528_v40  ;;  %v1041_v40 = vmax.f32 %v529_v32, 0.0  ;;  %v1551_v45 = vmin.f32 %v1039_v34, 6.0 }
 0x1eb   :  { %2041 = vst [vmem:[#allocation5 + $0xf00] sm:$0xff] %v1529_v43  ;;  %v1042_v43 = vmax.f32 %v530_v35, 0.0  ;;  %v1552_v48 = vmin.f32 %v1040_v37, 6.0 }
 0x1ec   :  { %2042 = vst [vmem:[#allocation5 + $0xf08] sm:$0xff] %v1530_v46  ;;  %v1043_v46 = vmax.f32 %v531_v38, 0.0  ;;  %v1553_v51 = vmin.f32 %v1041_v40, 6.0 }
 0x1ed   :  { %2043 = vst [vmem:[#allocation5 + $0xf10] sm:$0xff] %v1531_v49  ;;  %v1044_v49 = vmax.f32 %v532_v41, 0.0  ;;  %v1554_v54 = vmin.f32 %v1042_v43, 6.0 }
 0x1ee   :  { %2044 = vst [vmem:[#allocation5 + $0xf18] sm:$0xff] %v1532_v52  ;;  %v1045_v52 = vmax.f32 %v533_v44, 0.0  ;;  %v1555_v56 = vmin.f32 %v1043_v46, 6.0 }
 0x1ef   :  { %2045 = vst [vmem:[#allocation5 + $0xf20] sm:$0xff] %v1533_v55  ;;  %v1046_v55 = vmax.f32 %v534_v47, 0.0 }
 0x1f0   :  { %2046 = vst [vmem:[#allocation5 + $0xf28] sm:$0xff] %v1534_v58  ;;  %v1556_v58 = vmin.f32 %v1044_v49, 6.0  ;;  %v1557_v60 = vmin.f32 %v1045_v52, 6.0 }
 0x1f1   :  { %2047 = vst [vmem:[#allocation5 + $0xf30] sm:$0xff] %v1535_v61  ;;  %v1558_v61 = vmin.f32 %v1046_v55, 6.0 }
 0x1f2   :  { %2048 = vst [vmem:[#allocation5 + $0xf38] sm:$0xff] %v1536_v0 }
 0x1f3   :  { %2049 = vst [vmem:[#allocation5 + $0xf40] sm:$0xff] %v1537_v3 }
 0x1f4   :  { %2050 = vst [vmem:[#allocation5 + $0xf48] sm:$0xff] %v1538_v6 }
 0x1f5   :  { %2051 = vst [vmem:[#allocation5 + $0xf50] sm:$0xff] %v1539_v9 }
 0x1f6   :  { %2052 = vst [vmem:[#allocation5 + $0xf58] sm:$0xff] %v1540_v12 }
 0x1f7   :  { %2053 = vst [vmem:[#allocation5 + $0xf60] sm:$0xff] %v1541_v15 }
 0x1f8   :  { %2054 = vst [vmem:[#allocation5 + $0xf68] sm:$0xff] %v1542_v18 }
 0x1f9   :  { %2055 = vst [vmem:[#allocation5 + $0xf70] sm:$0xff] %v1543_v21 }
 0x1fa   :  { %2056 = vst [vmem:[#allocation5 + $0xf78] sm:$0xff] %v1544_v24 }
 0x1fb   :  { %2057 = vst [vmem:[#allocation5 + $0xf80] sm:$0xff] %v1545_v27 }
 0x1fc   :  { %2058 = vst [vmem:[#allocation5 + $0xf88] sm:$0xff] %v1546_v30 }
 0x1fd   :  { %2059 = vst [vmem:[#allocation5 + $0xf90] sm:$0xff] %v1547_v33 }
 0x1fe   :  { %2060 = vst [vmem:[#allocation5 + $0xf98] sm:$0xff] %v1548_v36 }
 0x1ff   :  { %2061 = vst [vmem:[#allocation5 + $0xfa0] sm:$0xff] %v1549_v39 }
 0x200   :  { %2062 = vst [vmem:[#allocation5 + $0xfa8] sm:$0xff] %v1550_v42 }
 0x201   :  { %2063 = vst [vmem:[#allocation5 + $0xfb0] sm:$0xff] %v1551_v45 }
 0x202   :  { %2064 = vst [vmem:[#allocation5 + $0xfb8] sm:$0xff] %v1552_v48 }
 0x203   :  { %2065 = vst [vmem:[#allocation5 + $0xfc0] sm:$0xff] %v1553_v51 }
 0x204   :  { %2066 = vst [vmem:[#allocation5 + $0xfc8] sm:$0xff] %v1554_v54 }
 0x205   :  { %2067 = vst [vmem:[#allocation5 + $0xfd0] sm:$0xff] %v1555_v56 }
 0x206   :  { %2068 = vst [vmem:[#allocation5 + $0xfd8] sm:$0xff] %v1556_v58 }
 0x207   :  { %2069 = vst [vmem:[#allocation5 + $0xfe0] sm:$0xff] %v1557_v60 }
 0x208   :  { %2070 = vst [vmem:[#allocation5 + $0xfe8] sm:$0xff] %v1558_v61 }
 0x209   :  { %2071 = vst [vmem:[#allocation5 + $0xff0] sm:$0xff] %v1559_v62 }
 0x20a   :  { %2072 = vst [vmem:[#allocation5 + $0xff8] sm:$0xff] %v1560_v63 }
 0x20b   :  { %2085 = dma.vmem_to_hbm [thread:$0]  %s2078_s13, 65536, %s2080_s16, [#allocation4], %s2149_s11, %s2149_s11, %s2150_s12  }
 0x20c   :  { %2146 = dma.done.wait [#allocation4], 65536  }
 0x20d   :  { %2147 = vsyncadd [#allocation4], 4294901760 }
 0x20e   :  { %2090 = vsyncpa [#allocation3], 1 }
 0x20f   :  { %2091 = vsyncpa [#allocation4], 1 }

</bundles_post_ra>
